<compile_context>
chip_gen: v5e
topology: v5e:2x2
jax: 0.10.0
libtpu: 0.0.40
codegen_flags: <defaults>
</compile_context>

<pallas_src>
import functools

import jax
import jax.numpy as jnp
from jax import lax
from jax.experimental import pallas as pl
from jax.experimental.pallas import tpu as pltpu

EPS = 1e-5


# ------------------------------ Fused kernel ------------------------------- #

def _bottleneck_kernel(x_ref, w1_ref, b1_ref, w2_ref, b2_ref, w3_ref, b3_ref,
                       o_ref, p1_ref, *, row_tile):
    """One batch image: conv1(1x1)+bn+relu -> conv2(3x3)+bn+relu -> conv3(1x1)
    +bn + residual + relu, entirely in VMEM.

    x_ref : (H, W, Cin)           input block (batch dim squeezed)
    w1_ref: (Cin, P)              BN1 scale folded in
    w2_ref: (9*P, P)              (ky, kx, cin) packed into the contraction
    w3_ref: (P, Cout)             BN3 scale folded in
    b*_ref: (1, C)                folded BN biases
    o_ref : (H, W, Cout)
    p1_ref: (H+2, W+2, P)         VMEM scratch, zero-padded conv1 output
    """
    h, w, cin = x_ref.shape
    planes = w1_ref.shape[1]
    cout = w3_ref.shape[1]
    f32 = jnp.float32

    # Hoist weight / bias loads (JAX does not CSE these inside the loop).
    w1 = w1_ref[...]
    w2 = w2_ref[...]
    w3 = w3_ref[...]
    b1 = b1_ref[...]
    b2 = b2_ref[...]
    b3 = b3_ref[...]

    # ---- conv1 (1x1) + bias + ReLU over the whole image block -------------- #
    x_flat = x_ref[...].reshape(h * w, cin)
    o1 = jnp.dot(x_flat, w1, preferred_element_type=f32)
    o1 = jnp.maximum(o1 + b1, 0.0).reshape(h, w, planes)

    # ---- write conv1 result into the (H+2, W+2) zero-padded VMEM scratch --- #
    # (halo rewritten every grid step: scratch state must not depend on
    #  program_id when the batch axis is megacore-sharded)
    zcol = jnp.zeros((h, 1, planes), f32)
    zrow = jnp.zeros((1, w + 2, planes), f32)
    p1_ref[pl.ds(0, 1)] = zrow                                     # top halo
    p1_ref[pl.ds(h + 1, 1)] = zrow                                 # bottom halo
    p1_ref[pl.ds(1, h)] = jnp.concatenate([zcol, o1, zcol], axis=1)

    # ---- conv2 (3x3) + conv3 (1x1) + residual + ReLU, one row-tile at a time #
    for t in range(h // row_tile):
        r0 = t * row_tile

        rows = p1_ref[pl.ds(r0, row_tile + 2)]               # (TR+2, W+2, P)
        slabs = [rows[ky:ky + row_tile, kx:kx + w, :]         # 9 shifted slabs
                 for ky in range(3) for kx in range(3)]
        patch = jnp.concatenate(slabs, axis=-1).reshape(row_tile * w, 9 * planes)

        o2 = jnp.dot(patch, w2, preferred_element_type=f32)   # one K=9P matmul
        o2 = jnp.maximum(o2 + b2, 0.0)                        # bn2 bias + relu

        y = jnp.dot(o2, w3, preferred_element_type=f32)       # conv3 (1x1)
        resid = x_ref[pl.ds(r0, row_tile)].reshape(row_tile * w, cin).astype(f32)
        y = jnp.maximum(y + b3 + resid, 0.0)                  # bn3 + residual + relu
        o_ref[pl.ds(r0, row_tile)] = y.reshape(row_tile, w, cout).astype(o_ref.dtype)


# ------------------------------ Host wrapper ------------------------------- #

def fold_bn(gamma, beta, mean, var):
    scale = gamma / jnp.sqrt(var + EPS)
    bias = beta - mean * scale
    return scale, bias


def bottleneck_forward(x_nchw, params, *, row_tile=8):
    """Fused Pallas implementation of Bottleneck.forward (stride=1, no downsample)."""
    x = jnp.transpose(x_nchw, (0, 2, 3, 1)).astype(jnp.float32)    # NCHW -> NHWC
    n, h, w, cin = x.shape
    planes = params["w1"].shape[-1]
    cout = params["w3"].shape[-1]
    assert cout == cin, "identity path requires inplanes == planes * expansion"

    tr = min(row_tile, h)
    while tr > 1 and h % tr != 0:
        tr //= 2
    tr = max(tr, 1)

    s1, b1 = fold_bn(params["g1"], params["be1"], params["m1"], params["v1"])
    s2, b2 = fold_bn(params["g2"], params["be2"], params["m2"], params["v2"])
    s3, b3 = fold_bn(params["g3"], params["be3"], params["m3"], params["v3"])

    # Fold BN scale into conv weights (conv is linear per output channel).
    w1s = params["w1"].reshape(cin, planes) * s1[None, :]                 # (Cin, P)
    w2s = (params["w2"] * s2[None, None, None, :]).reshape(9 * planes, planes)
    w3s = params["w3"].reshape(planes, cout) * s3[None, :]                # (P, Cout)
    b1 = b1.reshape(1, planes)
    b2 = b2.reshape(1, planes)
    b3 = b3.reshape(1, cout)

    # Per-grid-step VMEM working set: double-buffered in/out blocks + resident
    # weights + padded conv1 scratch.  Keep the scoped-VMEM request within a
    # conservative budget that is safe on v7x (64 MiB physical / 32 MiB scoped).
    bs = 4
    blk_in = h * w * cin * bs
    blk_out = h * w * cout * bs
    scratch_b = (h + 2) * (w + 2) * planes * bs
    wts_b = (cin * planes + 9 * planes * planes + planes * cout
             + 2 * planes + cout) * bs
    need = 2 * (blk_in + blk_out) + scratch_b + wts_b
    vmem_limit = int(min(max(2 * need, 16 * 1024 * 1024), 32 * 1024 * 1024))

    kernel = functools.partial(_bottleneck_kernel, row_tile=tr)

    out = pl.pallas_call(
        kernel,
        out_shape=jax.ShapeDtypeStruct((n, h, w, cout), jnp.float32),
        grid=(n,),
        in_specs=[
            pl.BlockSpec((None, h, w, cin), lambda b: (b, 0, 0, 0)),   # x block
            pl.BlockSpec((cin, planes), lambda b: (0, 0)),             # w1 (resident)
            pl.BlockSpec((1, planes), lambda b: (0, 0)),               # b1
            pl.BlockSpec((9 * planes, planes), lambda b: (0, 0)),      # w2 (packed)
            pl.BlockSpec((1, planes), lambda b: (0, 0)),               # b2
            pl.BlockSpec((planes, cout), lambda b: (0, 0)),            # w3
            pl.BlockSpec((1, cout), lambda b: (0, 0)),                 # b3
        ],
        out_specs=pl.BlockSpec((None, h, w, cout), lambda b: (b, 0, 0, 0)),
        scratch_shapes=[pltpu.VMEM((h + 2, w + 2, planes), jnp.float32)],
        compiler_params=pltpu.CompilerParams(
            dimension_semantics=("parallel",),
            vmem_limit_bytes=vmem_limit,
        ),
    )(x, w1s, b1, w2s, b2, w3s, b3)

    return jnp.transpose(out, (0, 3, 1, 2))                          # NHWC -> NCHW


# --------------------------- Pure-JAX reference ---------------------------- #

def bottleneck_reference(x_nchw, params):
    x = jnp.transpose(x_nchw, (0, 2, 3, 1))
    dn = ("NHWC", "HWIO", "NHWC")

    def bn(y, g, be, m, v):
        return (y - m) / jnp.sqrt(v + EPS) * g + be

    o = lax.conv_general_dilated(x, params["w1"], (1, 1), "VALID", dimension_numbers=dn)
    o = jax.nn.relu(bn(o, params["g1"], params["be1"], params["m1"], params["v1"]))
    o = lax.conv_general_dilated(o, params["w2"], (1, 1), ((1, 1), (1, 1)), dimension_numbers=dn)
    o = jax.nn.relu(bn(o, params["g2"], params["be2"], params["m2"], params["v2"]))
    o = lax.conv_general_dilated(o, params["w3"], (1, 1), "VALID", dimension_numbers=dn)
    o = bn(o, params["g3"], params["be3"], params["m3"], params["v3"])
    o = jax.nn.relu(o + x)
    return jnp.transpose(o, (0, 3, 1, 2))


# --------------------------------- Params ---------------------------------- #

def init_params(key, inplanes, planes):
    expansion = 4
    ks = jax.random.split(key, 12)
    p = {
        # conv weights stored HWIO (kernel uses flattened, BN-scale-folded forms)
        "w1": jax.random.normal(ks[0], (1, 1, inplanes, planes), jnp.float32) * 0.1,
        "w2": jax.random.normal(ks[1], (3, 3, planes, planes), jnp.float32) * 0.1,
        "w3": jax.random.normal(ks[2], (1, 1, planes, planes * expansion), jnp.float32) * 0.1,
    }
    for i, c in zip((1, 2, 3), (planes, planes, planes * expansion)):
        p[f"g{i}"]  = 1.0 + 0.1 * jax.random.normal(ks[2 + i], (c,), jnp.float32)
        p[f"be{i}"] = 0.1 * jax.random.normal(ks[5 + i], (c,), jnp.float32)
        p[f"m{i}"]  = 0.05 * jax.random.normal(ks[8 + i], (c,), jnp.float32)
        p[f"v{i}"]  = 1.0 + 0.1 * jnp.abs(jax.random.normal(ks[(8 + i) % 12], (c,), jnp.float32))
    return p


# ----------------------------------- Main ----------------------------------- #

if __name__ == "__main__":
    key = jax.random.PRNGKey(0)
    k_x, k_p = jax.random.split(key)

    planes = 8
    inplanes = planes * 4          # identity path (no downsample) is valid
    N, H, W = 2, 16, 16

    x = jax.random.normal(k_x, (N, inplanes, H, W), jnp.float32)   # NCHW like PyTorch
    params = init_params(k_p, inplanes, planes)

    out = jax.jit(bottleneck_forward)(x, params)
    out = jax.block_until_ready(out)

    ref = jax.block_until_ready(bottleneck_reference(x, params))
    max_err = float(jnp.max(jnp.abs(out - ref)))
    assert out.shape == (N, inplanes, H, W)
    # f32 everywhere (MXU default-precision matmul vs XLA conv); same tolerance
    # as the previously validated version (no dtype changes, only K-packing
    # reorders the f32 accumulation).
    assert max_err < 5e-2, f"max abs error too large: {max_err}"

    print("KERNEL_OK")
</pallas_src>

<mosaic_0001>
module attributes {stable_mosaic.version = 11 : i64} {
  func.func @_bottleneck_kernel(%arg0: i32, %arg1: memref<1x16x16x32xf32, #tpu.memory_space<vmem>>, %arg2: memref<32x8xf32, #tpu.memory_space<vmem>>, %arg3: memref<1x8xf32, #tpu.memory_space<vmem>>, %arg4: memref<72x8xf32, #tpu.memory_space<vmem>>, %arg5: memref<1x8xf32, #tpu.memory_space<vmem>>, %arg6: memref<8x32xf32, #tpu.memory_space<vmem>>, %arg7: memref<1x32xf32, #tpu.memory_space<vmem>>, %arg8: memref<1x16x16x32xf32, #tpu.memory_space<vmem>>, %arg9: memref<18x18x8xf32, #tpu.memory_space<vmem>>) attributes {dimension_semantics = [#tpu.dimension_semantics<parallel>], iteration_bounds = array<i64: 2>, scalar_prefetch = 0 : i64, scratch_operands = 1 : i64, tpu.core_type = #tpu.core_type<tc>, window_params = [{transform_indices = @transform_0, window_bounds = array<i64: 1, 16, 16, 32>}, {pipeline_mode = #tpu.pipeline_mode<synchronous>, transform_indices = @transform_1, window_bounds = array<i64: 32, 8>}, {pipeline_mode = #tpu.pipeline_mode<synchronous>, transform_indices = @transform_2, window_bounds = array<i64: 1, 8>}, {pipeline_mode = #tpu.pipeline_mode<synchronous>, transform_indices = @transform_3, window_bounds = array<i64: 72, 8>}, {pipeline_mode = #tpu.pipeline_mode<synchronous>, transform_indices = @transform_4, window_bounds = array<i64: 1, 8>}, {pipeline_mode = #tpu.pipeline_mode<synchronous>, transform_indices = @transform_5, window_bounds = array<i64: 8, 32>}, {pipeline_mode = #tpu.pipeline_mode<synchronous>, transform_indices = @transform_6, window_bounds = array<i64: 1, 32>}, {transform_indices = @transform_7, window_bounds = array<i64: 1, 16, 16, 32>}]} {
    %c0 = arith.constant 0 : index
    %c0_0 = arith.constant 0 : index
    %0 = vector.load %arg2[%c0, %c0_0] : memref<32x8xf32, #tpu.memory_space<vmem>>, vector<32x8xf32>
    %c0_1 = arith.constant 0 : index
    %c0_2 = arith.constant 0 : index
    %1 = vector.load %arg4[%c0_1, %c0_2] : memref<72x8xf32, #tpu.memory_space<vmem>>, vector<72x8xf32>
    %c0_3 = arith.constant 0 : index
    %c0_4 = arith.constant 0 : index
    %2 = vector.load %arg6[%c0_3, %c0_4] : memref<8x32xf32, #tpu.memory_space<vmem>>, vector<8x32xf32>
    %c0_5 = arith.constant 0 : index
    %c0_6 = arith.constant 0 : index
    %3 = vector.load %arg3[%c0_5, %c0_6] : memref<1x8xf32, #tpu.memory_space<vmem>>, vector<1x8xf32>
    %c0_7 = arith.constant 0 : index
    %c0_8 = arith.constant 0 : index
    %4 = vector.load %arg5[%c0_7, %c0_8] : memref<1x8xf32, #tpu.memory_space<vmem>>, vector<1x8xf32>
    %c0_9 = arith.constant 0 : index
    %c0_10 = arith.constant 0 : index
    %5 = vector.load %arg7[%c0_9, %c0_10] : memref<1x32xf32, #tpu.memory_space<vmem>>, vector<1x32xf32>
    %c0_11 = arith.constant 0 : index
    %c0_12 = arith.constant 0 : index
    %c0_13 = arith.constant 0 : index
    %c0_14 = arith.constant 0 : index
    %6 = vector.load %arg1[%c0_11, %c0_12, %c0_13, %c0_14] : memref<1x16x16x32xf32, #tpu.memory_space<vmem>>, vector<1x16x16x32xf32>
    %7 = vector.shape_cast %6 : vector<1x16x16x32xf32> to vector<16x16x32xf32>
    %8 = vector.shape_cast %7 : vector<16x16x32xf32> to vector<256x32xf32>
    %cst = arith.constant dense<0.000000e+00> : vector<256x8xf32>
    %9 = tpu.matmul %8, %0, %cst {dimension_numbers = #tpu.dot_dimension_numbers<[1], [0], [0], [1], [0, 0, 1, 1], [], []>} : vector<256x32xf32>, vector<32x8xf32>, vector<256x8xf32> -> vector<256x8xf32>
    %10 = vector.broadcast %3 : vector<1x8xf32> to vector<256x8xf32>
    %11 = arith.addf %9, %10 : vector<256x8xf32>
    %cst_15 = arith.constant 0.000000e+00 : f32
    %12 = vector.broadcast %cst_15 : f32 to vector<256x8xf32>
    %13 = arith.maximumf %11, %12 : vector<256x8xf32>
    %14 = vector.shape_cast %13 : vector<256x8xf32> to vector<16x16x8xf32>
    %cst_16 = arith.constant 0.000000e+00 : f32
    %15 = vector.broadcast %cst_16 : f32 to vector<16x1x8xf32>
    %cst_17 = arith.constant 0.000000e+00 : f32
    %16 = vector.broadcast %cst_17 : f32 to vector<1x18x8xf32>
    %c0_18 = arith.constant 0 : index
    %c0_19 = arith.constant 0 : index
    %c0_20 = arith.constant 0 : index
    %17 = vector.load %arg9[%c0_18, %c0_19, %c0_20] : memref<18x18x8xf32, #tpu.memory_space<vmem>>, vector<1x18x8xf32>
    tpu.vector_store %arg9[%c0_18, %c0_19, %c0_20], %16 {strides = array<i32>} : memref<18x18x8xf32, #tpu.memory_space<vmem>>, vector<1x18x8xf32>,
    %c17 = arith.constant 17 : index
    %c0_21 = arith.constant 0 : index
    %c0_22 = arith.constant 0 : index
    %18 = vector.load %arg9[%c17, %c0_21, %c0_22] : memref<18x18x8xf32, #tpu.memory_space<vmem>>, vector<1x18x8xf32>
    tpu.vector_store %arg9[%c17, %c0_21, %c0_22], %16 {strides = array<i32>} : memref<18x18x8xf32, #tpu.memory_space<vmem>>, vector<1x18x8xf32>,
    %19 = tpu.concatenate %15, %14, %15 in 1 : vector<16x1x8xf32>, vector<16x16x8xf32>, vector<16x1x8xf32> -> vector<16x18x8xf32>
    %c1 = arith.constant 1 : index
    %c0_23 = arith.constant 0 : index
    %c0_24 = arith.constant 0 : index
    %20 = vector.load %arg9[%c1, %c0_23, %c0_24] : memref<18x18x8xf32, #tpu.memory_space<vmem>>, vector<16x18x8xf32>
    tpu.vector_store %arg9[%c1, %c0_23, %c0_24], %19 {strides = array<i32>} : memref<18x18x8xf32, #tpu.memory_space<vmem>>, vector<16x18x8xf32>,
    %c0_25 = arith.constant 0 : index
    %c0_26 = arith.constant 0 : index
    %c0_27 = arith.constant 0 : index
    %21 = vector.load %arg9[%c0_25, %c0_26, %c0_27] : memref<18x18x8xf32, #tpu.memory_space<vmem>>, vector<10x18x8xf32>
    %22 = vector.extract_strided_slice %21 {offsets = [0, 0, 0], sizes = [8, 16, 8], strides = [1, 1, 1]} : vector<10x18x8xf32> to vector<8x16x8xf32>
    %23 = vector.extract_strided_slice %21 {offsets = [0, 1, 0], sizes = [8, 16, 8], strides = [1, 1, 1]} : vector<10x18x8xf32> to vector<8x16x8xf32>
    %24 = vector.extract_strided_slice %21 {offsets = [0, 2, 0], sizes = [8, 16, 8], strides = [1, 1, 1]} : vector<10x18x8xf32> to vector<8x16x8xf32>
    %25 = vector.extract_strided_slice %21 {offsets = [1, 0, 0], sizes = [8, 16, 8], strides = [1, 1, 1]} : vector<10x18x8xf32> to vector<8x16x8xf32>
    %26 = vector.extract_strided_slice %21 {offsets = [1, 1, 0], sizes = [8, 16, 8], strides = [1, 1, 1]} : vector<10x18x8xf32> to vector<8x16x8xf32>
    %27 = vector.extract_strided_slice %21 {offsets = [1, 2, 0], sizes = [8, 16, 8], strides = [1, 1, 1]} : vector<10x18x8xf32> to vector<8x16x8xf32>
    %28 = vector.extract_strided_slice %21 {offsets = [2, 0, 0], sizes = [8, 16, 8], strides = [1, 1, 1]} : vector<10x18x8xf32> to vector<8x16x8xf32>
    %29 = vector.extract_strided_slice %21 {offsets = [2, 1, 0], sizes = [8, 16, 8], strides = [1, 1, 1]} : vector<10x18x8xf32> to vector<8x16x8xf32>
    %30 = vector.extract_strided_slice %21 {offsets = [2, 2, 0], sizes = [8, 16, 8], strides = [1, 1, 1]} : vector<10x18x8xf32> to vector<8x16x8xf32>
    %31 = tpu.concatenate %22, %23, %24, %25, %26, %27, %28, %29, %30 in 2 : vector<8x16x8xf32>, vector<8x16x8xf32>, vector<8x16x8xf32>, vector<8x16x8xf32>, vector<8x16x8xf32>, vector<8x16x8xf32>, vector<8x16x8xf32>, vector<8x16x8xf32>, vector<8x16x8xf32> -> vector<8x16x72xf32>
    %32 = vector.shape_cast %31 : vector<8x16x72xf32> to vector<128x72xf32>
    %cst_28 = arith.constant dense<0.000000e+00> : vector<128x8xf32>
    %33 = tpu.matmul %32, %1, %cst_28 {dimension_numbers = #tpu.dot_dimension_numbers<[1], [0], [0], [1], [0, 0, 1, 1], [], []>} : vector<128x72xf32>, vector<72x8xf32>, vector<128x8xf32> -> vector<128x8xf32>
    %34 = vector.broadcast %4 : vector<1x8xf32> to vector<128x8xf32>
    %35 = arith.addf %33, %34 : vector<128x8xf32>
    %cst_29 = arith.constant 0.000000e+00 : f32
    %36 = vector.broadcast %cst_29 : f32 to vector<128x8xf32>
    %37 = arith.maximumf %35, %36 : vector<128x8xf32>
    %cst_30 = arith.constant dense<0.000000e+00> : vector<128x32xf32>
    %38 = tpu.matmul %37, %2, %cst_30 {dimension_numbers = #tpu.dot_dimension_numbers<[1], [0], [0], [1], [0, 0, 1, 1], [], []>} : vector<128x8xf32>, vector<8x32xf32>, vector<128x32xf32> -> vector<128x32xf32>
    %c0_31 = arith.constant 0 : index
    %c0_32 = arith.constant 0 : index
    %c0_33 = arith.constant 0 : index
    %c0_34 = arith.constant 0 : index
    %39 = vector.load %arg1[%c0_31, %c0_32, %c0_33, %c0_34] : memref<1x16x16x32xf32, #tpu.memory_space<vmem>>, vector<1x8x16x32xf32>
    %40 = vector.shape_cast %39 : vector<1x8x16x32xf32> to vector<8x16x32xf32>
    %41 = vector.shape_cast %40 : vector<8x16x32xf32> to vector<128x32xf32>
    %42 = vector.broadcast %5 : vector<1x32xf32> to vector<128x32xf32>
    %43 = arith.addf %38, %42 : vector<128x32xf32>
    %44 = arith.addf %43, %41 : vector<128x32xf32>
    %cst_35 = arith.constant 0.000000e+00 : f32
    %45 = vector.broadcast %cst_35 : f32 to vector<128x32xf32>
    %46 = arith.maximumf %44, %45 : vector<128x32xf32>
    %47 = vector.shape_cast %46 : vector<128x32xf32> to vector<8x16x32xf32>
    %c0_36 = arith.constant 0 : index
    %c0_37 = arith.constant 0 : index
    %c0_38 = arith.constant 0 : index
    %c0_39 = arith.constant 0 : index
    %48 = vector.load %arg8[%c0_36, %c0_37, %c0_38, %c0_39] : memref<1x16x16x32xf32, #tpu.memory_space<vmem>>, vector<1x8x16x32xf32>
    %49 = vector.shape_cast %48 : vector<1x8x16x32xf32> to vector<8x16x32xf32>
    %50 = vector.shape_cast %47 : vector<8x16x32xf32> to vector<1x8x16x32xf32>
    tpu.vector_store %arg8[%c0_36, %c0_37, %c0_38, %c0_39], %50 {strides = array<i32>} : memref<1x16x16x32xf32, #tpu.memory_space<vmem>>, vector<1x8x16x32xf32>,
    %c8 = arith.constant 8 : index
    %c0_40 = arith.constant 0 : index
    %c0_41 = arith.constant 0 : index
    %51 = vector.load %arg9[%c8, %c0_40, %c0_41] : memref<18x18x8xf32, #tpu.memory_space<vmem>>, vector<10x18x8xf32>
    %52 = vector.extract_strided_slice %51 {offsets = [0, 0, 0], sizes = [8, 16, 8], strides = [1, 1, 1]} : vector<10x18x8xf32> to vector<8x16x8xf32>
    %53 = vector.extract_strided_slice %51 {offsets = [0, 1, 0], sizes = [8, 16, 8], strides = [1, 1, 1]} : vector<10x18x8xf32> to vector<8x16x8xf32>
    %54 = vector.extract_strided_slice %51 {offsets = [0, 2, 0], sizes = [8, 16, 8], strides = [1, 1, 1]} : vector<10x18x8xf32> to vector<8x16x8xf32>
    %55 = vector.extract_strided_slice %51 {offsets = [1, 0, 0], sizes = [8, 16, 8], strides = [1, 1, 1]} : vector<10x18x8xf32> to vector<8x16x8xf32>
    %56 = vector.extract_strided_slice %51 {offsets = [1, 1, 0], sizes = [8, 16, 8], strides = [1, 1, 1]} : vector<10x18x8xf32> to vector<8x16x8xf32>
    %57 = vector.extract_strided_slice %51 {offsets = [1, 2, 0], sizes = [8, 16, 8], strides = [1, 1, 1]} : vector<10x18x8xf32> to vector<8x16x8xf32>
    %58 = vector.extract_strided_slice %51 {offsets = [2, 0, 0], sizes = [8, 16, 8], strides = [1, 1, 1]} : vector<10x18x8xf32> to vector<8x16x8xf32>
    %59 = vector.extract_strided_slice %51 {offsets = [2, 1, 0], sizes = [8, 16, 8], strides = [1, 1, 1]} : vector<10x18x8xf32> to vector<8x16x8xf32>
    %60 = vector.extract_strided_slice %51 {offsets = [2, 2, 0], sizes = [8, 16, 8], strides = [1, 1, 1]} : vector<10x18x8xf32> to vector<8x16x8xf32>
    %61 = tpu.concatenate %52, %53, %54, %55, %56, %57, %58, %59, %60 in 2 : vector<8x16x8xf32>, vector<8x16x8xf32>, vector<8x16x8xf32>, vector<8x16x8xf32>, vector<8x16x8xf32>, vector<8x16x8xf32>, vector<8x16x8xf32>, vector<8x16x8xf32>, vector<8x16x8xf32> -> vector<8x16x72xf32>
    %62 = vector.shape_cast %61 : vector<8x16x72xf32> to vector<128x72xf32>
    %cst_42 = arith.constant dense<0.000000e+00> : vector<128x8xf32>
    %63 = tpu.matmul %62, %1, %cst_42 {dimension_numbers = #tpu.dot_dimension_numbers<[1], [0], [0], [1], [0, 0, 1, 1], [], []>} : vector<128x72xf32>, vector<72x8xf32>, vector<128x8xf32> -> vector<128x8xf32>
    %64 = vector.broadcast %4 : vector<1x8xf32> to vector<128x8xf32>
    %65 = arith.addf %63, %64 : vector<128x8xf32>
    %cst_43 = arith.constant 0.000000e+00 : f32
    %66 = vector.broadcast %cst_43 : f32 to vector<128x8xf32>
    %67 = arith.maximumf %65, %66 : vector<128x8xf32>
    %cst_44 = arith.constant dense<0.000000e+00> : vector<128x32xf32>
    %68 = tpu.matmul %67, %2, %cst_44 {dimension_numbers = #tpu.dot_dimension_numbers<[1], [0], [0], [1], [0, 0, 1, 1], [], []>} : vector<128x8xf32>, vector<8x32xf32>, vector<128x32xf32> -> vector<128x32xf32>
    %c0_45 = arith.constant 0 : index
    %c8_46 = arith.constant 8 : index
    %c0_47 = arith.constant 0 : index
    %c0_48 = arith.constant 0 : index
    %69 = vector.load %arg1[%c0_45, %c8_46, %c0_47, %c0_48] : memref<1x16x16x32xf32, #tpu.memory_space<vmem>>, vector<1x8x16x32xf32>
    %70 = vector.shape_cast %69 : vector<1x8x16x32xf32> to vector<8x16x32xf32>
    %71 = vector.shape_cast %70 : vector<8x16x32xf32> to vector<128x32xf32>
    %72 = vector.broadcast %5 : vector<1x32xf32> to vector<128x32xf32>
    %73 = arith.addf %68, %72 : vector<128x32xf32>
    %74 = arith.addf %73, %71 : vector<128x32xf32>
    %cst_49 = arith.constant 0.000000e+00 : f32
    %75 = vector.broadcast %cst_49 : f32 to vector<128x32xf32>
    %76 = arith.maximumf %74, %75 : vector<128x32xf32>
    %77 = vector.shape_cast %76 : vector<128x32xf32> to vector<8x16x32xf32>
    %c0_50 = arith.constant 0 : index
    %c8_51 = arith.constant 8 : index
    %c0_52 = arith.constant 0 : index
    %c0_53 = arith.constant 0 : index
    %78 = vector.load %arg8[%c0_50, %c8_51, %c0_52, %c0_53] : memref<1x16x16x32xf32, #tpu.memory_space<vmem>>, vector<1x8x16x32xf32>
    %79 = vector.shape_cast %78 : vector<1x8x16x32xf32> to vector<8x16x32xf32>
    %80 = vector.shape_cast %77 : vector<8x16x32xf32> to vector<1x8x16x32xf32>
    tpu.vector_store %arg8[%c0_50, %c8_51, %c0_52, %c0_53], %80 {strides = array<i32>} : memref<1x16x16x32xf32, #tpu.memory_space<vmem>>, vector<1x8x16x32xf32>,
    return
  }
  func.func @transform_0(%arg0: i32) -> (i32, i32, i32, i32) {
    %c0_i32 = arith.constant 0 : i32
    %c0_i32_0 = arith.constant 0 : i32
    %c0_i32_1 = arith.constant 0 : i32
    %c0_i32_2 = arith.constant 0 : i32
    return %arg0, %c0_i32, %c0_i32_0, %c0_i32_1 : i32, i32, i32, i32
  }
  func.func @transform_1(%arg0: i32) -> (i32, i32) {
    %c0_i32 = arith.constant 0 : i32
    %c0_i32_0 = arith.constant 0 : i32
    %c0_i32_1 = arith.constant 0 : i32
    return %c0_i32, %c0_i32_0 : i32, i32
  }
  func.func @transform_2(%arg0: i32) -> (i32, i32) {
    %c0_i32 = arith.constant 0 : i32
    %c0_i32_0 = arith.constant 0 : i32
    %c0_i32_1 = arith.constant 0 : i32
    return %c0_i32, %c0_i32_0 : i32, i32
  }
  func.func @transform_3(%arg0: i32) -> (i32, i32) {
    %c0_i32 = arith.constant 0 : i32
    %c0_i32_0 = arith.constant 0 : i32
    %c0_i32_1 = arith.constant 0 : i32
    return %c0_i32, %c0_i32_0 : i32, i32
  }
  func.func @transform_4(%arg0: i32) -> (i32, i32) {
    %c0_i32 = arith.constant 0 : i32
    %c0_i32_0 = arith.constant 0 : i32
    %c0_i32_1 = arith.constant 0 : i32
    return %c0_i32, %c0_i32_0 : i32, i32
  }
  func.func @transform_5(%arg0: i32) -> (i32, i32) {
    %c0_i32 = arith.constant 0 : i32
    %c0_i32_0 = arith.constant 0 : i32
    %c0_i32_1 = arith.constant 0 : i32
    return %c0_i32, %c0_i32_0 : i32, i32
  }
  func.func @transform_6(%arg0: i32) -> (i32, i32) {
    %c0_i32 = arith.constant 0 : i32
    %c0_i32_0 = arith.constant 0 : i32
    %c0_i32_1 = arith.constant 0 : i32
    return %c0_i32, %c0_i32_0 : i32, i32
  }
  func.func @transform_7(%arg0: i32) -> (i32, i32, i32, i32) {
    %c0_i32 = arith.constant 0 : i32
    %c0_i32_0 = arith.constant 0 : i32
    %c0_i32_1 = arith.constant 0 : i32
    %c0_i32_2 = arith.constant 0 : i32
    return %arg0, %c0_i32, %c0_i32_0, %c0_i32_1 : i32, i32, i32, i32
  }
}

</mosaic_0001>

<bundles_post_ra>
// kernel: bottleneck_forward.1
= control target key start
LH: loop header
LB: loop body
LE: loop exit
PB: predicated region body
PF: predicated region fallthrough
CT: control target
= control target key end

     0   :  { %12 = vsyncpa [#allocation4], 0  ;;  %s5353_s0 = inlined_call_operand.hbm [shape: f32[2,16,16,32], index: 0, kind: input, shape index: {}]   ;;  %s5354_s1 = inlined_call_operand.vmem [shape: f32[32,8], index: 1, kind: input, shape index: {}]   ;;  %s5355_s2 = inlined_call_operand.vmem [shape: f32[1,8], index: 2, kind: input, shape index: {}]   ;;  %s5356_s3 = inlined_call_operand.vmem [shape: f32[72,8], index: 3, kind: input, shape index: {}]   ;;  %s5357_s4 = inlined_call_operand.vmem [shape: f32[1,8], index: 4, kind: input, shape index: {}]   ;;  %s5358_s5 = inlined_call_operand.vmem [shape: f32[8,32], index: 5, kind: input, shape index: {}]   ;;  %s5359_s6 = inlined_call_operand.vmem [shape: f32[1,32], index: 6, kind: input, shape index: {}]   ;;  %s5360_s7 = inlined_call_operand.hbm [shape: f32[2,16,16,32], index: 7, kind: output, shape index: {}]  }
   0x1   :  { %14 = vsyncpa [#allocation4 + $0x1], 0 }
   0x2   :  { %15 = vsyncpa [#allocation5], 0 }
   0x3   :  { %17 = vsyncpa [#allocation5 + $0x1], 0  ;;  %s3255_s24 = smov 0   ;;  %s3257_s25 = smov 0  }
   0x4   :  { %s3259_s26 = smov 0   ;;  %s3261_s27 = smov 0  }
   0x5 LB: > { %s3276_s28 = sadd.s32 4294967295, %s3201_s27   ;;  %s2875_s29 = sadd.s32 4294967294, %s3201_s27   ;;  %s3201_s27 = sphi %s3261_s27, %s5377_s27   ;;  %s3197_s26 = sphi %s3259_s26, %s5376_s26   ;;  %s3193_s25 = sphi %s3257_s25, %s5375_s25   ;;  %s3189_s24 = sphi %s3255_s24, %s5374_s24  }
   0x6   : > { %s3280_s30 = sadd.s32 1, %s3201_s27   ;;  %s30_s8 = sadd.s32 1, %s3197_s26 }
   0x7   : > { %s27_s9 = ssub.s32 %s3201_s27, %s3280_s30  ;;  %p37_p0 = scmp.ne.s32.totalorder %s3197_s26, %s3193_s25 }
   0x8   : > { %p28_p1 = scmp.eq.s32.totalorder %s27_s9, 0  ;;  %p38_p2 = scmp.eq.s32.totalorder %s3201_s27, 0 }
   0x9   : > { %p43_p3 = scmp.ne.s32.totalorder %s3193_s25, %s3189_s24  ;;  %p44_p4 = scmp.eq.s32.totalorder %s3276_s28, 0 }
   0xa   : > { %s3292_s10 = scalar_select %p28_p1, %s3197_s26, %s30_s8  }
   0xb   : > { %p3294_p5 = por %p38_p2, %p37_p0  ;;  %p3298_p6 = por %p44_p4, %p43_p3 }
   0xc   : > { %5364 = sst [smem:[#allocation9_spill]] %s3292_s10  ;;  %p193_p7 = scmp.eq.s32.totalorder %s3276_s28, 1 }
   0xd   : > { %p199_p8 = scmp.eq.s32.totalorder %s2875_s29, 1  ;;  %p3040_p10 = scmp.lt.s32.totalorder %s3201_s27, 2 }
   0xe   : > { %p3305_p11 = por %p193_p7, %p37_p0  ;;  %s237_s15 = sand.u32 1, %s3197_s26  }
   0xf   : > { %p3309_p12 = por %p199_p8, %p43_p3  ;;  %s3017_s16 = sshll.u32 %s3201_s27, 8 }
  0x10   : > { %s2878_s17 = sshll.u32 %s237_s15, 8  ;;  %s246_s20 = scalar_lea.hbm %s5353_s0, %s3017_s16 }
  0x11   : > { %s247_s21 = sshll.u32 %s246_s20, 4  ;;  %s241_s22 = scalar_lea.vmem [#allocation3], %s2878_s17  ;;  %s248_s21 = int_to_ptr.hbm [resolvable:$true] %s247_s21 }
  0x12   : > { %s249_s23 = sshll.u32 %s241_s22, 4  ;;  %p3320_p13 = pnand %p3040_p10, %p3294_p5  ;;  %s250_s23 = int_to_ptr.vmem [resolvable:$true] %s249_s23 }
  0x13   : > { %p2881_p0 = scmp.ge.s32.totalorder %s3201_s27, 1  ;;  %p257_p1 = scmp.lt.s32.totalorder %s3201_s27, 3 }
  0x14   : > { %s238_s8 = scalar_lea.sflag [#allocation4], %s237_s15  ;;  %s3105_s9 = sshra.s32 %s248_s21, 4  ;;  %s3106_s9 = int_to_ptr.hbm [resolvable:$true] %s3105_s9 }
  0x15   : > { %s3107_s10 = scalar_lea.hbm %s3106_s9, 256  ;;  %p3109_p3 = pneg %p3320_p13 }
  0x16   : > { %p3108_p2 = scmp.ne.s32.totalorder %s3106_s9, %s3107_s10  ;;  %s3112_s11 = scalar_lea.hbm %s5353_s0, 512 }
  0x17   : > { %p3113_p5 = scmp.lt.s32.totalorder %s3106_s9, %s5353_s0  ;;  %p3114_p8 = scmp.lt.s32.totalorder %s3112_s11, %s3107_s10 }
  0x18   : > { %p3110_p4 = pnand %p3109_p3, %p3108_p2 }
  0x19   : > { %p3115_p10 = por %p3114_p8, %p3113_p5 }
  0x1a   : > { %p3111_p7 = pneg %p3110_p4 }
  0x1c   : > { %p3116_p9 = pnand %p3115_p10, %p3111_p7 }
  0x1e   : > { %3119 = shalt.err (!%p3116_p9)
}
  0x1f   : > { %s3203_s15 = smov 128   ;;  %s3204_s20 = smov 8  }
  0x20   : > { %3035 = dma.hbm_to_vmem [thread:$0]  (!%p3320_p13), %s248_s21, 4096, %s250_s23, %s238_s8, %s3203_s15, %s3203_s15, %s3204_s20  }
  0x21   : > { %p258_p2 = pnand %p2881_p0, %p257_p1 }
  0x22   : > { %s3341_s22 = sand.u32 (!%p258_p2), 1, %s3193_s25  }
  0x23   : > { %261 = sbr.rel (%p258_p2) target bundleno = 1262 (0x4ee), region = 48  ;;  %s5361_s10 = sshll.u32 (!%p258_p2), %s3341_s22, 8 }
  0x24   : > { %s264_s9 = scalar_lea.sflag (!%p258_p2), [#allocation4], %s3341_s22  ;;  %s3347_s16 = scalar_lea.vmem (!%p258_p2), [#allocation3], %s5361_s10 }
  0x28   : > { %3180 = dma.done.wait (%p3298_p6), %s264_s9, 4096  }
  0x29   : > { %3182 = vsyncadd (%p3298_p6), %s264_s9, 4294963200  ;;  %v302_v0 = vld [vmem:[%s5354_s1 + $0x18] sm:$0xff]  ;;  %v301_v1 = vld [vmem:[%s5354_s1 + $0x10] sm:$0xff]  ;;  %vm351_vm0 = vcmask 261120   ;;  %vm593_vm1 = vcmask 64512   ;;  %v3205_v8 = vmov 0.0  }
  0x2a   : > { %460 = vmatpush.msra.mxu0 %v302_v0  ;;  %3019 = vmatpush.msra.mxu1 %v302_v0  ;;  %v300_v2 = vld [vmem:[%s5354_s1 + $0x8] sm:$0xff]  ;;  %v299_v3 = vld [vmem:[%s5354_s1] sm:$0xff]  ;;  %v316_v4 = vld [vmem:[%s3347_s16] sm:$0xff]  ;;  %594 = vst.msk [vmem:[#allocation2] sm:$0xff] %vm593_vm1, %v3205_v8  ;;  %vm866_vm2 = vcmask 1046528   ;;  %s3206_s19 = smov 8  }
  0x2b   : > { %3020 = vmatpush.msra.mxu3 %v302_v0  ;;  %v317_v5 = vld [vmem:[%s3347_s16 + $0x8] sm:$0xff]  ;;  %v318_v6 = vld [vmem:[%s3347_s16 + $0x10] sm:$0xff]  ;;  %v319_v7 = vld [vmem:[%s3347_s16 + $0x18] sm:$0xff]  ;;  %595 = vst.msk [vmem:[#allocation2 + $0x8] sm:$0xff] %vm593_vm1, %v3205_v8  ;;  %vm596_vm3 = vcmask 58368   ;;  %vm955_vm4 = vcmask 1045504  }
  0x2c   : > { %461 = vmatpush.msra.mxu0 %v301_v1  ;;  %3021 = vmatpush.msra.mxu1 %v301_v1  ;;  %599 = vst.msk [vmem:[#allocation2 + $0x198] sm:$0xff] %vm593_vm1, %v3205_v8  ;;  %v320_v9 = vld [vmem:[%s3347_s16 + $0x20] sm:$0xff]  ;;  %v321_v15 = vld [vmem:[%s3347_s16 + $0x28] sm:$0xff]  ;;  %v322_v16 = vld [vmem:[%s3347_s16 + $0x30] sm:$0xff]  ;;  %s3207_s15 = smov 16   ;;  %vm634_vm5 = vcmask 1040384  }
  0x2d   : > { %3022 = vmatpush.msra.mxu3 %v301_v1  ;;  %600 = vst.msk [vmem:[#allocation2 + $0x1a0] sm:$0xff] %vm593_vm1, %v3205_v8  ;;  %v323_v17 = vld [vmem:[%s3347_s16 + $0x38] sm:$0xff]  ;;  %v324_v26 = vld [vmem:[%s3347_s16 + $0x40] sm:$0xff]  ;;  %v3408_v27 = vld [vmem:[%s5355_s2] ss:$0 sm:$0xff]  ;;  %s5362_s21 = smov 24  }
  0x2e   : > { %462 = vmatpush.msra.mxu0 %v300_v2  ;;  %3023 = vmatpush.msra.mxu1 %v300_v2  ;;  %597 = vst.msk [vmem:[#allocation2 + $0x10] sm:$0x3] %vm596_vm3, %v3205_v8  ;;  %v325_v30 = vld [vmem:[%s3347_s16 + $0x48] sm:$0xff]  ;;  %s3209_s23 = smov 40   ;;  %v326_v57 = vld [vmem:[%s3347_s16 + $0x50] sm:$0xff]  ;;  %s3210_s29 = smov 48  }
  0x2f   : > { %3024 = vmatpush.msra.mxu3 %v300_v2  ;;  %601 = vst.msk [vmem:[#allocation2 + $0x1a8] sm:$0x3] %vm596_vm3, %v3205_v8  ;;  %s3211_s8 = smov 32   ;;  %s3212_s17 = smov 64   ;;  %vm1374_vm6 = vcmask 130048   ;;  %vm1391_vm7 = vcmask 195584  }
  0x30   : > { %463 = vmatpush.msra.mxu0 %v299_v3  ;;  %3025 = vmatpush.msra.mxu1 %v299_v3  ;;  %s3213_s11 = smov 56   ;;  %vm1424_vm8 = vcmask 326656   ;;  %vm1441_vm9 = vcmask 392192   ;;  %s5370_s10 = smov 24   ;;  %vm1458_vm10 = vcmask 457728   ;;  %vm1475_vm11 = vcmask 523264  }
  0x31   : > { %2884 = vmatmul.msk.f32.vlgmr.msra.gmra.mxu0 %vm351_vm0, %v316_v4  ;;  %3026 = vmatpush.msra.mxu3 %v299_v3  ;;  %v3379_v10 = vld [vmem:[#allocation2] sm:$0xff]  ;;  %vm1495_vm12 = vcmask 588800   ;;  %s5371_s12 = sshll.u32 %s3341_s22, 8  ;;  %s2787_s9 = scalar_lea.sflag [#allocation5], %s3341_s22 }
  0x32   : > { %v3381_v11 = vld [vmem:[#allocation2 + $0x8] sm:$0xff]  ;;  %v867_v12 = vrot.slane %v3379_v10, 1  ;;  %v956_v21 = vrot.slane %v3379_v10, 2  ;;  %s4543_s18 = scalar_lea.vmem [#allocation6], %s5371_s12 }
  0x33   : > { %v868_v13 = vrot.slane %v3381_v11, 1  ;;  %v957_v22 = vrot.slane %v3381_v11, 2 }
  0x35   : > { %v869_v14 = vsel %vm866_vm2, %v867_v12, %v868_v13  ;;  %v814_v18 = vld [vmem:[#allocation2 + $0x10] sm:$0x3]  ;;  %v958_v23 = vsel %vm955_vm4, %v956_v21, %v957_v22 }
  0x36   : > { %907 = vrot.lane.b32.xlu0 %v869_v14, %s3206_s19  ;;  %v870_v19 = vrot.slane %v814_v18, 1  ;;  %996 = vrot.lane.b32.xlu1 %v958_v23, %s3207_s15  ;;  %v959_v24 = vrot.slane %v814_v18, 2 }
  0x38   : > { %v871_v20 = vsel %vm866_vm2, %v868_v13, %v870_v19  ;;  %v960_v25 = vsel %vm955_vm4, %v957_v22, %v959_v24 }
  0x39   : > { %2885 = vmatmul.msk.f32.gmra.mxu0 %vm351_vm0, %v317_v5  ;;  %998 = vrot.lane.b32.xlu2 %v960_v25, %s3207_s15  ;;  %v327_v5 = vld [vmem:[%s3347_s16 + $0x58] sm:$0xff] }
  0x3e   : > { %909 = vrot.lane.b32.xlu0 %v871_v20, %s3206_s19 }
  0x41   : > { %2886 = vmatmul.msk.f32.gmra.mxu0 %vm351_vm0, %v318_v6 }
  0x49   : > { %2887 = vmatmul.msk.f32.gmra.mxu0 %vm351_vm0, %v319_v7 }
  0x51   : > { %2888 = vmatmul.msk.f32.gmra.mxu0 %vm351_vm0, %v320_v9 }
  0x59   : > { %2889 = vmatmul.msk.f32.gmra.mxu0 %vm351_vm0, %v321_v15 }
  0x61   : > { %2890 = vmatmul.msk.f32.gmra.mxu0 %vm351_vm0, %v322_v16 }
  0x69   : > { %2891 = vmatmul.msk.f32.gmra.mxu0 %vm351_vm0, %v323_v17 }
  0x71   : > { %2892 = vmatmul.msk.f32.gmra.mxu0 %vm351_vm0, %v324_v26 }
  0x79   : > { %2893 = vmatmul.msk.f32.gmra.mxu0 %vm351_vm0, %v325_v30 }
  0x81   : > { %2894 = vmatmul.msk.f32.gmra.mxu0 %vm351_vm0, %v326_v57  ;;  %v341_v57 = vld [vmem:[%s3347_s16 + $0xc8] sm:$0xff] }
  0x89   : > { %2895 = vmatmul.msk.f32.gmra.mxu0 %vm351_vm0, %v327_v5 }
  0xae   : > { %v465_v28 = vpop.f32.mrf.mxu0 }
  0xaf   : > { %v466_v29 = vadd.f32 %v3408_v27, %v465_v28 }
  0xb1   : > { %v561_v31 = vmax.f32 %v466_v29, 0.0  ;;  %v328_v29 = vld [vmem:[%s3347_s16 + $0x60] sm:$0xff] }
  0xb2   : > { %2896 = vmatmul.msk.f32.gmra.mxu0 %vm351_vm0, %v328_v29 }
  0xb3   : > { %v635_v32 = vrot.slane %v561_v31, 7 }
  0xb5   : > { %v731_v33 = vsel %vm634_vm5, 0.0, %v635_v32 }
  0xb6   : > { %764 = vst.msk [vmem:[#allocation2 + $0x18] sm:$0xff] %vm593_vm1, %v731_v33  ;;  %v468_v34 = vpop.f32.mrf.mxu0 }
  0xb7   : > { %v469_v35 = vadd.f32 %v3408_v27, %v468_v34 }
  0xb9   : > { %v562_v36 = vmax.f32 %v469_v35, 0.0  ;;  %v329_v35 = vld [vmem:[%s3347_s16 + $0x68] sm:$0xff] }
  0xba   : > { %2897 = vmatmul.msk.f32.gmra.mxu0 %vm351_vm0, %v329_v35  ;;  %v308_v35 = vld [vmem:[%s5356_s3 + $0x28] sm:$0xff] }
  0xbb   : > { %v636_v37 = vrot.slane %v562_v36, 7 }
  0xbd   : > { %v637_v38 = vsel %vm634_vm5, %v635_v32, %v636_v37  ;;  %v747_v39 = vsel %vm634_vm5, %v636_v37, 0.0  ;;  %v3418_v40 = vld [vmem:[#allocation2 + $0x18] sm:$0xff] }
  0xbe   : > { %765 = vst.msk [vmem:[#allocation2 + $0x20] sm:$0xff] %vm593_vm1, %v637_v38  ;;  %v471_v41 = vpop.f32.mrf.mxu0  ;;  %1046 = vrot.lane.b32.xlu0 %v3418_v40, %s5362_s21  ;;  %v961_v48 = vrot.slane %v3418_v40, 2  ;;  %v872_v50 = vrot.slane %v3418_v40, 1 }
  0xbf   : > { %766 = vst.msk [vmem:[#allocation2 + $0x28] sm:$0x3] %vm596_vm3, %v747_v39  ;;  %v472_v42 = vadd.f32 %v3408_v27, %v471_v41 }
  0xc1   : > { %v563_v43 = vmax.f32 %v472_v42, 0.0 }
  0xc3   : > { %v638_v44 = vrot.slane %v563_v43, 7 }
  0xc5   : > { %v732_v45 = vsel %vm634_vm5, 0.0, %v638_v44  ;;  %v3426_v46 = vld [vmem:[#allocation2 + $0x20] sm:$0xff] }
  0xc6   : > { %767 = vst.msk [vmem:[#allocation2 + $0x30] sm:$0xff] %vm593_vm1, %v732_v45  ;;  %v474_v47 = vpop.f32.mrf.mxu0  ;;  %1048 = vrot.lane.b32.xlu0 %v3426_v46, %s5362_s21  ;;  %v962_v49 = vrot.slane %v3426_v46, 2  ;;  %v873_v51 = vrot.slane %v3426_v46, 1  ;;  %v817_v56 = vld [vmem:[#allocation2 + $0x28] sm:$0x3] }
  0xc7   : > { %v475_v52 = vadd.f32 %v3408_v27, %v474_v47  ;;  %v964_v59 = vrot.slane %v817_v56, 2  ;;  %v875_v60 = vrot.slane %v817_v56, 1  ;;  %v330_v47 = vld [vmem:[%s3347_s16 + $0x70] sm:$0xff]  ;;  %v331_v56 = vld [vmem:[%s3347_s16 + $0x78] sm:$0xff] }
  0xc8   : > { %v963_v53 = vsel %vm955_vm4, %v961_v48, %v962_v49  ;;  %v874_v54 = vsel %vm866_vm2, %v872_v50, %v873_v51  ;;  %v340_v48 = vld [vmem:[%s3347_s16 + $0xc0] sm:$0xff]  ;;  %2898 = vmatmul.msk.f32.gmra.mxu0 %vm351_vm0, %v330_v47 }
  0xc9   : > { %v564_v55 = vmax.f32 %v475_v52, 0.0  ;;  %1153 = vrot.lane.b32.xlu2 %v963_v53, %s3209_s23  ;;  %911 = vrot.lane.b32.xlu1 %v874_v54, %s3206_s19  ;;  %v965_v1 = vsel %vm955_vm4, %v962_v49, %v964_v59  ;;  %v876_v2 = vsel %vm866_vm2, %v873_v51, %v875_v60  ;;  %v3541_v59 = vpop.permute.xlu2 %998 }
  0xca   : > { %2908 = vmatmul.msk.f32.vlgmr.msra.gmra.mxu1 %vm351_vm0, %v340_v48  ;;  %v306_v48 = vld [vmem:[%s5356_s3 + $0x18] sm:$0xff] }
  0xcb   : > { %v639_v58 = vrot.slane %v564_v55, 7 }
  0xcd   : > { %v640_v61 = vsel %vm634_vm5, %v638_v44, %v639_v58  ;;  %v748_v62 = vsel %vm634_vm5, %v639_v58, 0.0  ;;  %v3452_v3 = vld [vmem:[#allocation2 + $0x30] sm:$0xff] }
  0xce   : > { %768 = vst.msk [vmem:[#allocation2 + $0x38] sm:$0xff] %vm593_vm1, %v640_v61  ;;  %1000 = vrot.lane.b32.xlu0 %v963_v53, %s3207_s15  ;;  %v477_v63 = vpop.f32.mrf.mxu0  ;;  %v877_v7 = vrot.slane %v3452_v3, 1  ;;  %v966_v23 = vrot.slane %v3452_v3, 2  ;;  %v3544_v61 = vpop.permute.xlu0 %907 }
  0xcf   : > { %769 = vst.msk [vmem:[#allocation2 + $0x40] sm:$0x3] %vm596_vm3, %v748_v62  ;;  %v478_v0 = vadd.f32 %v3408_v27, %v477_v63  ;;  %v342_v62 = vld [vmem:[%s3347_s16 + $0xd0] sm:$0xff] }
  0xd0   : > { %2899 = vmatmul.msk.f32.gmra.mxu0 %vm351_vm0, %v331_v56 }
  0xd1   : > { %1155 = vrot.lane.b32.xlu2 %v965_v1, %s3209_s23  ;;  %913 = vrot.lane.b32.xlu1 %v876_v2, %s3206_s19  ;;  %v565_v4 = vmax.f32 %v478_v0, 0.0 }
  0xd2   : > { %2909 = vmatmul.msk.f32.gmra.mxu1 %vm351_vm0, %v341_v57  ;;  %v303_v57 = vld [vmem:[%s5356_s3] sm:$0xff] }
  0xd3   : > { %v641_v6 = vrot.slane %v565_v4, 7 }
  0xd5   : > { %v3457_v8 = vld [vmem:[#allocation2 + $0x38] sm:$0xff]  ;;  %v733_v9 = vsel %vm634_vm5, 0.0, %v641_v6 }
  0xd6   : > { %1203 = vrot.lane.b32.xlu0 %v3452_v3, %s3210_s29  ;;  %v878_v12 = vrot.slane %v3457_v8, 1  ;;  %770 = vst.msk [vmem:[#allocation2 + $0x48] sm:$0xff] %vm593_vm1, %v733_v9  ;;  %v480_v13 = vpop.f32.mrf.mxu0  ;;  %v820_v14 = vld [vmem:[#allocation2 + $0x40] sm:$0x3]  ;;  %v967_v24 = vrot.slane %v3457_v8, 2  ;;  %v3560_v4 = vpop.permute.xlu0 %909 }
  0xd7   : > { %v481_v15 = vadd.f32 %v3408_v27, %v480_v13  ;;  %v880_v18 = vrot.slane %v820_v14, 1  ;;  %v969_v26 = vrot.slane %v820_v14, 2  ;;  %v344_v13 = vld [vmem:[%s3347_s16 + $0xe0] sm:$0xff] }
  0xd8   : > { %v879_v16 = vsel %vm866_vm2, %v877_v7, %v878_v12  ;;  %v968_v25 = vsel %vm955_vm4, %v966_v23, %v967_v24 }
  0xd9   : > { %915 = vrot.lane.b32.xlu2 %v879_v16, %s3206_s19  ;;  %1002 = vrot.lane.b32.xlu1 %v965_v1, %s3207_s15  ;;  %v566_v17 = vmax.f32 %v481_v15, 0.0  ;;  %v881_v22 = vsel %vm866_vm2, %v878_v12, %v880_v18  ;;  %v970_v32 = vsel %vm955_vm4, %v967_v24, %v969_v26  ;;  %v332_v26 = vld [vmem:[%s3347_s16 + $0x80] sm:$0xff] }
  0xda   : > { %2910 = vmatmul.msk.f32.gmra.mxu1 %vm351_vm0, %v342_v62  ;;  %2900 = vmatmul.msk.f32.gmra.mxu0 %vm351_vm0, %v332_v26 }
  0xdb   : > { %v642_v19 = vrot.slane %v566_v17, 7 }
  0xdd   : > { %v643_v20 = vsel %vm634_vm5, %v641_v6, %v642_v19  ;;  %v749_v21 = vsel %vm634_vm5, %v642_v19, 0.0  ;;  %v3499_v36 = vld [vmem:[#allocation2 + $0x48] sm:$0xff] }
  0xde   : > { %1050 = vrot.lane.b32.xlu0 %v3452_v3, %s5362_s21  ;;  %771 = vst.msk [vmem:[#allocation2 + $0x50] sm:$0xff] %vm593_vm1, %v643_v20  ;;  %v483_v28 = vpop.f32.mrf.mxu0  ;;  %v971_v55 = vrot.slane %v3499_v36, 2  ;;  %v882_v60 = vrot.slane %v3499_v36, 1  ;;  %v3579_v20 = vpop.permute.xlu1 %996 }
  0xdf   : > { %772 = vst.msk [vmem:[#allocation2 + $0x58] sm:$0x3] %vm596_vm3, %v749_v21  ;;  %v484_v30 = vadd.f32 %v3408_v27, %v483_v28  ;;  %v345_v28 = vld [vmem:[%s3347_s16 + $0xe8] sm:$0xff] }
  0xe1   : > { %917 = vrot.lane.b32.xlu2 %v881_v22, %s3206_s19  ;;  %1100 = vrot.lane.b32.xlu1 %v874_v54, %s3211_s8  ;;  %v567_v31 = vmax.f32 %v484_v30, 0.0 }
  0xe3   : > { %v644_v33 = vrot.slane %v567_v31, 7  ;;  %v310_v31 = vld [vmem:[%s5356_s3 + $0x38] sm:$0xff] }
  0xe5   : > { %v734_v34 = vsel %vm634_vm5, 0.0, %v644_v33  ;;  %v3512_v44 = vld [vmem:[#allocation2 + $0x50] sm:$0xff] }
  0xe6   : > { %1205 = vrot.lane.b32.xlu0 %v3457_v8, %s3210_s29  ;;  %773 = vst.msk [vmem:[#allocation2 + $0x60] sm:$0xff] %vm593_vm1, %v734_v34  ;;  %v486_v37 = vpop.f32.mrf.mxu0  ;;  %v823_v45 = vld [vmem:[#allocation2 + $0x58] sm:$0x3]  ;;  %v972_v49 = vrot.slane %v3512_v44, 2  ;;  %v883_v51 = vrot.slane %v3512_v44, 1  ;;  %v309_v34 = vld [vmem:[%s5356_s3 + $0x30] sm:$0xff] }
  0xe7   : > { %v487_v38 = vadd.f32 %v3408_v27, %v486_v37  ;;  %v974_v50 = vrot.slane %v823_v45, 2  ;;  %v885_v52 = vrot.slane %v823_v45, 1  ;;  %v346_v45 = vld [vmem:[%s3347_s16 + $0xf0] sm:$0xff] }
  0xe8   : > { %v973_v58 = vsel %vm955_vm4, %v971_v55, %v972_v49  ;;  %v884_v63 = vsel %vm866_vm2, %v882_v60, %v883_v51 }
  0xe9   : > { %1004 = vrot.lane.b32.xlu2 %v968_v25, %s3207_s15  ;;  %1102 = vrot.lane.b32.xlu1 %v876_v2, %s3211_s8  ;;  %v568_v39 = vmax.f32 %v487_v38, 0.0  ;;  %v975_v53 = vsel %vm955_vm4, %v972_v49, %v974_v50  ;;  %v3526_v54 = vsel %vm866_vm2, %v883_v51, %v885_v52  ;;  %v343_v2 = vld [vmem:[%s3347_s16 + $0xd8] sm:$0xff]  ;;  %v305_v52 = vld [vmem:[%s5356_s3 + $0x10] sm:$0xff] }
  0xea   : > { %2911 = vmatmul.msk.f32.gmra.mxu1 %vm351_vm0, %v343_v2 }
  0xeb   : > { %v645_v41 = vrot.slane %v568_v39, 7 }
  0xed   : > { %v646_v42 = vsel %vm634_vm5, %v644_v33, %v645_v41  ;;  %v750_v43 = vsel %vm634_vm5, %v645_v41, 0.0  ;;  %v3554_v1 = vld [vmem:[#allocation2 + $0x60] sm:$0xff] }
  0xee   : > { %1052 = vrot.lane.b32.xlu0 %v3457_v8, %s5362_s21  ;;  %774 = vst.msk [vmem:[#allocation2 + $0x68] sm:$0xff] %vm593_vm1, %v646_v42  ;;  %v489_v5 = vpop.f32.mrf.mxu0  ;;  %v976_v39 = vrot.slane %v3554_v1, 2  ;;  %v307_v42 = vld [vmem:[%s5356_s3 + $0x20] sm:$0xff] }
  0xef   : > { %775 = vst.msk [vmem:[#allocation2 + $0x70] sm:$0x3] %vm596_vm3, %v750_v43  ;;  %v490_v6 = vadd.f32 %v3408_v27, %v489_v5  ;;  %v333_v43 = vld [vmem:[%s3347_s16 + $0x88] sm:$0xff] }
  0xf0   : > { %2901 = vmatmul.msk.f32.gmra.mxu0 %vm351_vm0, %v333_v43 }
  0xf1   : > { %1310 = vrot.lane.b32.xlu2 %v968_v25, %s3212_s17  ;;  %1257 = vrot.lane.b32.xlu1 %v879_v16, %s3213_s11  ;;  %v569_v7 = vmax.f32 %v490_v6, 0.0 }
  0xf2   : > { %2912 = vmatmul.msk.f32.gmra.mxu1 %vm351_vm0, %v344_v13 }
  0xf3   : > { %v647_v12 = vrot.slane %v569_v7, 7 }
  0xf5   : > { %v735_v14 = vsel %vm634_vm5, 0.0, %v647_v12  ;;  %v825_v18 = vld [vmem:[#allocation2 + $0x68] sm:$0xff] }
  0xf6   : > { %1006 = vrot.lane.b32.xlu0 %v970_v32, %s3207_s15  ;;  %776 = vst.msk [vmem:[#allocation2 + $0x78] sm:$0xff] %vm593_vm1, %v735_v14  ;;  %v492_v15 = vpop.f32.mrf.mxu0  ;;  %v888_v23 = vrot.slane %v825_v18, 1  ;;  %v977_v41 = vrot.slane %v825_v18, 2  ;;  %v826_v47 = vld [vmem:[#allocation2 + $0x70] sm:$0x3] }
  0xf7   : > { %v493_v17 = vadd.f32 %v3408_v27, %v492_v15  ;;  %v890_v51 = vrot.slane %v826_v47, 1  ;;  %v979_v56 = vrot.slane %v826_v47, 2 }
  0xf8   : > { %v978_v50 = vsel %vm955_vm4, %v976_v39, %v977_v41 }
  0xf9   : > { %1312 = vrot.lane.b32.xlu2 %v970_v32, %s3212_s17  ;;  %1259 = vrot.lane.b32.xlu1 %v881_v22, %s3213_s11  ;;  %v570_v19 = vmax.f32 %v493_v17, 0.0  ;;  %v980_v62 = vsel %vm955_vm4, %v977_v41, %v979_v56  ;;  %v1359_v41 = vsel %vm593_vm1, %v3381_v11, %v3560_v4 }
  0xfa   : > { %2913 = vmatmul.msk.f32.gmra.mxu1 %vm351_vm0, %v345_v28 }
  0xfb   : > { %v648_v24 = vrot.slane %v570_v19, 7 }
  0xfd   : > { %v649_v29 = vsel %vm634_vm5, %v647_v12, %v648_v24  ;;  %v751_v30 = vsel %vm634_vm5, %v648_v24, 0.0  ;;  %v1358_v24 = vsel %vm593_vm1, %v3379_v10, %v3544_v61 }
  0xfe   : > { %1207 = vrot.lane.b32.xlu0 %v3499_v36, %s3210_s29  ;;  %777 = vst.msk [vmem:[#allocation2 + $0x80] sm:$0xff] %vm593_vm1, %v649_v29 }
  0xff   : > { %778 = vst.msk [vmem:[#allocation2 + $0x88] sm:$0x3] %vm596_vm3, %v751_v30  ;;  %v1375_v30 = vsel %vm1374_vm6, %v1358_v24, %v3579_v20 }
 0x101   : > { %1157 = vrot.lane.b32.xlu2 %v968_v25, %s3209_s23  ;;  %1104 = vrot.lane.b32.xlu1 %v879_v16, %s3211_s8  ;;  %v311_v25 = vld [vmem:[%s5356_s3 + $0x40] sm:$0xff] }
 0x102   : > { %1551 = vmatpush.msrb.mxu1 %v311_v25 }
 0x103   : > { %2914 = vmatmul.msk.f32.gmra.mxu1 %vm351_vm0, %v346_v45  ;;  %v1376_v45 = vsel %vm1374_vm6, %v1359_v41, %v3541_v59 }
 0x104   : > { %1552 = vmatpush.msrb.mxu1 %v310_v31 }
 0x105   : > { %v3680_v31 = vld [vmem:[#allocation2 + $0x80] sm:$0xff] }
 0x106   : > { %1054 = vrot.lane.b32.xlu0 %v3499_v36, %s5362_s21  ;;  %1553 = vmatpush.msrb.mxu1 %v309_v34  ;;  %v334_v34 = vld [vmem:[%s3347_s16 + $0x90] sm:$0xff]  ;;  %v982_v39 = vrot.slane %v3680_v31, 2  ;;  %v829_v43 = vld [vmem:[#allocation2 + $0x88] sm:$0x3] }
 0x107   : > { %2902 = vmatmul.msk.f32.gmra.mxu0 %vm351_vm0, %v334_v34 }
 0x108   : > { %1554 = vmatpush.msrb.mxu1 %v308_v35 }
 0x109   : > { %1159 = vrot.lane.b32.xlu2 %v970_v32, %s3209_s23  ;;  %1106 = vrot.lane.b32.xlu1 %v881_v22, %s3211_s8  ;;  %v887_v22 = vrot.slane %v3554_v1, 1 }
 0x10a   : > { %1555 = vmatpush.msrb.mxu1 %v307_v42 }
 0x10b   : > { %v889_v33 = vsel %vm866_vm2, %v887_v22, %v888_v23  ;;  %v3663_v22 = vld [vmem:[#allocation2 + $0x78] sm:$0xff] }
 0x10c   : > { %1556 = vmatpush.msrb.mxu1 %v306_v48  ;;  %v981_v35 = vrot.slane %v3663_v22, 2 }
 0x10e   : > { %1209 = vrot.lane.b32.xlu0 %v3512_v44, %s3210_s29  ;;  %1557 = vmatpush.msrb.mxu1 %v305_v52  ;;  %v3707_v4 = vsel %vm955_vm4, %v981_v35, %v982_v39  ;;  %v895_v52 = vrot.slane %v829_v43, 1 }
 0x111   : > { %1010 = vrot.lane.b32.xlu2 %v975_v53, %s3207_s15  ;;  %921 = vrot.lane.b32.xlu1 %v3526_v54, %s3206_s19 }
 0x116   : > { %1056 = vrot.lane.b32.xlu0 %v3512_v44, %s5362_s21 }
 0x119   : > { %1314 = vrot.lane.b32.xlu2 %v973_v58, %s3212_s17  ;;  %1008 = vrot.lane.b32.xlu1 %v973_v58, %s3207_s15 }
 0x11e   : > { %919 = vrot.lane.b32.xlu0 %v884_v63, %s3206_s19 }
 0x121   : > { %1316 = vrot.lane.b32.xlu2 %v975_v53, %s3212_s17  ;;  %1261 = vrot.lane.b32.xlu1 %v884_v63, %s3213_s11 }
 0x123   : > { %v3552_v0 = vpop.permute.xlu2 %1153 }
 0x126   : > { %1211 = vrot.lane.b32.xlu0 %v3554_v1, %s3210_s29 }
 0x129   : > { %1161 = vrot.lane.b32.xlu2 %v973_v58, %s3209_s23  ;;  %1263 = vrot.lane.b32.xlu1 %v3526_v54, %s3213_s11  ;;  %v891_v58 = vsel %vm866_vm2, %v888_v23, %v890_v51  ;;  %v893_v51 = vrot.slane %v3680_v31, 1 }
 0x12b   : > { %v3566_v9 = vpop.permute.xlu2 %1155 }
 0x12e   : > { %1058 = vrot.lane.b32.xlu0 %v3554_v1, %s5362_s21 }
 0x130   : > { %v3574_v16 = vpop.permute.xlu0 %1046 }
 0x131   : > { %1163 = vrot.lane.b32.xlu2 %v975_v53, %s3209_s23  ;;  %1108 = vrot.lane.b32.xlu1 %v884_v63, %s3211_s8  ;;  %v304_v53 = vld [vmem:[%s5356_s3 + $0x8] sm:$0xff]  ;;  %v495_v63 = vpop.f32.mrf.mxu0 }
 0x132   : > { %1558 = vmatpush.msrb.mxu1 %v304_v53  ;;  %v496_v2 = vadd.f32 %v3408_v27, %v495_v63  ;;  %v335_v53 = vld [vmem:[%s3347_s16 + $0x98] sm:$0xff] }
 0x133   : > { %v3581_v21 = vpop.permute.xlu2 %915  ;;  %2903 = vmatmul.msk.f32.gmra.mxu0 %vm351_vm0, %v335_v53 }
 0x134   : > { %1559 = vmatpush.msrb.mxu1 %v303_v57  ;;  %v571_v7 = vmax.f32 %v496_v2, 0.0 }
 0x136   : > { %1213 = vrot.lane.b32.xlu0 %v825_v18, %s3210_s29  ;;  %v650_v12 = vrot.slane %v571_v7, 7 }
 0x138   : > { %v3598_v32 = vpop.permute.xlu0 %1048  ;;  %v736_v14 = vsel %vm634_vm5, 0.0, %v650_v12 }
 0x139   : > { %923 = vrot.lane.b32.xlu2 %v889_v33, %s3206_s19  ;;  %1110 = vrot.lane.b32.xlu1 %v3526_v54, %s3211_s8  ;;  %779 = vst.msk [vmem:[#allocation2 + $0x90] sm:$0xff] %vm593_vm1, %v736_v14  ;;  %v498_v15 = vpop.f32.mrf.mxu0  ;;  %v1393_v48 = vsel %vm1391_vm7, %v1376_v45, %v3598_v32  ;;  %v984_v14 = vrot.slane %v829_v43, 2 }
 0x13a   : > { %v499_v17 = vadd.f32 %v3408_v27, %v498_v15 }
 0x13b   : > { %v3611_v37 = vpop.permute.xlu2 %917  ;;  %v3613_v38 = vpop.permute.xlu1 %911  ;;  %v985_v24 = vsel %vm955_vm4, %v982_v39, %v984_v14 }
 0x13c   : > { %v572_v23 = vmax.f32 %v499_v17, 0.0 }
 0x13e   : > { %1060 = vrot.lane.b32.xlu0 %v825_v18, %s5362_s21  ;;  %v651_v25 = vrot.slane %v572_v23, 7 }
 0x140   : > { %v3627_v49 = vpop.permute.xlu0 %1000  ;;  %v652_v28 = vsel %vm634_vm5, %v650_v12, %v651_v25  ;;  %v752_v29 = vsel %vm634_vm5, %v651_v25, 0.0  ;;  %v3759_v34 = vld [vmem:[#allocation2 + $0x90] sm:$0xff] }
 0x141   : > { %1318 = vrot.lane.b32.xlu2 %v978_v50, %s3212_s17  ;;  %1265 = vrot.lane.b32.xlu1 %v889_v33, %s3213_s11  ;;  %780 = vst.msk [vmem:[#allocation2 + $0x98] sm:$0xff] %vm593_vm1, %v652_v28  ;;  %v501_v15 = vpop.f32.mrf.mxu0  ;;  %v897_v41 = vrot.slane %v3759_v34, 1  ;;  %v986_v53 = vrot.slane %v3759_v34, 2 }
 0x142   : > { %781 = vst.msk [vmem:[#allocation2 + $0xa0] sm:$0x3] %vm596_vm3, %v752_v29  ;;  %v502_v17 = vadd.f32 %v3408_v27, %v501_v15 }
 0x143   : > { %v3638_v54 = vpop.permute.xlu2 %1004  ;;  %v3640_v55 = vpop.permute.xlu1 %913 }
 0x144   : > { %v573_v23 = vmax.f32 %v502_v17, 0.0 }
 0x146   : > { %925 = vrot.lane.b32.xlu0 %v891_v58, %s3206_s19  ;;  %v653_v25 = vrot.slane %v573_v23, 7 }
 0x148   : > { %v1204_v60 = vpop.permute.xlu0 %1203  ;;  %v737_v28 = vsel %vm634_vm5, 0.0, %v653_v25 }
 0x149   : > { %1320 = vrot.lane.b32.xlu2 %v980_v62, %s3212_s17  ;;  %1267 = vrot.lane.b32.xlu1 %v891_v58, %s3213_s11  ;;  %782 = vst.msk [vmem:[#allocation2 + $0xa8] sm:$0xff] %vm593_vm1, %v737_v28  ;;  %v504_v29 = vpop.f32.mrf.mxu0 }
 0x14b   : > { %v1311_v5 = vpop.permute.xlu2 %1310  ;;  %v3651_v6 = vpop.permute.xlu1 %1002 }
 0x14e   : > { %1012 = vrot.lane.b32.xlu0 %v978_v50, %s3207_s15 }
 0x150   : > { %v3654_v13 = vpop.permute.xlu0 %1050 }
 0x151   : > { %1165 = vrot.lane.b32.xlu2 %v978_v50, %s3209_s23  ;;  %1112 = vrot.lane.b32.xlu1 %v889_v33, %s3211_s8  ;;  %v1392_v33 = vsel %vm1391_vm7, %v1375_v30, %v3574_v16  ;;  %v505_v30 = vadd.f32 %v3408_v27, %v504_v29 }
 0x153   : > { %v3661_v18 = vpop.permute.xlu2 %1312  ;;  %v1101_v19 = vpop.permute.xlu1 %1100  ;;  %v574_v35 = vmax.f32 %v505_v30, 0.0 }
 0x154   : > { %v1408_v20 = vsel %vm351_vm0, %v1392_v33, %v1101_v19 }
 0x155   : > { %v1425_v16 = vsel %vm1424_vm8, %v1408_v20, %v3552_v0  ;;  %v3761_v20 = vld [vmem:[#allocation2 + $0x98] sm:$0xff]  ;;  %v654_v39 = vrot.slane %v574_v35, 7 }
 0x156   : > { %1215 = vrot.lane.b32.xlu0 %v3663_v22, %s3210_s29  ;;  %v1442_v11 = vsel %vm1441_vm9, %v1425_v16, %v1204_v60  ;;  %v898_v16 = vrot.slane %v3761_v20, 1 }
 0x157   : > { %v655_v45 = vsel %vm634_vm5, %v653_v25, %v654_v39 }
 0x158   : > { %v1206_v26 = vpop.permute.xlu0 %1205  ;;  %783 = vst.msk [vmem:[#allocation2 + $0xb0] sm:$0xff] %vm593_vm1, %v655_v45 }
 0x159   : > { %1167 = vrot.lane.b32.xlu2 %v980_v62, %s3209_s23  ;;  %1114 = vrot.lane.b32.xlu1 %v891_v58, %s3211_s8  ;;  %v896_v58 = vsel %vm866_vm2, %v893_v51, %v895_v52 }
 0x15b   : > { %v3678_v10 = vpop.permute.xlu2 %1157  ;;  %v1103_v61 = vpop.permute.xlu1 %1102 }
 0x15c   : > { %v1409_v59 = vsel %vm351_vm0, %v1393_v48, %v1103_v61 }
 0x15d   : > { %v1426_v32 = vsel %vm1424_vm8, %v1409_v59, %v3566_v9  ;;  %v987_v59 = vrot.slane %v3761_v20, 2 }
 0x15e   : > { %1217 = vrot.lane.b32.xlu0 %v3680_v31, %s3210_s29 }
 0x160   : > { %v3696_v42 = vpop.permute.xlu0 %1052 }
 0x161   : > { %1064 = vrot.lane.b32.xlu2 %v3680_v31, %s5370_s10  ;;  %1014 = vrot.lane.b32.xlu1 %v980_v62, %s3207_s15  ;;  %v1443_v62 = vsel %vm1441_vm9, %v1426_v32, %v1206_v26  ;;  %v537_v32 = vpop.f32.mrf.mxu1 }
 0x163   : > { %v3703_v47 = vpop.permute.xlu2 %1159  ;;  %v1258_v0 = vpop.permute.xlu1 %1257 }
 0x164   : > { %v1459_v50 = vsel %vm1458_vm10, %v1442_v11, %v1258_v0  ;;  %v753_v11 = vsel %vm634_vm5, %v654_v39, 0.0 }
 0x165   : > { %v1476_v56 = vsel %vm1475_vm11, %v1459_v50, %v1311_v5  ;;  %v892_v5 = vrot.slane %v3663_v22, 1  ;;  %784 = vst.msk [vmem:[#allocation2 + $0xb8] sm:$0x3] %vm596_vm3, %v753_v11  ;;  %v3780_v50 = vsel %vm866_vm2, %v897_v41, %v898_v16 }
 0x166   : > { %1169 = vrot.lane.b32.xlu0 %v3707_v4, %s3209_s23  ;;  %2916 = vmatmul.msk.f32.vlgmr.msrb.gmra.mxu1 %vm1495_vm12, %v1476_v56  ;;  %v507_v56 = vpop.f32.mrf.mxu0 }
 0x167   : > { %v894_v12 = vsel %vm866_vm2, %v892_v5, %v893_v51  ;;  %v336_v51 = vld [vmem:[%s3347_s16 + $0xa0] sm:$0xff] }
 0x168   : > { %v3722_v57 = vpop.permute.xlu0 %1006  ;;  %2904 = vmatmul.msk.f32.gmra.mxu0 %vm351_vm0, %v336_v51 }
 0x169   : > { %929 = vrot.lane.b32.xlu2 %v896_v58, %s3206_s19  ;;  %1062 = vrot.lane.b32.xlu1 %v3663_v22, %s5370_s10  ;;  %v540_v30 = vpop.f32.mrf.mxu1 }
 0x16a   : > { %v541_v11 = vadd.f32 %v3408_v27, %v540_v30  ;;  %v3893_v30 = vld [vmem:[#allocation2 + $0xb0] sm:$0xff] }
 0x16b   : > { %v3728_v60 = vpop.permute.xlu2 %1010  ;;  %v1260_v63 = vpop.permute.xlu1 %1259 }
 0x16c   : > { %v1460_v2 = vsel %vm1458_vm10, %v1443_v62, %v1260_v63  ;;  %v508_v62 = vadd.f32 %v3408_v27, %v507_v56  ;;  %v538_v63 = vadd.f32 %v3408_v27, %v537_v32  ;;  %v586_v32 = vmax.f32 %v541_v11, 0.0 }
 0x16d   : > { %v1477_v9 = vsel %vm1475_vm11, %v1460_v2, %v3661_v18 }
 0x16e   : > { %1118 = vrot.lane.b32.xlu0 %v896_v58, %s3211_s8  ;;  %2917 = vmatmul.msk.f32.gmra.mxu1 %vm1495_vm12, %v1477_v9  ;;  %v585_v14 = vmax.f32 %v538_v63, 0.0  ;;  %v510_v29 = vpop.f32.mrf.mxu0 }
 0x16f   : > { %v511_v45 = vadd.f32 %v3408_v27, %v510_v29 }
 0x170   : > { %v3737_v7 = vpop.permute.xlu0 %1207  ;;  %v671_v23 = vrot.slane %v585_v14, 7 }
 0x171   : > { %1322 = vrot.lane.b32.xlu2 %v3707_v4, %s3212_s17  ;;  %927 = vrot.lane.b32.xlu1 %v894_v12, %s3206_s19 }
 0x172   : > { %v743_v25 = vsel %vm634_vm5, 0.0, %v671_v23 }
 0x173   : > { %v3744_v19 = vpop.permute.xlu2 %1314  ;;  %v1105_v18 = vpop.permute.xlu1 %1104  ;;  %800 = vst.msk [vmem:[#allocation2 + $0x138] sm:$0xff] %vm593_vm1, %v743_v25 }
 0x176   : > { %1018 = vrot.lane.b32.xlu0 %v985_v24, %s3207_s15 }
 0x178   : > { %v3748_v26 = vpop.permute.xlu0 %1054 }
 0x179   : > { %1324 = vrot.lane.b32.xlu2 %v985_v24, %s3212_s17  ;;  %1269 = vrot.lane.b32.xlu1 %v894_v12, %s3213_s11 }
 0x17b   : > { %v3755_v61 = vpop.permute.xlu2 %1316  ;;  %v3757_v33 = vpop.permute.xlu1 %1106 }
 0x17e   : > { %1066 = vrot.lane.b32.xlu0 %v3759_v34, %s5370_s10 }
 0x180   : > { %v3767_v43 = vpop.permute.xlu0 %1209 }
 0x181   : > { %1116 = vrot.lane.b32.xlu2 %v894_v12, %s3211_s8  ;;  %1271 = vrot.lane.b32.xlu1 %v896_v58, %s3213_s11  ;;  %v1360_v58 = vsel %vm593_vm1, %v3418_v40, %v3613_v38  ;;  %v575_v12 = vmax.f32 %v508_v62, 0.0  ;;  %v3810_v40 = vsel %vm955_vm4, %v986_v53, %v987_v59  ;;  %v337_v38 = vld [vmem:[%s3347_s16 + $0xa8] sm:$0xff]  ;;  %v672_v62 = vrot.slane %v586_v32, 7 }
 0x182   : > { %2905 = vmatmul.msk.f32.gmra.mxu0 %vm351_vm0, %v337_v38 }
 0x183   : > { %v3775_v0 = vpop.permute.xlu2 %1161  ;;  %v3777_v48 = vpop.permute.xlu1 %921  ;;  %v656_v17 = vrot.slane %v575_v12, 7 }
 0x184   : > { %v543_v12 = vpop.f32.mrf.mxu1 }
 0x186   : > { %931 = vrot.lane.b32.xlu0 %v3780_v50, %s3206_s19 }
 0x188   : > { %v3786_v52 = vpop.permute.xlu0 %1056 }
 0x189   : > { %1016 = vrot.lane.b32.xlu2 %v3707_v4, %s3207_s15  ;;  %1171 = vrot.lane.b32.xlu1 %v985_v24, %s3209_s23  ;;  %v1377_v4 = vsel %vm1374_vm6, %v1360_v58, %v3627_v49  ;;  %v832_v49 = vld [vmem:[#allocation2 + $0xa0] sm:$0x3] }
 0x18a   : > { %v1394_v9 = vsel %vm1391_vm7, %v1377_v4, %v3654_v13  ;;  %v900_v28 = vrot.slane %v832_v49, 1  ;;  %v673_v4 = vsel %vm634_vm5, %v671_v23, %v672_v62 }
 0x18b   : > { %v3800_v2 = vpop.permute.xlu2 %1163  ;;  %v3802_v5 = vpop.permute.xlu1 %1008  ;;  %v1410_v15 = vsel %vm351_vm0, %v1394_v9, %v1105_v18  ;;  %v738_v18 = vsel %vm634_vm5, 0.0, %v656_v17  ;;  %v759_v9 = vsel %vm634_vm5, %v672_v62, 0.0  ;;  %801 = vst.msk [vmem:[#allocation2 + $0x140] sm:$0xff] %vm593_vm1, %v673_v4 }
 0x18c   : > { %v1427_v13 = vsel %vm1424_vm8, %v1410_v15, %v3678_v10  ;;  %785 = vst.msk [vmem:[#allocation2 + $0xc0] sm:$0xff] %vm593_vm1, %v738_v18  ;;  %v1361_v10 = vsel %vm593_vm1, %v3426_v46, %v3640_v55  ;;  %v901_v56 = vsel %vm866_vm2, %v898_v16, %v900_v28  ;;  %v576_v55 = vmax.f32 %v511_v45, 0.0  ;;  %v3890_v28 = vld [vmem:[#allocation2 + $0xa8] sm:$0xff] }
 0x18d   : > { %v1444_v39 = vsel %vm1441_vm9, %v1427_v13, %v3737_v7  ;;  %v1378_v51 = vsel %vm1374_vm6, %v1361_v10, %v3651_v6  ;;  %802 = vst.msk [vmem:[#allocation2 + $0x148] sm:$0x3] %vm596_vm3, %v759_v9  ;;  %v835_v10 = vld [vmem:[#allocation2 + $0xb8] sm:$0x3]  ;;  %v902_v32 = vrot.slane %v3890_v28, 1  ;;  %v992_v9 = vrot.slane %v3893_v30, 2 }
 0x18e   : > { %1326 = vrot.lane.b32.xlu0 %v3810_v40, %s3212_s17  ;;  %v1395_v7 = vsel %vm1391_vm7, %v1378_v51, %v3696_v42  ;;  %v657_v6 = vrot.slane %v576_v55, 7  ;;  %v905_v45 = vrot.slane %v835_v10, 1  ;;  %v1362_v55 = vsel %vm593_vm1, %v3452_v3, %v3581_v21 }
 0x18f   : > { %v1411_v58 = vsel %vm351_vm0, %v1395_v7, %v3757_v33 }
 0x190   : > { %v3818_v24 = vpop.permute.xlu0 %919  ;;  %v658_v42 = vsel %vm634_vm5, %v656_v17, %v657_v6  ;;  %v754_v16 = vsel %vm634_vm5, %v657_v6, 0.0  ;;  %v1428_v33 = vsel %vm1424_vm8, %v1411_v58, %v3703_v47  ;;  %v1379_v58 = vsel %vm1374_vm6, %v1362_v55, %v3638_v54 }
 0x191   : > { %1221 = vrot.lane.b32.xlu2 %v3761_v20, %s3210_s29  ;;  %1219 = vrot.lane.b32.xlu1 %v3759_v34, %s3210_s29  ;;  %786 = vst.msk [vmem:[#allocation2 + $0xc8] sm:$0xff] %vm593_vm1, %v658_v42  ;;  %v1445_v14 = vsel %vm1441_vm9, %v1428_v33, %v3767_v43  ;;  %v1396_v3 = vsel %vm1391_vm7, %v1379_v58, %v3748_v26 }
 0x192   : > { %787 = vst.msk [vmem:[#allocation2 + $0xd0] sm:$0x3] %vm596_vm3, %v754_v16 }
 0x193   : > { %v3831_v35 = vpop.permute.xlu2 %923  ;;  %v1262_v41 = vpop.permute.xlu1 %1261 }
 0x194   : > { %v1461_v53 = vsel %vm1458_vm10, %v1444_v39, %v1262_v41  ;;  %v903_v41 = vrot.slane %v3893_v30, 1 }
 0x195   : > { %v1478_v46 = vsel %vm1475_vm11, %v1461_v53, %v3744_v19  ;;  %v989_v19 = vrot.slane %v832_v49, 2  ;;  %v544_v49 = vadd.f32 %v3408_v27, %v543_v12  ;;  %v994_v12 = vrot.slane %v835_v10, 2 }
 0x196   : > { %1275 = vrot.lane.b32.xlu0 %v901_v56, %s3213_s11  ;;  %2918 = vmatmul.msk.f32.gmra.mxu1 %vm1495_vm12, %v1478_v46  ;;  %v3913_v62 = vsel %vm866_vm2, %v903_v41, %v905_v45  ;;  %v3923_v54 = vsel %vm866_vm2, %v902_v32, %v903_v41 }
 0x197   : > { %v3873_v47 = vsel %vm955_vm4, %v987_v59, %v989_v19  ;;  %v587_v43 = vmax.f32 %v544_v49, 0.0 }
 0x198   : > { %v3849_v63 = vpop.permute.xlu0 %1211  ;;  %v3982_v58 = vld [vmem:[#allocation2 + $0xc8] sm:$0xff] }
 0x199   : > { %1273 = vrot.lane.b32.xlu2 %v3780_v50, %s3213_s11  ;;  %1068 = vrot.lane.b32.xlu1 %v3761_v20, %s5370_s10  ;;  %v674_v13 = vrot.slane %v587_v43, 7  ;;  %v3949_v43 = vsel %vm955_vm4, %v992_v9, %v994_v12 }
 0x19b   : > { %v3864_v15 = vpop.permute.xlu2 %1318  ;;  %v1264_v38 = vpop.permute.xlu1 %1263  ;;  %v744_v20 = vsel %vm634_vm5, 0.0, %v674_v13 }
 0x19c   : > { %v1462_v17 = vsel %vm1458_vm10, %v1445_v14, %v1264_v38  ;;  %803 = vst.msk [vmem:[#allocation2 + $0x150] sm:$0xff] %vm593_vm1, %v744_v20  ;;  %v1363_v14 = vsel %vm593_vm1, %v3457_v8, %v3611_v37  ;;  %v991_v8 = vrot.slane %v3890_v28, 2  ;;  %v513_v37 = vpop.f32.mrf.mxu0 }
 0x19d   : > { %v1479_v23 = vsel %vm1475_vm11, %v1462_v17, %v3755_v61  ;;  %v546_v61 = vpop.f32.mrf.mxu1 }
 0x19e   : > { %1175 = vrot.lane.b32.xlu0 %v3873_v47, %s3209_s23  ;;  %2919 = vmatmul.msk.f32.gmra.mxu1 %vm1495_vm12, %v1479_v23  ;;  %v547_v29 = vadd.f32 %v3408_v27, %v546_v61 }
 0x1a0   : > { %v3881_v18 = vpop.permute.xlu0 %1058  ;;  %v588_v39 = vmax.f32 %v547_v29, 0.0 }
 0x1a1   : > { %1173 = vrot.lane.b32.xlu2 %v3810_v40, %s3209_s23  ;;  %933 = vrot.lane.b32.xlu1 %v901_v56, %s3206_s19 }
 0x1a2   : > { %v675_v11 = vrot.slane %v588_v39, 7  ;;  %v3965_v39 = vsel %vm955_vm4, %v991_v8, %v992_v9 }
 0x1a3   : > { %v3888_v59 = vpop.permute.xlu2 %1320  ;;  %v1109_v25 = vpop.permute.xlu1 %1108 }
 0x1a4   : > { %v676_v53 = vsel %vm634_vm5, %v674_v13, %v675_v11  ;;  %v760_v46 = vsel %vm634_vm5, %v675_v11, 0.0  ;;  %v1412_v21 = vsel %vm351_vm0, %v1396_v3, %v1109_v25  ;;  %v3991_v3 = vld [vmem:[%s5355_s2] ss:$0 sm:$0xff] }
 0x1a5   : > { %804 = vst.msk [vmem:[#allocation2 + $0x158] sm:$0xff] %vm593_vm1, %v676_v53  ;;  %v549_v7 = vpop.f32.mrf.mxu1  ;;  %v1429_v4 = vsel %vm1424_vm8, %v1412_v21, %v3775_v0  ;;  %v1380_v0 = vsel %vm1374_vm6, %v1363_v14, %v3722_v57 }
 0x1a6   : > { %1223 = vrot.lane.b32.xlu0 %v3890_v28, %s3210_s29  ;;  %805 = vst.msk [vmem:[#allocation2 + $0x160] sm:$0x3] %vm596_vm3, %v760_v46  ;;  %v550_v19 = vadd.f32 %v3408_v27, %v549_v7  ;;  %v1446_v49 = vsel %vm1441_vm9, %v1429_v4, %v3849_v63  ;;  %v514_v63 = vadd.f32 %v3408_v27, %v513_v37  ;;  %v3980_v7 = vld [vmem:[#allocation2 + $0xc0] sm:$0xff] }
 0x1a7   : > { %v312_v37 = vld [vmem:[%s5358_s5] sm:$0xff] }
 0x1a8   : > { %v1214_v51 = vpop.permute.xlu0 %1213  ;;  %v589_v42 = vmax.f32 %v550_v19, 0.0  ;;  %1707 = vmatpush.msra.mxu2 %v312_v37  ;;  %3027 = vmatpush.msrb.mxu3 %v312_v37 }
 0x1a9   : > { %1122 = vrot.lane.b32.xlu2 %v901_v56, %s3211_s8  ;;  %1328 = vrot.lane.b32.xlu1 %v3873_v47, %s3212_s17 }
 0x1aa   : > { %v677_v16 = vrot.slane %v589_v42, 7  ;;  %2687 = vmatpush.msrb.mxu2 %v312_v37 }
 0x1ab   : > { %v3910_v56 = vpop.permute.xlu2 %1165  ;;  %v1111_v6 = vpop.permute.xlu1 %1110 }
 0x1ac   : > { %v745_v26 = vsel %vm634_vm5, 0.0, %v677_v16 }
 0x1ad   : > { %806 = vst.msk [vmem:[#allocation2 + $0x168] sm:$0xff] %vm593_vm1, %v745_v26  ;;  %v552_v13 = vpop.f32.mrf.mxu1 }
 0x1ae   : > { %937 = vrot.lane.b32.xlu0 %v3913_v62, %s3206_s19  ;;  %v553_v61 = vadd.f32 %v3408_v27, %v552_v13 }
 0x1b0   : > { %v3927_v33 = vpop.permute.xlu0 %1060  ;;  %v590_v25 = vmax.f32 %v553_v61, 0.0 }
 0x1b1   : > { %935 = vrot.lane.b32.xlu2 %v3923_v54, %s3206_s19  ;;  %1120 = vrot.lane.b32.xlu1 %v3780_v50, %s3211_s8  ;;  %v1397_v50 = vsel %vm1391_vm7, %v1380_v0, %v3786_v52  ;;  %v577_v52 = vmax.f32 %v514_v63, 0.0  ;;  %v339_v0 = vld [vmem:[%s3347_s16 + $0xb8] sm:$0xff] }
 0x1b2   : > { %v1413_v57 = vsel %vm351_vm0, %v1397_v50, %v1111_v6  ;;  %v678_v41 = vrot.slane %v590_v25, 7  ;;  %v516_v6 = vpop.f32.mrf.mxu0  ;;  %v4057_v25 = vrot.slane %v3982_v58, 2 }
 0x1b3   : > { %v3941_v38 = vpop.permute.xlu2 %1167  ;;  %v1266_v17 = vpop.permute.xlu1 %1265  ;;  %v1430_v29 = vsel %vm1424_vm8, %v1413_v57, %v3800_v2  ;;  %v659_v27 = vrot.slane %v577_v52, 7  ;;  %v517_v21 = vadd.f32 %v3991_v3, %v516_v6 }
 0x1b4   : > { %v1463_v23 = vsel %vm1458_vm10, %v1446_v49, %v1266_v17  ;;  %v1447_v2 = vsel %vm1441_vm9, %v1430_v29, %v1214_v51  ;;  %v679_v46 = vsel %vm634_vm5, %v677_v16, %v678_v41  ;;  %v761_v55 = vsel %vm634_vm5, %v678_v41, 0.0 }
 0x1b5   : > { %v1480_v20 = vsel %vm1475_vm11, %v1463_v23, %v3864_v15  ;;  %v338_v15 = vld [vmem:[%s3347_s16 + $0xb0] sm:$0xff]  ;;  %v739_v53 = vsel %vm634_vm5, 0.0, %v659_v27  ;;  %v555_v19 = vpop.f32.mrf.mxu1  ;;  %807 = vst.msk [vmem:[#allocation2 + $0x170] sm:$0xff] %vm593_vm1, %v679_v46  ;;  %v4001_v16 = vrot.slane %v3982_v58, 1  ;;  %v578_v4 = vmax.f32 %v517_v21, 0.0 }
 0x1b6   : > { %1332 = vrot.lane.b32.xlu0 %v3949_v43, %s3212_s17  ;;  %2920 = vmatmul.msk.f32.gmra.mxu1 %vm1495_vm12, %v1480_v20  ;;  %788 = vst.msk [vmem:[#allocation2 + $0xd8] sm:$0xff] %vm593_vm1, %v739_v53  ;;  %v556_v42 = vadd.f32 %v3991_v3, %v555_v19  ;;  %v1364_v19 = vsel %vm593_vm1, %v3499_v36, %v3818_v24 }
 0x1b7   : > { %2906 = vmatmul.msk.f32.gmra.mxu0 %vm351_vm0, %v338_v15  ;;  %808 = vst.msk [vmem:[#allocation2 + $0x178] sm:$0x3] %vm596_vm3, %v761_v55  ;;  %v660_v26 = vrot.slane %v578_v4, 7 }
 0x1b8   : > { %v3962_v10 = vpop.permute.xlu0 %925  ;;  %v591_v9 = vmax.f32 %v556_v42, 0.0 }
 0x1b9   : > { %1330 = vrot.lane.b32.xlu2 %v3965_v39, %s3212_s17  ;;  %1225 = vrot.lane.b32.xlu1 %v3893_v30, %s3210_s29  ;;  %v661_v23 = vsel %vm634_vm5, %v659_v27, %v660_v26  ;;  %v755_v8 = vsel %vm634_vm5, %v660_v26, 0.0 }
 0x1ba   : > { %v4009_v14 = vrot.slane %v591_v9, 7  ;;  %789 = vst.msk [vmem:[#allocation2 + $0xe0] sm:$0xff] %vm593_vm1, %v661_v23  ;;  %v519_v27 = vpop.f32.mrf.mxu0 }
 0x1bb   : > { %v3973_v45 = vpop.permute.xlu2 %1064  ;;  %v1268_v11 = vpop.permute.xlu1 %1267  ;;  %790 = vst.msk [vmem:[#allocation2 + $0xe8] sm:$0x3] %vm596_vm3, %v755_v8  ;;  %v1381_v8 = vsel %vm1374_vm6, %v1364_v19, %v3802_v5 }
 0x1bc   : > { %v1464_v32 = vsel %vm1458_vm10, %v1447_v2, %v1268_v11  ;;  %v520_v11 = vadd.f32 %v3991_v3, %v519_v27  ;;  %v1398_v24 = vsel %vm1391_vm7, %v1381_v8, %v3881_v18 }
 0x1bd   : > { %v1481_v51 = vsel %vm1475_vm11, %v1464_v32, %v3888_v59  ;;  %v1095_v59 = vrot.slane %v3980_v7, 1  ;;  %v838_v32 = vld [vmem:[#allocation2 + $0xd0] sm:$0x3]  ;;  %v4100_v26 = vld [vmem:[#allocation2 + $0xd8] sm:$0xff] }
 0x1be   : > { %1124 = vrot.lane.b32.xlu0 %v3923_v54, %s3211_s8  ;;  %2921 = vmatmul.msk.f32.gmra.mxu1 %vm1495_vm12, %v1481_v51  ;;  %v579_v53 = vmax.f32 %v520_v11, 0.0  ;;  %v1098_v9 = vrot.slane %v838_v32, 1 }
 0x1bf   : > { %2907 = vmatmul.msk.f32.gmra.mxu0 %vm351_vm0, %v339_v0  ;;  %v4019_v50 = vsel %vm866_vm2, %v1095_v59, %v4001_v16 }
 0x1c0   : > { %v4003_v12 = vpop.permute.xlu0 %1012  ;;  %v662_v46 = vrot.slane %v579_v53, 7  ;;  %v1099_v18 = vsel %vm866_vm2, %v4001_v16, %v1098_v9 }
 0x1c1   : > { %1279 = vrot.lane.b32.xlu2 %v3913_v62, %s3213_s11  ;;  %1277 = vrot.lane.b32.xlu1 %v3923_v54, %s3213_s11  ;;  %v746_v54 = vsel %vm634_vm5, 0.0, %v4009_v14  ;;  %v4102_v0 = vld [vmem:[#allocation2 + $0xe0] sm:$0xff] }
 0x1c2   : > { %809 = vst.msk [vmem:[#allocation2 + $0x180] sm:$0xff] %vm593_vm1, %v746_v54  ;;  %v740_v6 = vsel %vm634_vm5, 0.0, %v662_v46  ;;  %v1305_v54 = vrot.slane %v4100_v26, 2  ;;  %v4112_v37 = vrot.slane %v4102_v0, 2 }
 0x1c3   : > { %v4013_v49 = vpop.permute.xlu2 %929  ;;  %v4015_v17 = vpop.permute.xlu1 %1112  ;;  %791 = vst.msk [vmem:[#allocation2 + $0xf0] sm:$0xff] %vm593_vm1, %v740_v6 }
 0x1c4   : > { %v1414_v27 = vsel %vm351_vm0, %v1398_v24, %v4015_v17 }
 0x1c5   : > { %v1431_v6 = vsel %vm1424_vm8, %v1414_v27, %v3910_v56 }
 0x1c6   : > { %1281 = vrot.lane.b32.xlu0 %v4019_v50, %s3213_s11 }
 0x1c8   : > { %v4033_v13 = vpop.permute.xlu0 %1215 }
 0x1c9   : > { %1070 = vrot.lane.b32.xlu2 %v3890_v28, %s5370_s10  ;;  %1020 = vrot.lane.b32.xlu1 %v3810_v40, %s3207_s15  ;;  %v1148_v40 = vrot.slane %v3980_v7, 2 }
 0x1cb   : > { %v4039_v57 = vpop.permute.xlu2 %1322  ;;  %v4041_v20 = vpop.permute.xlu1 %1114  ;;  %v4065_v15 = vsel %vm955_vm4, %v1148_v40, %v4057_v25 }
 0x1ce   : > { %1072 = vrot.lane.b32.xlu0 %v3893_v30, %s5370_s10 }
 0x1d0   : > { %v4045_v63 = vpop.permute.xlu0 %1217 }
 0x1d1   : > { %1227 = vrot.lane.b32.xlu2 %v3980_v7, %s3210_s29  ;;  %1177 = vrot.lane.b32.xlu1 %v3965_v39, %s3209_s23 }
 0x1d3   : > { %v4051_v61 = vpop.permute.xlu2 %1324  ;;  %v4053_v52 = vpop.permute.xlu1 %1014 }
 0x1d6   : > { %1229 = vrot.lane.b32.xlu0 %v3982_v58, %s3210_s29 }
 0x1d8   : > { %v4061_v29 = vpop.permute.xlu0 %1169 }
 0x1d9   : > { %1022 = vrot.lane.b32.xlu2 %v3873_v47, %s3207_s15  ;;  %1334 = vrot.lane.b32.xlu1 %v4065_v15, %s3212_s17  ;;  %v4083_v47 = vld [vmem:[%s5357_s4] ss:$0 sm:$0xff] }
 0x1db   : > { %v4071_v41 = vpop.permute.xlu2 %1116  ;;  %v4073_v2 = vpop.permute.xlu1 %1062 }
 0x1de   : > { %1024 = vrot.lane.b32.xlu0 %v3965_v39, %s3207_s15  ;;  %v522_v39 = vpop.f32.mrf.mxu0 }
 0x1df   : > { %v523_v42 = vadd.f32 %v3991_v3, %v522_v39 }
 0x1e0   : > { %v4078_v55 = vpop.permute.xlu0 %1118 }
 0x1e1   : > { %1179 = vrot.lane.b32.xlu2 %v3949_v43, %s3209_s23  ;;  %1126 = vrot.lane.b32.xlu1 %v3913_v62, %s3211_s8  ;;  %v1151_v62 = vrot.slane %v838_v32, 2  ;;  %v580_v23 = vmax.f32 %v523_v42, 0.0  ;;  %v1365_v32 = vsel %vm593_vm1, %v3512_v44, %v3777_v48 }
 0x1e2   : > { %v1382_v48 = vsel %vm1374_vm6, %v1365_v32, %v3728_v60 }
 0x1e3   : > { %v4094_v51 = vpop.permute.xlu2 %1016  ;;  %v1561_v21 = vpop.f32.mrf.mxu1  ;;  %v663_v40 = vrot.slane %v580_v23, 7  ;;  %v4121_v5 = vsel %vm955_vm4, %v4057_v25, %v1151_v62  ;;  %v1399_v9 = vsel %vm1391_vm7, %v1382_v48, %v3927_v33 }
 0x1e4   : > { %v1562_v59 = vadd.f32 %v4083_v47, %v1561_v21  ;;  %v4098_v4 = vpop.permute.xlu1 %927  ;;  %v4140_v21 = vsel %vm955_vm4, %v1305_v54, %v4112_v37 }
 0x1e5   : > { %v664_v53 = vsel %vm634_vm5, %v662_v46, %v663_v40  ;;  %v756_v17 = vsel %vm634_vm5, %v663_v40, 0.0  ;;  %v1448_v46 = vsel %vm1441_vm9, %v1431_v6, %v4033_v13  ;;  %v1415_v13 = vsel %vm351_vm0, %v1399_v9, %v4041_v20  ;;  %v841_v40 = vld [vmem:[#allocation2 + $0xe8] sm:$0x3] }
 0x1e6   : > { %v1609_v36 = vmax.f32 %v1562_v59, 0.0  ;;  %1181 = vrot.lane.b32.xlu0 %v4065_v15, %s3209_s23  ;;  %792 = vst.msk [vmem:[#allocation2 + $0xf8] sm:$0xff] %vm593_vm1, %v664_v53  ;;  %v1432_v60 = vsel %vm1424_vm8, %v1415_v13, %v3941_v38  ;;  %v1252_v20 = vrot.slane %v4100_v26, 1  ;;  %v1255_v27 = vrot.slane %v841_v40, 1 }
 0x1e7   : > { %793 = vst.msk [vmem:[#allocation2 + $0x100] sm:$0x3] %vm596_vm3, %v756_v17  ;;  %v1449_v33 = vsel %vm1441_vm9, %v1432_v60, %v4045_v63  ;;  %v1308_v13 = vrot.slane %v841_v40, 2  ;;  %v4227_v60 = vld [vmem:[#allocation2 + $0xf0] sm:$0xff] }
 0x1e8   : > { %v4116_v11 = vpop.permute.xlu0 %1018  ;;  %2932 = vmatmul.msk.f32.vlgmr.msra.gmra.mxu2 %vm593_vm1, %v1609_v36  ;;  %v4171_v36 = vrot.slane %v4102_v0, 1 }
 0x1e9   : > { %1336 = vrot.lane.b32.xlu2 %v4121_v5, %s3212_s17  ;;  %1283 = vrot.lane.b32.xlu1 %v1099_v18, %s3213_s11 }
 0x1ea   : > { %v4182_v63 = vsel %vm866_vm2, %v1252_v20, %v4171_v36  ;;  %v1256_v32 = vsel %vm866_vm2, %v4171_v36, %v1255_v27  ;;  %v3090_v27 = vld [vmem:[#allocation2 + $0x68] sm:$0xff] }
 0x1eb   : > { %v4136_v39 = vpop.permute.xlu2 %1221  ;;  %v1564_v19 = vpop.f32.mrf.mxu1 }
 0x1ec   : > { %v1565_v42 = vadd.f32 %v4083_v47, %v1564_v19  ;;  %v1270_v59 = vpop.permute.xlu1 %1269 }
 0x1ed   : > { %v1465_v44 = vsel %vm1458_vm10, %v1448_v46, %v1270_v59 }
 0x1ee   : > { %v1610_v56 = vmax.f32 %v1565_v42, 0.0  ;;  %1338 = vrot.lane.b32.xlu0 %v4140_v21, %s3212_s17  ;;  %v1482_v62 = vsel %vm1475_vm11, %v1465_v44, %v4039_v57 }
 0x1ef   : > { %2922 = vmatmul.msk.f32.gmra.mxu1 %vm1495_vm12, %v1482_v62 }
 0x1f0   : > { %v4158_v23 = vpop.permute.xlu0 %1066  ;;  %2933 = vmatmul.msk.f32.gmra.mxu2 %vm593_vm1, %v1610_v56 }
 0x1f1   : > { %1128 = vrot.lane.b32.xlu2 %v4019_v50, %s3211_s8  ;;  %1074 = vrot.lane.b32.xlu1 %v3980_v7, %s5370_s10 }
 0x1f3   : > { %v1274_v57 = vpop.permute.xlu2 %1273 }
 0x1f4   : > { %v1272_v8 = vpop.permute.xlu1 %1271 }
 0x1f5   : > { %v1466_v24 = vsel %vm1458_vm10, %v1449_v33, %v1272_v8  ;;  %v1958_v8 = vrot.slane %v4227_v60, 2 }
 0x1f6   : > { %1130 = vrot.lane.b32.xlu0 %v1099_v18, %s3211_s8  ;;  %v1483_v54 = vsel %vm1475_vm11, %v1466_v24, %v4051_v61  ;;  %v1366_v61 = vsel %vm593_vm1, %v3554_v1, %v3831_v35  ;;  %v525_v35 = vpop.f32.mrf.mxu0 }
 0x1f7   : > { %2923 = vmatmul.msk.f32.gmra.mxu1 %vm1495_vm12, %v1483_v54  ;;  %v1383_v17 = vsel %vm1374_vm6, %v1366_v61, %v4003_v12  ;;  %v1309_v54 = vsel %vm955_vm4, %v4112_v37, %v1308_v13  ;;  %v1367_v61 = vsel %vm593_vm1, %v3090_v27, %v3962_v10 }
 0x1f8   : > { %v4178_v38 = vpop.permute.xlu0 %931  ;;  %v1400_v6 = vsel %vm1391_vm7, %v1383_v17, %v4073_v2  ;;  %v526_v2 = vadd.f32 %v3991_v3, %v525_v35 }
 0x1f9   : > { %1285 = vrot.lane.b32.xlu2 %v4182_v63, %s3213_s11  ;;  %1231 = vrot.lane.b32.xlu1 %v4100_v26, %s3210_s29  ;;  %v1416_v46 = vsel %vm351_vm0, %v1400_v6, %v4071_v41  ;;  %v1384_v6 = vsel %vm1374_vm6, %v1367_v61, %v4053_v52 }
 0x1fa   : > { %v1433_v12 = vsel %vm1424_vm8, %v1416_v46, %v4061_v29  ;;  %v581_v44 = vmax.f32 %v526_v2, 0.0 }
 0x1fb   : > { %v4188_v18 = vpop.permute.xlu2 %1173 }
 0x1fc   : > { %v1172_v53 = vpop.permute.xlu1 %1171  ;;  %v665_v56 = vrot.slane %v581_v44, 7 }
 0x1fe   : > { %1287 = vrot.lane.b32.xlu0 %v1256_v32, %s3213_s11  ;;  %v741_v29 = vsel %vm634_vm5, 0.0, %v665_v56 }
 0x1ff   : > { %794 = vst.msk [vmem:[#allocation2 + $0x108] sm:$0xff] %vm593_vm1, %v741_v29 }
 0x200   : > { %v1327_v19 = vpop.permute.xlu0 %1326 }
 0x201   : > { %1076 = vrot.lane.b32.xlu2 %v3982_v58, %s5370_s10  ;;  %1026 = vrot.lane.b32.xlu1 %v3949_v43, %s3207_s15 }
 0x203   : > { %v4206_v1 = vpop.permute.xlu2 %1122 }
 0x204   : > { %v1220_v42 = vpop.permute.xlu1 %1219 }
 0x205   : > { %v1450_v59 = vsel %vm1441_vm9, %v1433_v12, %v1220_v42  ;;  %v1401_v12 = vsel %vm1391_vm7, %v1384_v6, %v3973_v45  ;;  %v1811_v6 = vld [vmem:[#allocation2 + $0xe8] sm:$0x3] }
 0x206   : > { %1988 = vrot.lane.b32.xlu0 %v4065_v15, %s3207_s15  ;;  %v1467_v41 = vsel %vm1458_vm10, %v1450_v59, %v1274_v57  ;;  %v528_v15 = vpop.f32.mrf.mxu0  ;;  %v4229_v57 = vld [vmem:[#allocation2 + $0xf8] sm:$0xff]  ;;  %v1417_v42 = vsel %vm351_vm0, %v1401_v12, %v4078_v55 }
 0x207   : > { %v1484_v48 = vsel %vm1475_vm11, %v1467_v41, %v1327_v19  ;;  %v529_v33 = vadd.f32 %v3991_v3, %v528_v15  ;;  %v1959_v20 = vrot.slane %v4229_v57, 2  ;;  %v1434_v2 = vsel %vm1424_vm8, %v1417_v42, %v1172_v53 }
 0x208   : > { %2924 = vmatmul.msk.f32.gmra.mxu1 %vm1495_vm12, %v1484_v48  ;;  %v1276_v43 = vpop.permute.xlu0 %1275  ;;  %v1451_v45 = vsel %vm1441_vm9, %v1434_v2, %v4136_v39  ;;  %v1871_v29 = vrot.slane %v4229_v57, 1 }
 0x209   : > { %1233 = vrot.lane.b32.xlu2 %v4102_v0, %s3210_s29  ;;  %1183 = vrot.lane.b32.xlu1 %v4121_v5, %s3209_s23  ;;  %v582_v5 = vmax.f32 %v529_v33, 0.0  ;;  %v1468_v55 = vsel %vm1458_vm10, %v1451_v45, %v1276_v43  ;;  %v1808_v33 = vld [vmem:[#allocation2 + $0xd0] sm:$0x3]  ;;  %v1814_v45 = vld [vmem:[#allocation2 + $0x100] sm:$0x3] }
 0x20b   : > { %v4222_v62 = vpop.permute.xlu2 %935  ;;  %v666_v40 = vrot.slane %v582_v5, 7 }
 0x20c   : > { %v4225_v9 = vpop.permute.xlu1 %1068 }
 0x20d   : > { %v667_v17 = vsel %vm634_vm5, %v665_v56, %v666_v40  ;;  %v757_v32 = vsel %vm634_vm5, %v666_v40, 0.0  ;;  %v1870_v56 = vrot.slane %v4227_v60, 1  ;;  %v1863_v40 = vrot.slane %v1808_v33, 1 }
 0x20e   : > { %2145 = vrot.lane.b32.xlu0 %v4140_v21, %s3209_s23  ;;  %795 = vst.msk [vmem:[#allocation2 + $0x110] sm:$0xff] %vm593_vm1, %v667_v17 }
 0x20f   : > { %796 = vst.msk [vmem:[#allocation2 + $0x118] sm:$0x3] %vm596_vm3, %v757_v32  ;;  %v4293_v43 = vsel %vm866_vm2, %v1870_v56, %v1871_v29  ;;  %v1864_v17 = vsel %vm866_vm2, %v4001_v16, %v1863_v40  ;;  %v1368_v32 = vsel %vm593_vm1, %v3663_v22, %v4098_v4  ;;  %v347_v22 = vld [vmem:[%s3347_s16 + $0xf8] sm:$0xff] }
 0x210   : > { %v4236_v24 = vpop.permute.xlu0 %1175  ;;  %2915 = vmatmul.msk.f32.vlgmr.msra.gmra.mxu3 %vm351_vm0, %v347_v22  ;;  %v3094_v40 = vld [vmem:[%s5356_s3 + $0x28] sm:$0xff] }
 0x211   : > { %1900 = vrot.lane.b32.xlu2 %v4019_v50, %s3206_s19  ;;  %1340 = vrot.lane.b32.xlu1 %v1309_v54, %s3212_s17  ;;  %v4254_v50 = vsel %vm955_vm4, %v1958_v8, %v1959_v20  ;;  %v1951_v54 = vrot.slane %v1808_v33, 2  ;;  %v3093_v33 = vld [vmem:[%s5356_s3 + $0x30] sm:$0xff] }
 0x213   : > { %v4249_v19 = vpop.permute.xlu2 %1330  ;;  %v1567_v46 = vpop.f32.mrf.mxu1  ;;  %v1952_v61 = vsel %vm955_vm4, %v4057_v25, %v1951_v54  ;;  %v1868_v25 = vrot.slane %v1811_v6, 1 }
 0x214   : > { %v1568_v35 = vadd.f32 %v4083_v47, %v1567_v46  ;;  %v4258_v10 = vpop.permute.xlu1 %933 }
 0x216   : > { %v1611_v52 = vmax.f32 %v1568_v35, 0.0  ;;  %2302 = vrot.lane.b32.xlu0 %v4254_v50, %s3212_s17  ;;  %v1385_v35 = vsel %vm1374_vm6, %v1368_v32, %v4094_v51  ;;  %v4333_v51 = vsel %vm866_vm2, %v4171_v36, %v1868_v25  ;;  %v3092_v36 = vld [vmem:[%s5356_s3 + $0x38] sm:$0xff] }
 0x217   : > { %v1402_v16 = vsel %vm1391_vm7, %v1385_v35, %v4158_v23  ;;  %v3091_v23 = vld [vmem:[%s5356_s3 + $0x40] sm:$0xff]  ;;  %v3096_v25 = vld [vmem:[%s5356_s3 + $0x18] sm:$0xff] }
 0x218   : > { %v4268_v59 = vpop.permute.xlu0 %1223  ;;  %2934 = vmatmul.msk.f32.gmra.mxu2 %vm593_vm1, %v1611_v52  ;;  %v1956_v52 = vrot.slane %v1811_v6, 2  ;;  %2533 = vmatpush.msra.mxu3 %v3091_v23 }
 0x219   : > { %2092 = vrot.lane.b32.xlu2 %v4182_v63, %s3211_s8  ;;  %2038 = vrot.lane.b32.xlu1 %v4100_v26, %s5370_s10 }
 0x21a   : > { %v4329_v2 = vsel %vm955_vm4, %v4112_v37, %v1956_v52  ;;  %2534 = vmatpush.msra.mxu3 %v3092_v36 }
 0x21b   : > { %v4277_v41 = vpop.permute.xlu2 %1279  ;;  %v1570_v44 = vpop.f32.mrf.mxu1 }
 0x21c   : > { %v1571_v53 = vadd.f32 %v4083_v47, %v1570_v44  ;;  %v1329_v48 = vpop.permute.xlu1 %1328  ;;  %2535 = vmatpush.msra.mxu3 %v3093_v33 }
 0x21d   : > { %v1485_v15 = vsel %vm1475_vm11, %v1468_v55, %v1329_v48  ;;  %v1961_v55 = vrot.slane %v1814_v45, 2 }
 0x21e   : > { %v1612_v13 = vmax.f32 %v1571_v53, 0.0  ;;  %2925 = vmatmul.msk.f32.gmra.mxu1 %vm1495_vm12, %v1485_v15  ;;  %2040 = vrot.lane.b32.xlu0 %v4102_v0, %s5370_s10  ;;  %v1873_v15 = vrot.slane %v1814_v45, 1 }
 0x21f   : > { %2536 = vmatpush.msra.mxu3 %v3094_v40 }
 0x220   : > { %v4287_v39 = vpop.permute.xlu0 %937  ;;  %2935 = vmatmul.msk.f32.gmra.mxu2 %vm593_vm1, %v1612_v13  ;;  %v4361_v13 = vld [vmem:[#allocation2 + $0x110] sm:$0xff] }
 0x221   : > { %2249 = vrot.lane.b32.xlu2 %v4293_v43, %s3213_s11  ;;  %2195 = vrot.lane.b32.xlu1 %v4227_v60, %s3210_s29  ;;  %v1876_v32 = vrot.slane %v4361_v13, 1 }
 0x223   : > { %v4299_v5 = vpop.permute.xlu2 %1070 }
 0x224   : > { %v1121_v8 = vpop.permute.xlu1 %1120 }
 0x225   : > { %v1418_v42 = vsel %vm351_vm0, %v1402_v16, %v1121_v8 }
 0x226   : > { %2197 = vrot.lane.b32.xlu0 %v4229_v57, %s3210_s29  ;;  %v1435_v44 = vsel %vm1424_vm8, %v1418_v42, %v4188_v18 }
 0x227   : > { %v1452_v48 = vsel %vm1441_vm9, %v1435_v44, %v4268_v59  ;;  %v3097_v44 = vld [vmem:[%s5356_s3 + $0x10] sm:$0xff] }
 0x228   : > { %v4303_v27 = vpop.permute.xlu0 %1332 }
 0x229   : > { %1990 = vrot.lane.b32.xlu2 %v1952_v61, %s3207_s15  ;;  %1902 = vrot.lane.b32.xlu1 %v1864_v17, %s3206_s19 }
 0x22b   : > { %v4314_v46 = vpop.permute.xlu2 %1227 }
 0x22c   : > { %v1226_v12 = vpop.permute.xlu1 %1225 }
 0x22e   : > { %1904 = vrot.lane.b32.xlu0 %v4182_v63, %s3206_s19  ;;  %v1369_v63 = vsel %vm593_vm1, %v3680_v31, %v4013_v49 }
 0x22f   : > { %v1386_v37 = vsel %vm1374_vm6, %v1369_v63, %v4116_v11  ;;  %v4359_v11 = vld [vmem:[#allocation2 + $0x108] sm:$0xff] }
 0x230   : > { %v4325_v4 = vpop.permute.xlu0 %1124  ;;  %v1403_v31 = vsel %vm1391_vm7, %v1386_v37, %v4225_v9  ;;  %v1875_v17 = vrot.slane %v4359_v11, 1  ;;  %v1370_v37 = vsel %vm593_vm1, %v3759_v34, %v4178_v38 }
 0x231   : > { %2147 = vrot.lane.b32.xlu2 %v4329_v2, %s3209_s23  ;;  %2094 = vrot.lane.b32.xlu1 %v4333_v51, %s3211_s8  ;;  %v1419_v8 = vsel %vm351_vm0, %v1403_v31, %v4206_v1  ;;  %v4382_v1 = vsel %vm955_vm4, %v1959_v20, %v1961_v55  ;;  %v3095_v20 = vld [vmem:[%s5356_s3 + $0x20] sm:$0xff] }
 0x232   : > { %v1436_v61 = vsel %vm1424_vm8, %v1419_v8, %v4236_v24  ;;  %v4391_v24 = vsel %vm866_vm2, %v1871_v29, %v1873_v15  ;;  %2537 = vmatpush.msra.mxu3 %v3095_v20  ;;  %v4409_v42 = vsel %vm866_vm2, %v1875_v17, %v1876_v32  ;;  %v1964_v17 = vrot.slane %v4361_v13, 2  ;;  %v3100_v20 = vld [vmem:[#allocation2 + $0x98] sm:$0xff] }
 0x233   : > { %v4354_v49 = vpop.permute.xlu2 %1022  ;;  %v1573_v18 = vpop.f32.mrf.mxu1  ;;  %v1453_v6 = vsel %vm1441_vm9, %v1436_v61, %v1226_v12  ;;  %v1963_v61 = vrot.slane %v4359_v11, 2 }
 0x234   : > { %v1574_v53 = vadd.f32 %v4083_v47, %v1573_v18  ;;  %v1278_v56 = vpop.permute.xlu1 %1277  ;;  %2538 = vmatpush.msra.mxu3 %v3096_v25  ;;  %v1470_v22 = vsel %vm1458_vm10, %v1453_v6, %v4277_v41  ;;  %v3098_v18 = vld [vmem:[%s5356_s3 + $0x8] sm:$0xff] }
 0x235   : > { %v1469_v9 = vsel %vm1458_vm10, %v1452_v48, %v1278_v56  ;;  %v1487_v41 = vsel %vm1475_vm11, %v1470_v22, %v4303_v27  ;;  %v3099_v27 = vld [vmem:[%s5356_s3] sm:$0xff] }
 0x236   : > { %v1613_v54 = vmax.f32 %v1574_v53, 0.0  ;;  %2096 = vrot.lane.b32.xlu0 %v4293_v43, %s3211_s8  ;;  %v1486_v59 = vsel %vm1475_vm11, %v1469_v9, %v4249_v19  ;;  %v531_v19 = vpop.f32.mrf.mxu0  ;;  %2539 = vmatpush.msra.mxu3 %v3097_v44 }
 0x237   : > { %2926 = vmatmul.msk.f32.gmra.mxu1 %vm1495_vm12, %v1486_v59  ;;  %v532_v52 = vadd.f32 %v3991_v3, %v531_v19 }
 0x238   : > { %v1282_v35 = vpop.permute.xlu0 %1281  ;;  %2936 = vmatmul.msk.f32.gmra.mxu2 %vm593_vm1, %v1613_v54  ;;  %2540 = vmatpush.msra.mxu3 %v3098_v18 }
 0x239   : > { %2304 = vrot.lane.b32.xlu2 %v4382_v1, %s3212_s17  ;;  %2251 = vrot.lane.b32.xlu1 %v4391_v24, %s3213_s11  ;;  %v583_v12 = vmax.f32 %v532_v52, 0.0  ;;  %v4465_v52 = vsel %vm955_vm4, %v1963_v61, %v1964_v17  ;;  %v1626_v61 = vld [vmem:[%s3347_s16 + $0x8] sm:$0xff] }
 0x23a   : > { %2541 = vmatpush.msra.mxu3 %v3099_v27 }
 0x23b   : > { %v4404_v29 = vpop.permute.xlu2 %1179  ;;  %v1576_v16 = vpop.f32.mrf.mxu1  ;;  %v668_v63 = vrot.slane %v583_v12, 7  ;;  %v1371_v12 = vsel %vm593_vm1, %v3100_v20, %v4258_v10 }
 0x23c   : > { %v1577_v45 = vadd.f32 %v4083_v47, %v1576_v16  ;;  %v1021_v23 = vpop.permute.xlu1 %1020  ;;  %v1388_v16 = vsel %vm1374_vm6, %v1371_v12, %v4354_v49 }
 0x23d   : > { %v742_v31 = vsel %vm634_vm5, 0.0, %v668_v63  ;;  %v1387_v55 = vsel %vm1374_vm6, %v1370_v37, %v1021_v23 }
 0x23e   : > { %v1614_v36 = vmax.f32 %v1577_v45, 0.0  ;;  %2253 = vrot.lane.b32.xlu0 %v4409_v42, %s3213_s11  ;;  %797 = vst.msk [vmem:[#allocation2 + $0x120] sm:$0xff] %vm593_vm1, %v742_v31  ;;  %v534_v34 = vpop.f32.mrf.mxu0  ;;  %v1404_v48 = vsel %vm1391_vm7, %v1387_v55, %v4299_v5 }
 0x23f   : > { %2927 = vmatmul.msk.f32.gmra.mxu1 %vm1495_vm12, %v1487_v41  ;;  %v535_v53 = vadd.f32 %v3991_v3, %v534_v34  ;;  %v1420_v3 = vsel %vm351_vm0, %v1404_v48, %v4325_v4  ;;  %v1372_v34 = vsel %vm593_vm1, %v3890_v28, %v4222_v62  ;;  %v4519_v48 = vld [vmem:[%s5359_s6] ss:$0 sm:$0xff]  ;;  %v1625_v62 = vld [vmem:[%s3347_s16] sm:$0xff] }
 0x240   : > { %v1073_v38 = vpop.permute.xlu0 %1072  ;;  %2937 = vmatmul.msk.f32.gmra.mxu2 %vm593_vm1, %v1614_v36 }
 0x241   : > { %2042 = vrot.lane.b32.xlu2 %v4227_v60, %s5370_s10  ;;  %1992 = vrot.lane.b32.xlu1 %v4140_v21, %s3207_s15  ;;  %v584_v56 = vmax.f32 %v535_v53, 0.0  ;;  %v1405_v45 = vsel %vm1391_vm7, %v1388_v16, %v1073_v38 }
 0x243   : > { %v1337_v15 = vpop.permute.xlu2 %1336  ;;  %v669_v9 = vrot.slane %v584_v56, 7 }
 0x244   : > { %v1178_v33 = vpop.permute.xlu1 %1177 }
 0x245   : > { %v1437_v8 = vsel %vm1424_vm8, %v1420_v3, %v1178_v33  ;;  %v670_v54 = vsel %vm634_vm5, %v668_v63, %v669_v9  ;;  %v758_v59 = vsel %vm634_vm5, %v669_v9, 0.0  ;;  %v4507_v55 = vld [vmem:[#allocation2 + $0x120] sm:$0xff] }
 0x246   : > { %1994 = vrot.lane.b32.xlu0 %v4329_v2, %s3207_s15  ;;  %798 = vst.msk [vmem:[#allocation2 + $0x128] sm:$0xff] %vm593_vm1, %v670_v54  ;;  %v1454_v5 = vsel %vm1441_vm9, %v1437_v8, %v4314_v46  ;;  %v1817_v46 = vld [vmem:[#allocation2 + $0x118] sm:$0x3] }
 0x247   : > { %799 = vst.msk [vmem:[#allocation2 + $0x130] sm:$0x3] %vm596_vm3, %v758_v59  ;;  %v1471_v40 = vsel %vm1458_vm10, %v1454_v5, %v1282_v35  ;;  %v1966_v35 = vrot.slane %v1817_v46, 2  ;;  %v1878_v36 = vrot.slane %v1817_v46, 1 }
 0x248   : > { %v1230_v21 = vpop.permute.xlu0 %1229 }
 0x249   : > { %2199 = vrot.lane.b32.xlu2 %v4359_v11, %s3210_s29  ;;  %2149 = vrot.lane.b32.xlu1 %v4254_v50, %s3209_s23  ;;  %v4477_v23 = vsel %vm955_vm4, %v1964_v17, %v1966_v35  ;;  %v1968_v35 = vrot.slane %v4507_v55, 2 }
 0x24b   : > { %v1129_v4 = vpop.permute.xlu2 %1128 }
 0x24c   : > { %v1335_v2 = vpop.permute.xlu1 %1334 }
 0x24d   : > { %v1488_v19 = vsel %vm1475_vm11, %v1471_v40, %v1335_v2  ;;  %v4539_v40 = vld [vmem:[#allocation2 + $0x128] sm:$0xff] }
 0x24e   : > { %2928 = vmatmul.msk.f32.gmra.mxu1 %vm1495_vm12, %v1488_v19  ;;  %2151 = vrot.lane.b32.xlu0 %v4382_v1, %s3209_s23  ;;  %v1969_v20 = vrot.slane %v4539_v40, 2  ;;  %v1881_v16 = vrot.slane %v4539_v40, 1 }
 0x250   : > { %v1025_v6 = vpop.permute.xlu0 %1024 }
 0x251   : > { %1906 = vrot.lane.b32.xlu2 %v4333_v51, %s3206_s19  ;;  %2306 = vrot.lane.b32.xlu1 %v4465_v52, %s3212_s17  ;;  %v1389_v53 = vsel %vm1374_vm6, %v1372_v34, %v1025_v6 }
 0x253   : > { %v1286_v25 = vpop.permute.xlu2 %1285 }
 0x254   : > { %v1127_v22 = vpop.permute.xlu1 %1126 }
 0x255   : > { %v1421_v51 = vsel %vm351_vm0, %v1405_v45, %v1127_v22  ;;  %v1373_v22 = vsel %vm593_vm1, %v3893_v30, %v4287_v39 }
 0x256   : > { %2308 = vrot.lane.b32.xlu0 %v4477_v23, %s3212_s17  ;;  %v1438_v44 = vsel %vm1424_vm8, %v1421_v51, %v4404_v29  ;;  %v1820_v51 = vld [vmem:[#allocation2 + $0x130] sm:$0x3] }
 0x257   : > { %v1455_v49 = vsel %vm1441_vm9, %v1438_v44, %v1230_v21  ;;  %v1883_v39 = vrot.slane %v1820_v51, 1 }
 0x258   : > { %v1182_v63 = vpop.permute.xlu0 %1181 }
 0x259   : > { %2098 = vrot.lane.b32.xlu2 %v4391_v24, %s3211_s8  ;;  %2044 = vrot.lane.b32.xlu1 %v4229_v57, %s5370_s10  ;;  %v4499_v57 = vsel %vm866_vm2, %v1876_v32, %v1878_v36 }
 0x25b   : > { %v4488_v10 = vpop.permute.xlu2 %1076 }
 0x25c   : > { %v1284_v37 = vpop.permute.xlu1 %1283 }
 0x25d   : > { %v1472_v41 = vsel %vm1458_vm10, %v1455_v49, %v1284_v37 }
 0x25e   : > { %2046 = vrot.lane.b32.xlu0 %v4359_v11, %s5370_s10  ;;  %v1489_v31 = vsel %vm1475_vm11, %v1472_v41, %v1337_v15  ;;  %v4565_v41 = vsel %vm955_vm4, %v1968_v35, %v1969_v20 }
 0x25f   : > { %2929 = vmatmul.msk.f32.gmra.mxu1 %vm1495_vm12, %v1489_v31 }
 0x260   : > { %v1339_v29 = vpop.permute.xlu0 %1338 }
 0x261   : > { %2255 = vrot.lane.b32.xlu2 %v4499_v57, %s3213_s11  ;;  %2201 = vrot.lane.b32.xlu1 %v4361_v13, %s3210_s29 }
 0x263   : > { %v4505_v18 = vpop.permute.xlu2 %1233 }
 0x264   : > { %v1075_v38 = vpop.permute.xlu1 %1074 }
 0x265   : > { %v1406_v32 = vsel %vm1391_vm7, %v1389_v53, %v1075_v38  ;;  %v4582_v53 = vsel %vm866_vm2, %v1881_v16, %v1883_v39 }
 0x266   : > { %2203 = vrot.lane.b32.xlu0 %v4507_v55, %s3210_s29  ;;  %v1422_v56 = vsel %vm351_vm0, %v1406_v32, %v1129_v4 }
 0x267   : > { %v1439_v3 = vsel %vm1424_vm8, %v1422_v56, %v1182_v63 }
 0x268   : > { %v1131_v27 = vpop.permute.xlu0 %1130 }
 0x269   : > { %1996 = vrot.lane.b32.xlu2 %v4254_v50, %s3207_s15  ;;  %1908 = vrot.lane.b32.xlu1 %v4293_v43, %s3206_s19 }
 0x26b   : > { %v1901_v28 = vpop.permute.xlu2 %1900  ;;  %v1709_v15 = vpop.f32.mrf.mxu2 }
 0x26c   : > { %v1579_v33 = vpop.f32.mrf.mxu1  ;;  %v1710_v9 = vadd.f32 %v4519_v48, %v1709_v15  ;;  %v1232_v8 = vpop.permute.xlu1 %1231  ;;  %v2350_v49 = vsel %vm593_vm1, %v3980_v7, %v1901_v28 }
 0x26d   : > { %v1580_v54 = vadd.f32 %v4083_v47, %v1579_v33  ;;  %v1456_v59 = vsel %vm1441_vm9, %v1439_v3, %v1232_v8 }
 0x26e   : > { %v1757_v21 = vadd.f32 %v1710_v9, %v1625_v62  ;;  %1910 = vrot.lane.b32.xlu0 %v4391_v24, %s3206_s19  ;;  %v1473_v50 = vsel %vm1458_vm10, %v1456_v59, %v1286_v25  ;;  %v1880_v25 = vrot.slane %v4507_v55, 1  ;;  %v4606_v59 = vld [vmem:[#allocation2 + $0x140] sm:$0xff] }
 0x26f   : > { %v1615_v43 = vmax.f32 %v1580_v54, 0.0  ;;  %v1490_v5 = vsel %vm1475_vm11, %v1473_v50, %v1339_v29  ;;  %v4604_v54 = vld [vmem:[#allocation2 + $0x138] sm:$0xff]  ;;  %v1971_v50 = vrot.slane %v1820_v51, 2 }
 0x270   : > { %v1773_v4 = vmax.f32 %v1757_v21, 0.0  ;;  %2930 = vmatmul.msk.f32.gmra.mxu1 %vm1495_vm12, %v1490_v5  ;;  %v1288_v2 = vpop.permute.xlu0 %1287  ;;  %v4572_v30 = vsel %vm866_vm2, %v1880_v25, %v1881_v16  ;;  %v1973_v5 = vrot.slane %v4604_v54, 2  ;;  %v1627_v16 = vld [vmem:[%s3347_s16 + $0x10] sm:$0xff]  ;;  %v1885_v51 = vrot.slane %v4604_v54, 1 }
 0x271   : > { %2938 = vmatmul.msk.f32.gmra.mxu2 %vm593_vm1, %v1615_v43  ;;  %2153 = vrot.lane.b32.xlu2 %v4465_v52, %s3209_s23 }
 0x272   : > { %1789 = vst.msk [vmem:[%s4543_s18] sm:$0xff] %vm351_vm0, %v1773_v4  ;;  %2100 = vrot.lane.b32.xlu1 %v4409_v42, %s3211_s8  ;;  %v1974_v4 = vrot.slane %v4606_v59, 2 }
 0x273   : > { %v2093_v24 = vpop.permute.xlu2 %2092  ;;  %v1712_v17 = vpop.f32.mrf.mxu2 }
 0x274   : > { %v1582_v19 = vpop.f32.mrf.mxu1  ;;  %v1713_v46 = vadd.f32 %v4519_v48, %v1712_v17  ;;  %v1027_v6 = vpop.permute.xlu1 %1026  ;;  %v4625_v17 = vsel %vm955_vm4, %v1973_v5, %v1974_v4 }
 0x275   : > { %v1583_v12 = vadd.f32 %v4083_v47, %v1582_v19  ;;  %v1390_v44 = vsel %vm1374_vm6, %v1373_v22, %v1027_v6 }
 0x276   : > { %v1758_v45 = vadd.f32 %v1713_v46, %v1626_v61  ;;  %2102 = vrot.lane.b32.xlu0 %v4499_v57, %s3211_s8  ;;  %v1407_v7 = vsel %vm1391_vm7, %v1390_v44, %v4488_v10  ;;  %v4618_v61 = vsel %vm955_vm4, %v1969_v20, %v1971_v50 }
 0x277   : > { %v1616_v63 = vmax.f32 %v1583_v12, 0.0  ;;  %v1423_v38 = vsel %vm351_vm0, %v1407_v7, %v1131_v27 }
 0x278   : > { %v1774_v37 = vmax.f32 %v1758_v45, 0.0  ;;  %v1989_v36 = vpop.permute.xlu0 %1988 }
 0x279   : > { %v2366_v31 = vsel %vm1374_vm6, %v2350_v49, %v1989_v36  ;;  %2939 = vmatmul.msk.f32.gmra.mxu2 %vm593_vm1, %v1616_v63  ;;  %2310 = vrot.lane.b32.xlu2 %v4565_v41, %s3212_s17  ;;  %v1886_v63 = vrot.slane %v4606_v59, 1 }
 0x27a   : > { %1790 = vst.msk [vmem:[%s4543_s18 + $0x8] sm:$0xff] %vm351_vm0, %v1774_v37  ;;  %2257 = vrot.lane.b32.xlu1 %v4572_v30, %s3213_s11 }
 0x27b   : > { %v2250_v29 = vpop.permute.xlu2 %2249 }
 0x27c   : > { %v1184_v34 = vpop.permute.xlu1 %1183 }
 0x27d   : > { %v1440_v32 = vsel %vm1424_vm8, %v1423_v38, %v1184_v34  ;;  %v1628_v38 = vld [vmem:[%s3347_s16 + $0x18] sm:$0xff] }
 0x27e   : > { %2259 = vrot.lane.b32.xlu0 %v4582_v53, %s3213_s11  ;;  %v1457_v28 = vsel %vm1441_vm9, %v1440_v32, %v4505_v18 }
 0x27f   : > { %v1474_v62 = vsel %vm1458_vm10, %v1457_v28, %v1288_v2 }
 0x280   : > { %v2146_v56 = vpop.permute.xlu0 %2145 }
 0x281   : > { %2048 = vrot.lane.b32.xlu2 %v4361_v13, %s5370_s10 }
 0x282   : > { %1998 = vrot.lane.b32.xlu1 %v4382_v1, %s3207_s15 }
 0x283   : > { %v1991_v10 = vpop.permute.xlu2 %1990 }
 0x284   : > { %v1341_v27 = vpop.permute.xlu1 %1340 }
 0x285   : > { %v1585_v15 = vpop.f32.mrf.mxu1  ;;  %v1491_v33 = vsel %vm1475_vm11, %v1474_v62, %v1341_v27 }
 0x286   : > { %v1586_v9 = vadd.f32 %v4083_v47, %v1585_v15  ;;  %2931 = vmatmul.msk.f32.gmra.mxu1 %vm1495_vm12, %v1491_v33  ;;  %2000 = vrot.lane.b32.xlu0 %v4465_v52, %s3207_s15 }
 0x288   : > { %v1617_v18 = vmax.f32 %v1586_v9, 0.0  ;;  %v2303_v3 = vpop.permute.xlu0 %2302 }
 0x289   : > { %2205 = vrot.lane.b32.xlu2 %v4539_v40, %s3210_s29 }
 0x28a   : > { %2155 = vrot.lane.b32.xlu1 %v4477_v23, %s3209_s23  ;;  %2940 = vmatmul.msk.f32.gmra.mxu2 %vm593_vm1, %v1617_v18 }
 0x28b   : > { %v2148_v1 = vpop.permute.xlu2 %2147 }
 0x28c   : > { %v2039_v8 = vpop.permute.xlu1 %2038 }
 0x28d   : > { %v2382_v21 = vsel %vm1391_vm7, %v2366_v31, %v2039_v8 }
 0x28e   : > { %v2398_v52 = vsel %vm351_vm0, %v2382_v21, %v2093_v24  ;;  %2157 = vrot.lane.b32.xlu0 %v4565_v41, %s3209_s23 }
 0x28f   : > { %v2414_v43 = vsel %vm1424_vm8, %v2398_v52, %v2146_v56  ;;  %v4688_v52 = vld [vmem:[#allocation2 + $0x150] sm:$0xff] }
 0x290   : > { %v2041_v2 = vpop.permute.xlu0 %2040 }
 0x291   : > { %1912 = vrot.lane.b32.xlu2 %v4409_v42, %s3206_s19 }
 0x292   : > { %2312 = vrot.lane.b32.xlu1 %v4618_v61, %s3212_s17 }
 0x293   : > { %v2305_v24 = vpop.permute.xlu2 %2304 }
 0x294   : > { %v2196_v19 = vpop.permute.xlu1 %2195 }
 0x295   : > { %v2430_v46 = vsel %vm1441_vm9, %v2414_v43, %v2196_v19 }
 0x296   : > { %v2446_v6 = vsel %vm1458_vm10, %v2430_v46, %v2250_v29  ;;  %2314 = vrot.lane.b32.xlu0 %v4625_v17, %s3212_s17  ;;  %v4653_v29 = vsel %vm866_vm2, %v1885_v51, %v1886_v63  ;;  %v4695_v46 = vld [vmem:[#allocation2 + $0x158] sm:$0xff] }
 0x297   : > { %v4632_v42 = vsel %vm1475_vm11, %v2446_v6, %v2303_v3  ;;  %v1891_v51 = vrot.slane %v4695_v46, 1 }
 0x298   : > { %v2198_v35 = vpop.permute.xlu0 %2197 }
 0x299   : > { %2104 = vrot.lane.b32.xlu2 %v4572_v30, %s3211_s8 }
 0x29a   : > { %2050 = vrot.lane.b32.xlu1 %v4507_v55, %s5370_s10 }
 0x29b   : > { %v1588_v20 = vpop.f32.mrf.mxu1  ;;  %v2043_v12 = vpop.permute.xlu2 %2042 }
 0x29c   : > { %v1589_v25 = vadd.f32 %v4083_v47, %v1588_v20  ;;  %v1715_v22 = vpop.f32.mrf.mxu2  ;;  %v1903_v45 = vpop.permute.xlu1 %1902 }
 0x29d   : > { %v1716_v44 = vadd.f32 %v4519_v48, %v1715_v22  ;;  %v2351_v49 = vsel %vm593_vm1, %v3982_v58, %v1903_v45  ;;  %v1890_v22 = vrot.slane %v4688_v52, 1 }
 0x29e   : > { %v1618_v37 = vmax.f32 %v1589_v25, 0.0  ;;  %v2367_v36 = vsel %vm1374_vm6, %v2351_v49, %v1991_v10  ;;  %2052 = vrot.lane.b32.xlu0 %v4539_v40, %s5370_s10 }
 0x29f   : > { %v1759_v31 = vadd.f32 %v1716_v44, %v1627_v16  ;;  %v2383_v39 = vsel %vm1391_vm7, %v2367_v36, %v2041_v2 }
 0x2a0   : > { %2941 = vmatmul.msk.f32.vlgmr.msrb.gmra.mxu3 %vm593_vm1, %v1618_v37  ;;  %v1905_v7 = vpop.permute.xlu0 %1904 }
 0x2a1   : > { %v1775_v34 = vmax.f32 %v1759_v31, 0.0  ;;  %2261 = vrot.lane.b32.xlu2 %v4653_v29, %s3213_s11  ;;  %v2352_v5 = vsel %vm593_vm1, %v4100_v26, %v1905_v7  ;;  %v1629_v7 = vld [vmem:[%s3347_s16 + $0x20] sm:$0xff] }
 0x2a2   : > { %2207 = vrot.lane.b32.xlu1 %v4604_v54, %s3210_s29 }
 0x2a3   : > { %1791 = vst.msk [vmem:[%s4543_s18 + $0x10] sm:$0xff] %vm351_vm0, %v1775_v34  ;;  %v4661_v58 = vpop.permute.xlu2 %2199 }
 0x2a4   : > { %v1718_v32 = vpop.f32.mrf.mxu2  ;;  %v2095_v56 = vpop.permute.xlu1 %2094 }
 0x2a5   : > { %v1719_v28 = vadd.f32 %v4519_v48, %v1718_v32  ;;  %v2399_v10 = vsel %vm351_vm0, %v2383_v39, %v2095_v56 }
 0x2a6   : > { %v2415_v27 = vsel %vm1424_vm8, %v2399_v10, %v2148_v1  ;;  %2209 = vrot.lane.b32.xlu0 %v4606_v59, %s3210_s29 }
 0x2a7   : > { %v1760_v62 = vadd.f32 %v1719_v28, %v1628_v38  ;;  %v2431_v15 = vsel %vm1441_vm9, %v2415_v27, %v2198_v35  ;;  %v4731_v38 = vsel %vm866_vm2, %v1890_v22, %v1891_v51 }
 0x2a8   : > { %v2097_v33 = vpop.permute.xlu0 %2096 }
 0x2a9   : > { %v1776_v9 = vmax.f32 %v1760_v62, 0.0  ;;  %2002 = vrot.lane.b32.xlu2 %v4477_v23, %s3207_s15  ;;  %v1823_v23 = vld [vmem:[#allocation2 + $0x148] sm:$0x3] }
 0x2aa   : > { %1914 = vrot.lane.b32.xlu1 %v4499_v57, %s3206_s19  ;;  %v558_v57 = vpop.f32.mrf.mxu3  ;;  %v1976_v19 = vrot.slane %v1823_v23, 2  ;;  %v1888_v20 = vrot.slane %v1823_v23, 1 }
 0x2ab   : > { %1792 = vst.msk [vmem:[%s4543_s18 + $0x18] sm:$0xff] %vm351_vm0, %v1776_v9  ;;  %v1907_v18 = vpop.permute.xlu2 %1906 }
 0x2ac   : > { %v2252_v3 = vpop.permute.xlu1 %2251  ;;  %v2353_v49 = vsel %vm593_vm1, %v4102_v0, %v1907_v18  ;;  %v4719_v31 = vsel %vm866_vm2, %v1886_v63, %v1888_v20 }
 0x2ad   : > { %v2447_v1 = vsel %vm1458_vm10, %v2431_v15, %v2252_v3 }
 0x2ae   : > { %1916 = vrot.lane.b32.xlu0 %v4572_v30, %s3206_s19  ;;  %v4680_v8 = vsel %vm1475_vm11, %v2447_v1, %v2305_v24  ;;  %v3101_v30 = vld [vmem:[%s5355_s2] ss:$0 sm:$0xff] }
 0x2af   : > { %v559_v43 = vadd.f32 %v3101_v30, %v558_v57 }
 0x2b0   : > { %v2254_v21 = vpop.permute.xlu0 %2253 }
 0x2b1   : > { %2159 = vrot.lane.b32.xlu2 %v4618_v61, %s3209_s23  ;;  %v592_v25 = vmax.f32 %v559_v43, 0.0 }
 0x2b2   : > { %2106 = vrot.lane.b32.xlu1 %v4582_v53, %s3211_s8 }
 0x2b3   : > { %v4686_v50 = vpop.permute.xlu2 %2098  ;;  %v681_v44 = vrot.slane %v592_v25, 7  ;;  %v1826_v25 = vld [vmem:[#allocation2 + $0x160] sm:$0x3] }
 0x2b4   : > { %v1591_v2 = vpop.f32.mrf.mxu1  ;;  %v1993_v24 = vpop.permute.xlu1 %1992 }
 0x2b5   : > { %v1592_v6 = vadd.f32 %v4083_v47, %v1591_v2  ;;  %v2368_v35 = vsel %vm1374_vm6, %v2352_v5, %v1993_v24  ;;  %v682_v0 = vsel %vm634_vm5, %v4009_v14, %v681_v44  ;;  %v762_v39 = vsel %vm634_vm5, %v681_v44, 0.0  ;;  %v4765_v5 = vld [vmem:[%s5357_s4] ss:$0 sm:$0xff] }
 0x2b6   : > { %v2384_v16 = vsel %vm1391_vm7, %v2368_v35, %v2043_v12  ;;  %2108 = vrot.lane.b32.xlu0 %v4653_v29, %s3211_s8  ;;  %v4710_v12 = vsel %vm955_vm4, %v1974_v4, %v1976_v19  ;;  %810 = vst.msk [vmem:[#allocation2 + $0x188] sm:$0xff] %vm593_vm1, %v682_v0  ;;  %v1978_v19 = vrot.slane %v4688_v52, 2 }
 0x2b7   : > { %v1619_v45 = vmax.f32 %v1592_v6, 0.0  ;;  %v2400_v26 = vsel %vm351_vm0, %v2384_v16, %v2097_v33  ;;  %811 = vst.msk [vmem:[#allocation2 + $0x190] sm:$0x3] %vm596_vm3, %v762_v39  ;;  %v1979_v6 = vrot.slane %v4695_v46, 2 }
 0x2b8   : > { %v1995_v37 = vpop.permute.xlu0 %1994 }
 0x2b9   : > { %v2369_v36 = vsel %vm1374_vm6, %v2353_v49, %v1995_v37  ;;  %2942 = vmatmul.msk.f32.gmra.mxu3 %vm593_vm1, %v1619_v45  ;;  %2316 = vrot.lane.b32.xlu2 %v4710_v12, %s3212_s17  ;;  %v4780_v45 = vsel %vm955_vm4, %v1978_v19, %v1979_v6 }
 0x2ba   : > { %2263 = vrot.lane.b32.xlu1 %v4719_v31, %s3213_s11 }
 0x2bb   : > { %v2256_v4 = vpop.permute.xlu2 %2255  ;;  %v1721_v34 = vpop.f32.mrf.mxu2 }
 0x2bc   : > { %v1594_v63 = vpop.f32.mrf.mxu1  ;;  %v1722_v14 = vadd.f32 %v4519_v48, %v1721_v34  ;;  %v2150_v32 = vpop.permute.xlu1 %2149 }
 0x2bd   : > { %v1595_v56 = vadd.f32 %v4083_v47, %v1594_v63  ;;  %v2416_v28 = vsel %vm1424_vm8, %v2400_v26, %v2150_v32  ;;  %v1981_v26 = vrot.slane %v1826_v25, 2  ;;  %v1893_v63 = vrot.slane %v1826_v25, 1 }
 0x2be   : > { %v1761_v10 = vadd.f32 %v1722_v14, %v1629_v7  ;;  %v2432_v27 = vsel %vm1441_vm9, %v2416_v28, %v4661_v58  ;;  %2265 = vrot.lane.b32.xlu0 %v4731_v38, %s3213_s11  ;;  %v1630_v58 = vld [vmem:[%s3347_s16 + $0x28] sm:$0xff] }
 0x2bf   : > { %v1620_v62 = vmax.f32 %v1595_v56, 0.0  ;;  %v2448_v15 = vsel %vm1458_vm10, %v2432_v27, %v2254_v21  ;;  %v4786_v37 = vsel %vm955_vm4, %v1979_v6, %v1981_v26  ;;  %v4812_v27 = vsel %vm866_vm2, %v1891_v51, %v1893_v63 }
 0x2c0   : > { %v1777_v33 = vmax.f32 %v1761_v10, 0.0  ;;  %v2152_v9 = vpop.permute.xlu0 %2151 }
 0x2c1   : > { %2943 = vmatmul.msk.f32.gmra.mxu3 %vm593_vm1, %v1620_v62  ;;  %2054 = vrot.lane.b32.xlu2 %v4604_v54, %s5370_s10 }
 0x2c2   : > { %1793 = vst.msk [vmem:[%s4543_s18 + $0x20] sm:$0xff] %vm351_vm0, %v1777_v33  ;;  %2004 = vrot.lane.b32.xlu1 %v4565_v41, %s3207_s15  ;;  %v4822_v33 = vld [vmem:[#allocation2 + $0x168] sm:$0xff] }
 0x2c3   : > { %v1997_v47 = vpop.permute.xlu2 %1996  ;;  %v1724_v18 = vpop.f32.mrf.mxu2  ;;  %v1895_v6 = vrot.slane %v4822_v33, 1 }
 0x2c4   : > { %v1725_v3 = vadd.f32 %v4519_v48, %v1724_v18  ;;  %v2307_v1 = vpop.permute.xlu1 %2306 }
 0x2c5   : > { %v4752_v21 = vsel %vm1475_vm11, %v2448_v15, %v2307_v1 }
 0x2c6   : > { %v1762_v23 = vadd.f32 %v1725_v3, %v1630_v58  ;;  %2006 = vrot.lane.b32.xlu0 %v4618_v61, %s3207_s15 }
 0x2c8   : > { %v1778_v57 = vmax.f32 %v1762_v23, 0.0  ;;  %v2309_v30 = vpop.permute.xlu0 %2308 }
 0x2c9   : > { %2211 = vrot.lane.b32.xlu2 %v4688_v52, %s3210_s29 }
 0x2ca   : > { %1794 = vst.msk [vmem:[%s4543_s18 + $0x28] sm:$0xff] %vm351_vm0, %v1778_v57  ;;  %2161 = vrot.lane.b32.xlu1 %v4625_v17, %s3209_s23 }
 0x2cb   : > { %v1597_v41 = vpop.f32.mrf.mxu1  ;;  %v2154_v43 = vpop.permute.xlu2 %2153 }
 0x2cc   : > { %v1598_v2 = vadd.f32 %v4765_v5, %v1597_v41  ;;  %v2045_v61 = vpop.permute.xlu1 %2044 }
 0x2cd   : > { %v2385_v24 = vsel %vm1391_vm7, %v2369_v36, %v2045_v61  ;;  %v1983_v61 = vrot.slane %v4822_v33, 2 }
 0x2ce   : > { %v1621_v35 = vmax.f32 %v1598_v2, 0.0  ;;  %v2401_v20 = vsel %vm351_vm0, %v2385_v24, %v4686_v50  ;;  %2163 = vrot.lane.b32.xlu0 %v4710_v12, %s3209_s23 }
 0x2cf   : > { %v2417_v16 = vsel %vm1424_vm8, %v2401_v20, %v2152_v9  ;;  %v1829_v20 = vld [vmem:[#allocation2 + $0x178] sm:$0x3] }
 0x2d0   : > { %2944 = vmatmul.msk.f32.gmra.mxu3 %vm593_vm1, %v1621_v35  ;;  %v2047_v22 = vpop.permute.xlu0 %2046 }
 0x2d1   : > { %1918 = vrot.lane.b32.xlu2 %v4582_v53, %s3206_s19 }
 0x2d2   : > { %2318 = vrot.lane.b32.xlu1 %v4780_v45, %s3212_s17 }
 0x2d3   : > { %v2311_v50 = vpop.permute.xlu2 %2310 }
 0x2d4   : > { %v2202_v44 = vpop.permute.xlu1 %2201 }
 0x2d5   : > { %v2433_v49 = vsel %vm1441_vm9, %v2417_v16, %v2202_v44  ;;  %v1898_v44 = vrot.slane %v1829_v20, 1 }
 0x2d6   : > { %2320 = vrot.lane.b32.xlu0 %v4786_v37, %s3212_s17  ;;  %v2449_v36 = vsel %vm1458_vm10, %v2433_v49, %v2256_v4 }
 0x2d7   : > { %v4792_v53 = vsel %vm1475_vm11, %v2449_v36, %v2309_v30  ;;  %v1632_v36 = vld [vmem:[%s3347_s16 + $0x38] sm:$0xff] }
 0x2d8   : > { %v2204_v0 = vpop.permute.xlu0 %2203 }
 0x2d9   : > { %2110 = vrot.lane.b32.xlu2 %v4719_v31, %s3211_s8 }
 0x2da   : > { %2056 = vrot.lane.b32.xlu1 %v4606_v59, %s5370_s10 }
 0x2db   : > { %v4798_v39 = vpop.permute.xlu2 %2048 }
 0x2dc   : > { %v1600_v7 = vpop.f32.mrf.mxu1  ;;  %v1909_v34 = vpop.permute.xlu1 %1908 }
 0x2dd   : > { %v1601_v14 = vadd.f32 %v4765_v5, %v1600_v7  ;;  %v2354_v4 = vsel %vm593_vm1, %v4227_v60, %v1909_v34 }
 0x2de   : > { %v2370_v32 = vsel %vm1374_vm6, %v2354_v4, %v1997_v47  ;;  %2058 = vrot.lane.b32.xlu0 %v4688_v52, %s5370_s10 }
 0x2df   : > { %v1622_v56 = vmax.f32 %v1601_v14, 0.0  ;;  %v2386_v28 = vsel %vm1391_vm7, %v2370_v32, %v2047_v22 }
 0x2e0   : > { %v4807_v10 = vpop.permute.xlu0 %1910 }
 0x2e1   : > { %2945 = vmatmul.msk.f32.gmra.mxu3 %vm593_vm1, %v1622_v56  ;;  %2267 = vrot.lane.b32.xlu2 %v4812_v27, %s3213_s11 }
 0x2e2   : > { %2213 = vrot.lane.b32.xlu1 %v4695_v46, %s3210_s29 }
 0x2e3   : > { %v4819_v60 = vpop.permute.xlu2 %2205 }
 0x2e4   : > { %v2101_v62 = vpop.permute.xlu1 %2100 }
 0x2e5   : > { %v2402_v15 = vsel %vm351_vm0, %v2386_v28, %v2101_v62 }
 0x2e6   : > { %v2418_v9 = vsel %vm1424_vm8, %v2402_v15, %v2154_v43  ;;  %2215 = vrot.lane.b32.xlu0 %v4822_v33, %s3210_s29  ;;  %v1631_v43 = vld [vmem:[%s3347_s16 + $0x30] sm:$0xff] }
 0x2e7   : > { %v2434_v51 = vsel %vm1441_vm9, %v2418_v9, %v2204_v0 }
 0x2e8   : > { %v4828_v47 = vpop.permute.xlu0 %2102 }
 0x2e9   : > { %2008 = vrot.lane.b32.xlu2 %v4625_v17, %s3207_s15 }
 0x2ea   : > { %1920 = vrot.lane.b32.xlu1 %v4653_v29, %s3206_s19  ;;  %v4847_v29 = vld [vmem:[#allocation2 + $0x170] sm:$0xff] }
 0x2eb   : > { %v4834_v58 = vpop.permute.xlu2 %1912  ;;  %v1984_v24 = vrot.slane %v4847_v29, 2  ;;  %v1896_v35 = vrot.slane %v4847_v29, 1 }
 0x2ec   : > { %v2258_v18 = vpop.permute.xlu1 %2257 }
 0x2ed   : > { %v2450_v3 = vsel %vm1458_vm10, %v2434_v51, %v2258_v18  ;;  %v1603_v1 = vpop.f32.mrf.mxu1  ;;  %v4867_v22 = vsel %vm955_vm4, %v1983_v61, %v1984_v24  ;;  %v4885_v63 = vsel %vm866_vm2, %v1896_v35, %v1898_v44 }
 0x2ee   : > { %v1604_v23 = vadd.f32 %v4765_v5, %v1603_v1  ;;  %1922 = vrot.lane.b32.xlu0 %v4719_v31, %s3206_s19  ;;  %v4841_v57 = vsel %vm1475_vm11, %v2450_v3, %v2311_v50  ;;  %v4872_v50 = vsel %vm866_vm2, %v1895_v6, %v1896_v35  ;;  %v1633_v3 = vld [vmem:[%s3347_s16 + $0x40] sm:$0xff] }
 0x2f0   : > { %v1623_v30 = vmax.f32 %v1604_v23, 0.0  ;;  %v4843_v17 = vpop.permute.xlu0 %2259  ;;  %v1986_v23 = vrot.slane %v1829_v20, 2 }
 0x2f1   : > { %2165 = vrot.lane.b32.xlu2 %v4780_v45, %s3209_s23 }
 0x2f2   : > { %2112 = vrot.lane.b32.xlu1 %v4731_v38, %s3211_s8  ;;  %2946 = vmatmul.msk.f32.gmra.mxu3 %vm593_vm1, %v1623_v30  ;;  %v4919_v30 = vld [vmem:[#allocation2 + $0x180] sm:$0xff] }
 0x2f3   : > { %v4852_v41 = vpop.permute.xlu2 %2104  ;;  %v2140_v6 = vrot.slane %v4919_v30, 2 }
 0x2f4   : > { %v1727_v31 = vpop.f32.mrf.mxu2  ;;  %v4855_v2 = vpop.permute.xlu1 %1998 }
 0x2f5   : > { %v1728_v19 = vadd.f32 %v4519_v48, %v1727_v31 }
 0x2f6   : > { %2114 = vrot.lane.b32.xlu0 %v4812_v27, %s3211_s8 }
 0x2f7   : > { %v1763_v25 = vadd.f32 %v1728_v19, %v1631_v43  ;;  %v4921_v43 = vld [vmem:[#allocation2 + $0x188] sm:$0xff]  ;;  %v4930_v19 = vsel %vm955_vm4, %v1984_v24, %v1986_v23 }
 0x2f8   : > { %v4864_v16 = vpop.permute.xlu0 %2000  ;;  %v2141_v35 = vrot.slane %v4921_v43, 2 }
 0x2f9   : > { %v1779_v26 = vmax.f32 %v1763_v25, 0.0  ;;  %2322 = vrot.lane.b32.xlu2 %v4867_v22, %s3212_s17 }
 0x2fa   : > { %2269 = vrot.lane.b32.xlu1 %v4872_v50, %s3213_s11 }
 0x2fb   : > { %1795 = vst.msk [vmem:[%s4543_s18 + $0x30] sm:$0xff] %vm351_vm0, %v1779_v26  ;;  %v4878_v49 = vpop.permute.xlu2 %2261 }
 0x2fc   : > { %v1730_v0 = vpop.f32.mrf.mxu2  ;;  %v4881_v7 = vpop.permute.xlu1 %2155 }
 0x2fd   : > { %v1731_v34 = vadd.f32 %v4519_v48, %v1730_v0  ;;  %v2088_v0 = vrot.slane %v4921_v43, 1 }
 0x2fe   : > { %2271 = vrot.lane.b32.xlu0 %v4885_v63, %s3213_s11 }
 0x2ff   : > { %v1764_v14 = vadd.f32 %v1731_v34, %v1632_v36  ;;  %v2087_v36 = vrot.slane %v4919_v30, 1 }
 0x300   : > { %v4889_v4 = vpop.permute.xlu0 %2157 }
 0x301   : > { %v1780_v32 = vmax.f32 %v1764_v14, 0.0  ;;  %2060 = vrot.lane.b32.xlu2 %v4695_v46, %s5370_s10  ;;  %v2089_v34 = vsel %vm866_vm2, %v2087_v36, %v2088_v0  ;;  %v1634_v14 = vld [vmem:[%s3347_s16 + $0x48] sm:$0xff] }
 0x302   : > { %2010 = vrot.lane.b32.xlu1 %v4710_v12, %s3207_s15  ;;  %v5020_v36 = vld [vmem:[#allocation2 + $0x198] sm:$0xff] }
 0x303   : > { %1796 = vst.msk [vmem:[%s4543_s18 + $0x38] sm:$0xff] %vm351_vm0, %v1780_v32  ;;  %v1606_v56 = vpop.f32.mrf.mxu1  ;;  %v4897_v28 = vpop.permute.xlu2 %2002 }
 0x304   : > { %v1607_v62 = vadd.f32 %v4765_v5, %v1606_v56  ;;  %v4900_v15 = vpop.permute.xlu1 %2312 }
 0x306   : > { %v1624_v9 = vmax.f32 %v1607_v62, 0.0  ;;  %2012 = vrot.lane.b32.xlu0 %v4780_v45, %s3207_s15 }
 0x308   : > { %2947 = vmatmul.msk.f32.gmra.mxu3 %vm593_vm1, %v1624_v9  ;;  %v4905_v51 = vpop.permute.xlu0 %2314 }
 0x309   : > { %2217 = vrot.lane.b32.xlu2 %v4847_v29, %s3210_s29 }
 0x30a   : > { %2167 = vrot.lane.b32.xlu1 %v4786_v37, %s3209_s23 }
 0x30b   : > { %v4911_v12 = vpop.permute.xlu2 %2159 }
 0x30c   : > { %v4913_v18 = vpop.permute.xlu1 %2050 }
 0x30d   : > { %v1733_v1 = vpop.f32.mrf.mxu2 }
 0x30e   : > { %v1734_v45 = vadd.f32 %v4519_v48, %v1733_v1  ;;  %2169 = vrot.lane.b32.xlu0 %v4867_v22, %s3209_s23 }
 0x310   : > { %v1765_v31 = vadd.f32 %v1734_v45, %v1633_v3  ;;  %2948 = vmatmul.msk.f32.vlgmr.msra.gmra.mxu3 %vm1495_vm12, %v4632_v42  ;;  %v4925_v61 = vpop.permute.xlu0 %2052 }
 0x311   : > { %1924 = vrot.lane.b32.xlu2 %v4731_v38, %s3206_s19  ;;  %v4945_v38 = vsel %vm955_vm4, %v2140_v6, %v2141_v35 }
 0x312   : > { %v1781_v20 = vmax.f32 %v1765_v31, 0.0  ;;  %2324 = vrot.lane.b32.xlu1 %v4930_v19, %s3212_s17 }
 0x313   : > { %v4936_v25 = vpop.permute.xlu2 %2316 }
 0x314   : > { %1797 = vst.msk [vmem:[%s4543_s18 + $0x40] sm:$0xff] %vm351_vm0, %v1781_v20  ;;  %v4940_v42 = vpop.permute.xlu1 %2207 }
 0x316   : > { %2326 = vrot.lane.b32.xlu0 %v4945_v38, %s3212_s17 }
 0x318   : > { %2949 = vmatmul.msk.f32.gmra.mxu3 %vm1495_vm12, %v4680_v8  ;;  %v4951_v24 = vpop.permute.xlu0 %2209 }
 0x319   : > { %2116 = vrot.lane.b32.xlu2 %v4872_v50, %s3211_s8 }
 0x31a   : > { %2062 = vrot.lane.b32.xlu1 %v4822_v33, %s5370_s10 }
 0x31b   : > { %v4957_v26 = vpop.permute.xlu2 %2054 }
 0x31c   : > { %v1915_v44 = vpop.permute.xlu1 %1914 }
 0x31e   : > { %2064 = vrot.lane.b32.xlu0 %v4847_v29, %s5370_s10 }
 0x320   : > { %2950 = vmatmul.msk.f32.gmra.mxu3 %vm1495_vm12, %v4752_v21  ;;  %v4965_v8 = vpop.permute.xlu0 %1916  ;;  %v3103_v21 = vld [vmem:[#allocation2 + $0xf8] sm:$0xff] }
 0x321   : > { %2273 = vrot.lane.b32.xlu2 %v2089_v34, %s3213_s11  ;;  %v2355_v1 = vsel %vm593_vm1, %v3103_v21, %v4807_v10 }
 0x322   : > { %2219 = vrot.lane.b32.xlu1 %v4919_v30, %s3210_s29  ;;  %v2371_v31 = vsel %vm1374_vm6, %v2355_v1, %v4855_v2 }
 0x323   : > { %v1736_v32 = vpop.f32.mrf.mxu3  ;;  %v4972_v56 = vpop.permute.xlu2 %2211  ;;  %v2387_v10 = vsel %vm1391_vm7, %v2371_v31, %v4798_v39 }
 0x324   : > { %v1737_v62 = vadd.f32 %v4519_v48, %v1736_v32  ;;  %v2107_v9 = vpop.permute.xlu1 %2106 }
 0x326   : > { %v1766_v3 = vadd.f32 %v1737_v62, %v1634_v14  ;;  %2221 = vrot.lane.b32.xlu0 %v4921_v43, %s3210_s29 }
 0x328   : > { %v1782_v23 = vmax.f32 %v1766_v3, 0.0  ;;  %2951 = vmatmul.msk.f32.gmra.mxu3 %vm1495_vm12, %v4792_v53  ;;  %v4981_v45 = vpop.permute.xlu0 %2108  ;;  %v2403_v53 = vsel %vm351_vm0, %v2387_v10, %v4828_v47  ;;  %v2244_v3 = vrot.slane %v5020_v36, 1 }
 0x329   : > { %2014 = vrot.lane.b32.xlu2 %v4786_v37, %s3207_s15  ;;  %v2356_v37 = vsel %vm593_vm1, %v4359_v11, %v4834_v58  ;;  %v2419_v2 = vsel %vm1424_vm8, %v2403_v53, %v4881_v7 }
 0x32a   : > { %1798 = vst.msk [vmem:[%s4543_s18 + $0x48] sm:$0xff] %vm351_vm0, %v1782_v23  ;;  %1926 = vrot.lane.b32.xlu1 %v4812_v27, %s3206_s19  ;;  %v2372_v39 = vsel %vm1374_vm6, %v2356_v37, %v4864_v16  ;;  %v2435_v11 = vsel %vm1441_vm9, %v2419_v2, %v4819_v60  ;;  %v5022_v16 = vld [vmem:[#allocation2 + $0x1a0] sm:$0xff] }
 0x32b   : > { %v4991_v6 = vpop.permute.xlu2 %1918  ;;  %v2388_v47 = vsel %vm1391_vm7, %v2372_v39, %v4913_v18  ;;  %v2357_v18 = vsel %vm593_vm1, %v4361_v13, %v1915_v44  ;;  %v2451_v60 = vsel %vm1458_vm10, %v2435_v11, %v4843_v17  ;;  %v2245_v21 = vrot.slane %v5022_v16, 1 }
 0x32c   : > { %v2264_v20 = vpop.permute.xlu1 %2263  ;;  %v2404_v14 = vsel %vm351_vm0, %v2388_v47, %v4852_v41  ;;  %v2467_v62 = vsel %vm1475_vm11, %v2451_v60, %v4900_v15  ;;  %v2373_v15 = vsel %vm1374_vm6, %v2357_v18, %v4897_v28  ;;  %v1835_v60 = vld [vmem:[#allocation2 + $0x1a8] sm:$0x3] }
 0x32d   : > { %v2420_v41 = vsel %vm1424_vm8, %v2404_v14, %v4889_v4  ;;  %v2298_v14 = vrot.slane %v5022_v16, 2 }
 0x32e   : > { %1928 = vrot.lane.b32.xlu0 %v4872_v50, %s3206_s19  ;;  %v1832_v50 = vld [vmem:[#allocation2 + $0x190] sm:$0x3]  ;;  %v2436_v17 = vsel %vm1441_vm9, %v2420_v41, %v4940_v42  ;;  %v2389_v42 = vsel %vm1391_vm7, %v2373_v15, %v4925_v61  ;;  %v2358_v61 = vsel %vm593_vm1, %v4507_v55, %v4965_v8  ;;  %v2300_v41 = vrot.slane %v1835_v60, 2 }
 0x32f   : > { %v2143_v7 = vrot.slane %v1832_v50, 2  ;;  %v2090_v32 = vrot.slane %v1832_v50, 1  ;;  %v2405_v31 = vsel %vm351_vm0, %v2389_v42, %v2107_v9  ;;  %v1636_v50 = vld [vmem:[%s3347_s16 + $0x58] sm:$0xff] }
 0x330   : > { %2952 = vmatmul.msk.f32.gmra.mxu3 %vm1495_vm12, %v4841_v57  ;;  %v5006_v27 = vpop.permute.xlu0 %2265  ;;  %v2421_v2 = vsel %vm1424_vm8, %v2405_v31, %v4911_v12  ;;  %v2247_v31 = vrot.slane %v1835_v60, 1 }
 0x331   : > { %2171 = vrot.lane.b32.xlu2 %v4930_v19, %s3209_s23  ;;  %v2144_v13 = vsel %vm955_vm4, %v2141_v35, %v2143_v7  ;;  %v5047_v44 = vsel %vm866_vm2, %v2088_v0, %v2090_v32  ;;  %v2246_v35 = vsel %vm866_vm2, %v2244_v3, %v2245_v21  ;;  %v2452_v0 = vsel %vm1458_vm10, %v2436_v17, %v4878_v49 }
 0x332   : > { %2118 = vrot.lane.b32.xlu1 %v4885_v63, %s3211_s8  ;;  %v2468_v37 = vsel %vm1475_vm11, %v2452_v0, %v4905_v51  ;;  %v2437_v51 = vsel %vm1441_vm9, %v2421_v2, %v4951_v24  ;;  %v2359_v32 = vsel %vm593_vm1, %v4539_v40, %v4991_v6  ;;  %v1637_v6 = vld [vmem:[%s3347_s16 + $0x60] sm:$0xff] }
 0x333   : > { %v5018_v58 = vpop.permute.xlu2 %2110  ;;  %v2453_v12 = vsel %vm1458_vm10, %v2437_v51, %v2264_v20 }
 0x334   : > { %v2005_v57 = vpop.permute.xlu1 %2004 }
 0x335   : > { %v2374_v9 = vsel %vm1374_vm6, %v2358_v61, %v2005_v57  ;;  %v2469_v57 = vsel %vm1475_vm11, %v2453_v12, %v4936_v25  ;;  %v2297_v25 = vrot.slane %v5020_v36, 2 }
 0x336   : > { %2120 = vrot.lane.b32.xlu0 %v2089_v34, %s3211_s8  ;;  %v1635_v34 = vld [vmem:[%s3347_s16 + $0x50] sm:$0xff]  ;;  %v2390_v8 = vsel %vm1391_vm7, %v2374_v9, %v4957_v26 }
 0x337   : > { %v2299_v3 = vsel %vm955_vm4, %v2297_v25, %v2298_v14 }
 0x338   : > { %2953 = vmatmul.msk.f32.gmra.mxu3 %vm1495_vm12, %v2467_v62  ;;  %v2007_v1 = vpop.permute.xlu0 %2006 }
 0x339   : > { %2328 = vrot.lane.b32.xlu2 %v2144_v13, %s3212_s17  ;;  %v2375_v62 = vsel %vm1374_vm6, %v2359_v32, %v2007_v1 }
 0x33a   : > { %2275 = vrot.lane.b32.xlu1 %v5047_v44, %s3213_s11 }
 0x33b   : > { %v5051_v4 = vpop.permute.xlu2 %2267 }
 0x33c   : > { %v1739_v23 = vpop.f32.mrf.mxu3  ;;  %v2162_v28 = vpop.permute.xlu1 %2161 }
 0x33d   : > { %v1740_v10 = vadd.f32 %v4519_v48, %v1739_v23 }
 0x33e   : > { %2277 = vrot.lane.b32.xlu0 %v2246_v35, %s3213_s11 }
 0x33f   : > { %v1767_v53 = vadd.f32 %v1740_v10, %v1635_v34 }
 0x340   : > { %2954 = vmatmul.msk.f32.gmra.mxu3 %vm1495_vm12, %v2468_v37  ;;  %v2164_v49 = vpop.permute.xlu0 %2163 }
 0x341   : > { %v1783_v39 = vmax.f32 %v1767_v53, 0.0  ;;  %2066 = vrot.lane.b32.xlu2 %v4919_v30, %s5370_s10  ;;  %v2248_v53 = vsel %vm866_vm2, %v2245_v21, %v2247_v31 }
 0x342   : > { %2016 = vrot.lane.b32.xlu1 %v4867_v22, %s3207_s15  ;;  %v2406_v22 = vsel %vm351_vm0, %v2390_v8, %v4981_v45 }
 0x343   : > { %1799 = vst.msk [vmem:[%s4543_s18 + $0x50] sm:$0xff] %vm351_vm0, %v1783_v39  ;;  %v5081_v55 = vpop.permute.xlu2 %2008  ;;  %v2422_v20 = vsel %vm1424_vm8, %v2406_v22, %v2162_v28 }
 0x344   : > { %v1742_v47 = vpop.f32.mrf.mxu3  ;;  %v2319_v11 = vpop.permute.xlu1 %2318 }
 0x345   : > { %v1743_v30 = vadd.f32 %v4519_v48, %v1742_v47 }
 0x346   : > { %2018 = vrot.lane.b32.xlu0 %v4930_v19, %s3207_s15  ;;  %v2438_v19 = vsel %vm1441_vm9, %v2422_v20, %v4972_v56  ;;  %s3155_s15 = scalar_lea.hbm %s5360_s7, 512 }
 0x347   : > { %v1768_v24 = vadd.f32 %v1743_v30, %v1636_v50  ;;  %v2454_v56 = vsel %vm1458_vm10, %v2438_v19, %v5006_v27 }
 0x348   : > { %2955 = vmatmul.msk.f32.gmra.mxu3 %vm1495_vm12, %v2469_v57  ;;  %v2321_v26 = vpop.permute.xlu0 %2320 }
 0x349   : > { %v1784_v7 = vmax.f32 %v1768_v24, 0.0  ;;  %2223 = vrot.lane.b32.xlu2 %v5020_v36, %s3210_s29  ;;  %v2470_v36 = vsel %vm1475_vm11, %v2454_v56, %v2319_v11  ;;  %v1639_v24 = vld [vmem:[%s3347_s16 + $0x70] sm:$0xff] }
 0x34a   : > { %2173 = vrot.lane.b32.xlu1 %v4945_v38, %s3209_s23 }
 0x34b   : > { %1800 = vst.msk [vmem:[%s4543_s18 + $0x58] sm:$0xff] %vm351_vm0, %v1784_v7  ;;  %v2166_v45 = vpop.permute.xlu2 %2165 }
 0x34c   : > { %v2057_v18 = vpop.permute.xlu1 %2056 }
 0x34d   : > { %v2391_v38 = vsel %vm1391_vm7, %v2375_v62, %v2057_v18 }
 0x34e   : > { %2175 = vrot.lane.b32.xlu0 %v2144_v13, %s3209_s23  ;;  %v2407_v40 = vsel %vm351_vm0, %v2391_v38, %v5018_v58  ;;  %v2301_v13 = vsel %vm955_vm4, %v2298_v14, %v2300_v41 }
 0x34f   : > { %v2423_v35 = vsel %vm1424_vm8, %v2407_v40, %v2164_v49 }
 0x350   : > { %2956 = vmatmul.msk.f32.gmra.mxu3 %vm1495_vm12, %v2470_v36  ;;  %v2059_v17 = vpop.permute.xlu0 %2058 }
 0x351   : > { %1930 = vrot.lane.b32.xlu2 %v4885_v63, %s3206_s19 }
 0x352   : > { %2330 = vrot.lane.b32.xlu1 %v2299_v3, %s3212_s17 }
 0x353   : > { %v1745_v1 = vpop.f32.mrf.mxu3  ;;  %v2323_v27 = vpop.permute.xlu2 %2322 }
 0x354   : > { %v1746_v15 = vadd.f32 %v4519_v48, %v1745_v1  ;;  %v2214_v42 = vpop.permute.xlu1 %2213 }
 0x355   : > { %v2439_v34 = vsel %vm1441_vm9, %v2423_v35, %v2214_v42 }
 0x356   : > { %v1769_v23 = vadd.f32 %v1746_v15, %v1637_v6  ;;  %v2455_v58 = vsel %vm1458_vm10, %v2439_v34, %v5051_v4  ;;  %2332 = vrot.lane.b32.xlu0 %v2301_v13, %s3212_s17  ;;  %v1640_v6 = vld [vmem:[%s3347_s16 + $0x78] sm:$0xff] }
 0x357   : > { %v2471_v63 = vsel %vm1475_vm11, %v2455_v58, %v2321_v26  ;;  %v5165_v26 = vld [vmem:[%s5359_s6] ss:$0 sm:$0xff] }
 0x358   : > { %v1785_v28 = vmax.f32 %v1769_v23, 0.0  ;;  %2957 = vmatmul.msk.f32.gmra.mxu3 %vm1495_vm12, %v2471_v63  ;;  %v2216_v0 = vpop.permute.xlu0 %2215 }
 0x359   : > { %2122 = vrot.lane.b32.xlu2 %v5047_v44, %s3211_s8 }
 0x35a   : > { %1801 = vst.msk [vmem:[%s4543_s18 + $0x60] sm:$0xff] %vm351_vm0, %v1785_v28  ;;  %2068 = vrot.lane.b32.xlu1 %v4921_v43, %s5370_s10  ;;  %v1638_v43 = vld [vmem:[%s3347_s16 + $0x68] sm:$0xff]  ;;  %s2799_s10 = sshll.u32 %s4543_s18, 4  ;;  %s2800_s10 = int_to_ptr.vmem [resolvable:$true] %s2799_s10 }
 0x35b   : > { %v2061_v4 = vpop.permute.xlu2 %2060 }
 0x35c   : > { %v1921_v10 = vpop.permute.xlu1 %1920 }
 0x35d   : > { %v2360_v37 = vsel %vm593_vm1, %v4604_v54, %v1921_v10 }
 0x35e   : > { %v2376_v44 = vsel %vm1374_vm6, %v2360_v37, %v5081_v55 }
 0x35f   : > { %v2392_v21 = vsel %vm1391_vm7, %v2376_v44, %v2059_v17 }
 0x360   : > { %v1923_v61 = vpop.permute.xlu0 %1922 }
 0x361   : > { %2279 = vrot.lane.b32.xlu2 %v2248_v53, %s3213_s11  ;;  %v2361_v20 = vsel %vm593_vm1, %v4606_v59, %v1923_v61 }
 0x362   : > { %2225 = vrot.lane.b32.xlu1 %v5022_v16, %s3210_s29  ;;  %s3018_s29 = sshll.u32 %s3276_s28, 8 }
 0x363   : > { %v2218_v39 = vpop.permute.xlu2 %2217  ;;  %s2798_s11 = scalar_lea.hbm %s5360_s7, %s3018_s29 }
 0x364   : > { %v1748_v2 = vpop.f32.mrf.mxu3  ;;  %v2113_v49 = vpop.permute.xlu1 %2112  ;;  %s2801_s20 = sshll.u32 %s2798_s11, 4  ;;  %s2802_s20 = int_to_ptr.hbm [resolvable:$true] %s2801_s20 }
 0x365   : > { %v1749_v9 = vadd.f32 %v4519_v48, %v1748_v2  ;;  %v2408_v54 = vsel %vm351_vm0, %v2392_v21, %v2113_v49  ;;  %s3149_s21 = sshra.s32 %s2802_s20, 4  ;;  %s3150_s21 = int_to_ptr.hbm [resolvable:$true] %s3149_s21 }
 0x366   : > { %v2424_v50 = vsel %vm1424_vm8, %v2408_v54, %v2166_v45  ;;  %s3151_s28 = scalar_lea.hbm %s3150_s21, 256  ;;  %p3156_p0 = scmp.lt.s32.totalorder %s3150_s21, %s5360_s7 }
 0x367   : > { %v1770_v51 = vadd.f32 %v1749_v9, %v1638_v43  ;;  %v2440_v16 = vsel %vm1441_vm9, %v2424_v50, %v2216_v0  ;;  %p3152_p6 = scmp.ne.s32.totalorder %s3150_s21, %s3151_s28  ;;  %p3157_p1 = scmp.lt.s32.totalorder %s3155_s15, %s3151_s28 }
 0x368   : > { %v2115_v12 = vpop.permute.xlu0 %2114 }
 0x369   : > { %v1786_v8 = vmax.f32 %v1770_v51, 0.0  ;;  %p3153_p9 = pnand %p3152_p6, %p3305_p11  ;;  %p3158_p3 = por %p3157_p1, %p3156_p0 }
 0x36b   : > { %1802 = vst.msk [vmem:[%s4543_s18 + $0x68] sm:$0xff] %vm351_vm0, %v1786_v8  ;;  %v1925_v30 = vpop.permute.xlu2 %1924  ;;  %p3154_p13 = pneg %p3153_p9 }
 0x36c   : > { %v2270_v55 = vpop.permute.xlu1 %2269 }
 0x36d   : > { %v2456_v47 = vsel %vm1458_vm10, %v2440_v16, %v2270_v55  ;;  %p3159_p4 = pnand %p3158_p3, %p3154_p13 }
 0x36e   : > { %v2472_v48 = vsel %vm1475_vm11, %v2456_v47, %v2323_v27  ;;  %v2362_v27 = vsel %vm593_vm1, %v4688_v52, %v1925_v30 }
 0x36f   : > { %2958 = vmatmul.msk.f32.gmra.mxu3 %vm1495_vm12, %v2472_v48 }
 0x370   : > { %v2272_v11 = vpop.permute.xlu0 %2271 }
 0x373   : > { %v2117_v18 = vpop.permute.xlu2 %2116 }
 0x374   : > { %v2011_v22 = vpop.permute.xlu1 %2010 }
 0x375   : > { %v1751_v57 = vpop.f32.mrf.mxu3  ;;  %v2377_v19 = vsel %vm1374_vm6, %v2361_v20, %v2011_v22 }
 0x376   : > { %v1752_v7 = vadd.f32 %v5165_v26, %v1751_v57  ;;  %v2393_v14 = vsel %vm1391_vm7, %v2377_v19, %v2061_v4 }
 0x377   : > { %v2409_v59 = vsel %vm351_vm0, %v2393_v14, %v2115_v12 }
 0x378   : > { %v1771_v45 = vadd.f32 %v1752_v7, %v1639_v24  ;;  %v2013_v25 = vpop.permute.xlu0 %2012 }
 0x379   : > { %v2378_v35 = vsel %vm1374_vm6, %v2362_v27, %v2013_v25 }
 0x37a   : > { %v1787_v32 = vmax.f32 %v1771_v45, 0.0 }
 0x37b   : > { %v2274_v41 = vpop.permute.xlu2 %2273 }
 0x37c   : > { %1803 = vst.msk [vmem:[%s4543_s18 + $0x70] sm:$0xff] %vm351_vm0, %v1787_v32  ;;  %v2168_v60 = vpop.permute.xlu1 %2167 }
 0x37d   : > { %v2425_v62 = vsel %vm1424_vm8, %v2409_v59, %v2168_v60 }
 0x37e   : > { %v2441_v56 = vsel %vm1441_vm9, %v2425_v62, %v2218_v39 }
 0x37f   : > { %v2457_v3 = vsel %vm1458_vm10, %v2441_v56, %v2272_v11 }
 0x380   : > { %v2170_v38 = vpop.permute.xlu0 %2169 }
 0x383   : > { %v2015_v23 = vpop.permute.xlu2 %2014 }
 0x384   : > { %v2325_v36 = vpop.permute.xlu1 %2324 }
 0x385   : > { %v2473_v17 = vsel %vm1475_vm11, %v2457_v3, %v2325_v36 }
 0x386   : > { %2959 = vmatmul.msk.f32.gmra.mxu3 %vm1495_vm12, %v2473_v17 }
 0x388   : > { %v2327_v40 = vpop.permute.xlu0 %2326 }
 0x38b   : > { %v1754_v1 = vpop.f32.mrf.mxu3  ;;  %v2172_v44 = vpop.permute.xlu2 %2171 }
 0x38c   : > { %v1755_v13 = vadd.f32 %v5165_v26, %v1754_v1  ;;  %v2063_v15 = vpop.permute.xlu1 %2062 }
 0x38d   : > { %v2394_v34 = vsel %vm1391_vm7, %v2378_v35, %v2063_v15 }
 0x38e   : > { %v1772_v42 = vadd.f32 %v1755_v13, %v1640_v6  ;;  %v2410_v28 = vsel %vm351_vm0, %v2394_v34, %v2117_v18 }
 0x38f   : > { %v2426_v52 = vsel %vm1424_vm8, %v2410_v28, %v2170_v38 }
 0x390   : > { %v1788_v58 = vmax.f32 %v1772_v42, 0.0  ;;  %v2065_v63 = vpop.permute.xlu0 %2064 }
 0x392   : > { %1804 = vst.msk [vmem:[%s4543_s18 + $0x78] sm:$0xff] %vm351_vm0, %v1788_v58 }
 0x393   : > { %v2543_v0 = vpop.f32.mrf.mxu3  ;;  %v2329_v51 = vpop.permute.xlu2 %2328 }
 0x394   : > { %v2544_v31 = vadd.f32 %v4765_v5, %v2543_v0  ;;  %v2220_v10 = vpop.permute.xlu1 %2219 }
 0x395   : > { %v2442_v4 = vsel %vm1441_vm9, %v2426_v52, %v2220_v10 }
 0x396   : > { %v2591_v53 = vmax.f32 %v2544_v31, 0.0  ;;  %v2458_v37 = vsel %vm1458_vm10, %v2442_v4, %v2274_v41 }
 0x397   : > { %v2474_v61 = vsel %vm1475_vm11, %v2458_v37, %v2327_v40 }
 0x398   : > { %2960 = vmatmul.msk.f32.gmra.mxu3 %vm1495_vm12, %v2474_v61  ;;  %2980 = vmatmul.msk.f32.vlgmr.msrb.gmra.mxu2 %vm593_vm1, %v2591_v53  ;;  %v2222_v43 = vpop.permute.xlu0 %2221 }
 0x39b   : > { %v2546_v2 = vpop.f32.mrf.mxu3  ;;  %v2067_v57 = vpop.permute.xlu2 %2066 }
 0x39c   : > { %v2547_v49 = vadd.f32 %v4765_v5, %v2546_v2  ;;  %v1927_v9 = vpop.permute.xlu1 %1926 }
 0x39d   : > { %v2363_v54 = vsel %vm593_vm1, %v4695_v46, %v1927_v9 }
 0x39e   : > { %v2592_v21 = vmax.f32 %v2547_v49, 0.0  ;;  %v2379_v39 = vsel %vm1374_vm6, %v2363_v54, %v2015_v23 }
 0x39f   : > { %v2395_v55 = vsel %vm1391_vm7, %v2379_v39, %v2065_v63 }
 0x3a0   : > { %2981 = vmatmul.msk.f32.gmra.mxu2 %vm593_vm1, %v2592_v21  ;;  %v1929_v8 = vpop.permute.xlu0 %1928 }
 0x3a1   : > { %v2364_v18 = vsel %vm593_vm1, %v4822_v33, %v1929_v8 }
 0x3a3   : > { %v2549_v12 = vpop.f32.mrf.mxu3  ;;  %v2224_v59 = vpop.permute.xlu2 %2223 }
 0x3a4   : > { %v2550_v50 = vadd.f32 %v4765_v5, %v2549_v12  ;;  %v2119_v16 = vpop.permute.xlu1 %2118 }
 0x3a5   : > { %v2411_v48 = vsel %vm351_vm0, %v2395_v55, %v2119_v16 }
 0x3a6   : > { %v2593_v47 = vmax.f32 %v2550_v50, 0.0  ;;  %v2427_v11 = vsel %vm1424_vm8, %v2411_v48, %v2172_v44 }
 0x3a7   : > { %v2443_v22 = vsel %vm1441_vm9, %v2427_v11, %v2222_v43 }
 0x3a8   : > { %2982 = vmatmul.msk.f32.gmra.mxu2 %vm593_vm1, %v2593_v47  ;;  %v2121_v7 = vpop.permute.xlu0 %2120 }
 0x3ab   : > { %v2552_v46 = vpop.f32.mrf.mxu3  ;;  %v1931_v33 = vpop.permute.xlu2 %1930 }
 0x3ac   : > { %v2553_v30 = vadd.f32 %v4765_v5, %v2552_v46  ;;  %v2276_v24 = vpop.permute.xlu1 %2275  ;;  %v2365_v28 = vsel %vm593_vm1, %v4847_v29, %v1931_v33 }
 0x3ad   : > { %v2459_v20 = vsel %vm1458_vm10, %v2443_v22, %v2276_v24 }
 0x3ae   : > { %v2594_v19 = vmax.f32 %v2553_v30, 0.0  ;;  %v2475_v45 = vsel %vm1475_vm11, %v2459_v20, %v2329_v51  ;;  %v2964_v30 = vld [vmem:[%s3347_s16 + $0x80] sm:$0xff] }
 0x3af   : > { %2961 = vmatmul.msk.f32.gmra.mxu3 %vm1495_vm12, %v2475_v45  ;;  %v2965_v45 = vld [vmem:[%s3347_s16 + $0x88] sm:$0xff] }
 0x3b0   : > { %2983 = vmatmul.msk.f32.gmra.mxu2 %vm593_vm1, %v2594_v19  ;;  %v2278_v38 = vpop.permute.xlu0 %2277 }
 0x3b3   : > { %v2555_v25 = vpop.f32.mrf.mxu3  ;;  %v2123_v58 = vpop.permute.xlu2 %2122 }
 0x3b4   : > { %v2556_v14 = vadd.f32 %v4765_v5, %v2555_v25  ;;  %v2017_v32 = vpop.permute.xlu1 %2016 }
 0x3b5   : > { %v2380_v62 = vsel %vm1374_vm6, %v2364_v18, %v2017_v32 }
 0x3b6   : > { %v2595_v60 = vmax.f32 %v2556_v14, 0.0  ;;  %v2396_v56 = vsel %vm1391_vm7, %v2380_v62, %v2067_v57 }
 0x3b7   : > { %v2412_v17 = vsel %vm351_vm0, %v2396_v56, %v2121_v7 }
 0x3b8   : > { %2984 = vmatmul.msk.f32.gmra.mxu2 %vm593_vm1, %v2595_v60  ;;  %v2019_v27 = vpop.permute.xlu0 %2018  ;;  %v2966_v60 = vld [vmem:[%s3347_s16 + $0x90] sm:$0xff] }
 0x3b9   : > { %v2381_v10 = vsel %vm1374_vm6, %v2365_v28, %v2019_v27  ;;  %v2968_v27 = vld [vmem:[%s3347_s16 + $0xa0] sm:$0xff] }
 0x3bb   : > { %v2558_v36 = vpop.f32.mrf.mxu3  ;;  %v2280_v44 = vpop.permute.xlu2 %2279 }
 0x3bc   : > { %v2559_v3 = vadd.f32 %v4765_v5, %v2558_v36  ;;  %v2174_v41 = vpop.permute.xlu1 %2173 }
 0x3bd   : > { %v2428_v6 = vsel %vm1424_vm8, %v2412_v17, %v2174_v41  ;;  %v2967_v41 = vld [vmem:[%s3347_s16 + $0x98] sm:$0xff] }
 0x3be   : > { %v2596_v40 = vmax.f32 %v2559_v3, 0.0  ;;  %v2444_v1 = vsel %vm1441_vm9, %v2428_v6, %v2224_v59 }
 0x3bf   : > { %v2460_v42 = vsel %vm1458_vm10, %v2444_v1, %v2278_v38 }
 0x3c0   : > { %2985 = vmatmul.msk.f32.gmra.mxu2 %vm593_vm1, %v2596_v40  ;;  %v2176_v0 = vpop.permute.xlu0 %2175 }
 0x3c3   : > { %v2561_v13 = vpop.f32.mrf.mxu3 }
 0x3c4   : > { %v2562_v15 = vadd.f32 %v4765_v5, %v2561_v13  ;;  %v2331_v35 = vpop.permute.xlu1 %2330 }
 0x3c5   : > { %v2476_v34 = vsel %vm1475_vm11, %v2460_v42, %v2331_v35 }
 0x3c6   : > { %v2597_v23 = vmax.f32 %v2562_v15, 0.0  ;;  %2962 = vmatmul.msk.f32.gmra.mxu3 %vm1495_vm12, %v2476_v34  ;;  %v2969_v34 = vld [vmem:[%s3347_s16 + $0xa8] sm:$0xff] }
 0x3c8   : > { %2986 = vmatmul.msk.f32.gmra.mxu2 %vm593_vm1, %v2597_v23  ;;  %v2333_v49 = vpop.permute.xlu0 %2332 }
 0x3cb   : > { %v2564_v63 = vpop.f32.mrf.mxu3 }
 0x3cc   : > { %v2565_v31 = vadd.f32 %v4765_v5, %v2564_v63  ;;  %v2069_v52 = vpop.permute.xlu1 %2068 }
 0x3cd   : > { %v2397_v53 = vsel %vm1391_vm7, %v2381_v10, %v2069_v52  ;;  %v2970_v52 = vld [vmem:[%s3347_s16 + $0xb0] sm:$0xff] }
 0x3ce   : > { %v2598_v4 = vmax.f32 %v2565_v31, 0.0  ;;  %v2413_v37 = vsel %vm351_vm0, %v2397_v53, %v2123_v58 }
 0x3cf   : > { %v2429_v2 = vsel %vm1424_vm8, %v2413_v37, %v2176_v0 }
 0x3d0   : > { %2987 = vmatmul.msk.f32.gmra.mxu2 %vm593_vm1, %v2598_v4 }
 0x3d3   : > { %v2567_v61 = vpop.f32.mrf.mxu3 }
 0x3d4   : > { %v2568_v43 = vadd.f32 %v4765_v5, %v2567_v61  ;;  %v2226_v29 = vpop.permute.xlu1 %2225 }
 0x3d5   : > { %v2445_v9 = vsel %vm1441_vm9, %v2429_v2, %v2226_v29 }
 0x3d6   : > { %v2599_v21 = vmax.f32 %v2568_v43, 0.0  ;;  %v2461_v54 = vsel %vm1458_vm10, %v2445_v9, %v2280_v44  ;;  %v2971_v44 = vld [vmem:[%s3347_s16 + $0xb8] sm:$0xff] }
 0x3d7   : > { %v2477_v39 = vsel %vm1475_vm11, %v2461_v54, %v2333_v49 }
 0x3d8   : > { %2963 = vmatmul.msk.f32.gmra.mxu3 %vm1495_vm12, %v2477_v39  ;;  %2988 = vmatmul.msk.f32.gmra.mxu2 %vm593_vm1, %v2599_v21  ;;  %v2972_v21 = vld [vmem:[%s3347_s16 + $0xc0] sm:$0xff] }
 0x3db   : > { %v2570_v51 = vpop.f32.mrf.mxu3 }
 0x3dc   : > { %v2571_v12 = vadd.f32 %v4765_v5, %v2570_v51 }
 0x3de   : > { %v2600_v8 = vmax.f32 %v2571_v12, 0.0 }
 0x3e0   : > { %2989 = vmatmul.msk.f32.gmra.mxu2 %vm593_vm1, %v2600_v8 }
 0x3f2   : > { %v2573_v50 = vpop.f32.mrf.mxu3 }
 0x3f3   : > { %v2574_v16 = vadd.f32 %v4765_v5, %v2573_v50 }
 0x3f5   : > { %v2601_v55 = vmax.f32 %v2574_v16, 0.0  ;;  %v2973_v16 = vld [vmem:[%s3347_s16 + $0xc8] sm:$0xff] }
 0x3f7   : > { %2990 = vmatmul.msk.f32.gmra.mxu2 %vm593_vm1, %v2601_v55 }
 0x409   : > { %v2576_v47 = vpop.f32.mrf.mxu3 }
 0x40a   : > { %v2577_v48 = vadd.f32 %v4765_v5, %v2576_v47 }
 0x40c   : > { %v2602_v11 = vmax.f32 %v2577_v48, 0.0 }
 0x40e   : > { %2991 = vmatmul.msk.f32.gmra.mxu2 %vm593_vm1, %v2602_v11 }
 0x41b   : > { %v2579_v46 = vpop.f32.mrf.mxu3  ;;  %v2689_v22 = vpop.f32.mrf.mxu2 }
 0x41c   : > { %v2580_v24 = vadd.f32 %v4765_v5, %v2579_v46  ;;  %v2690_v57 = vadd.f32 %v5165_v26, %v2689_v22 }
 0x41e   : > { %v2603_v20 = vmax.f32 %v2580_v24, 0.0  ;;  %v2737_v7 = vadd.f32 %v2964_v30, %v2690_v57  ;;  %v2975_v57 = vld [vmem:[%s3347_s16 + $0xd8] sm:$0xff] }
 0x420   : > { %v2753_v19 = vmax.f32 %v2737_v7, 0.0  ;;  %2992 = vmatmul.msk.f32.gmra.mxu2 %vm593_vm1, %v2603_v20 }
 0x422   : > { %2996 = vst.msk [vmem:[%s4543_s18 + $0x80] sm:$0xff] %vm351_vm0, %v2753_v19 }
 0x423   : > { %v2692_v25 = vpop.f32.mrf.mxu2 }
 0x424   : > { %v2693_v14 = vadd.f32 %v5165_v26, %v2692_v25  ;;  %v2976_v25 = vld [vmem:[%s3347_s16 + $0xe0] sm:$0xff] }
 0x426   : > { %v2738_v32 = vadd.f32 %v2965_v45, %v2693_v14 }
 0x428   : > { %v2754_v18 = vmax.f32 %v2738_v32, 0.0 }
 0x42a   : > { %2997 = vst.msk [vmem:[%s4543_s18 + $0x88] sm:$0xff] %vm351_vm0, %v2754_v18 }
 0x42b   : > { %v2695_v59 = vpop.f32.mrf.mxu2 }
 0x42c   : > { %v2696_v62 = vadd.f32 %v5165_v26, %v2695_v59  ;;  %v2977_v59 = vld [vmem:[%s3347_s16 + $0xe8] sm:$0xff] }
 0x42e   : > { %v2739_v38 = vadd.f32 %v2966_v60, %v2696_v62 }
 0x430   : > { %v2755_v56 = vmax.f32 %v2739_v38, 0.0 }
 0x432   : > { %2998 = vst.msk [vmem:[%s4543_s18 + $0x90] sm:$0xff] %vm351_vm0, %v2755_v56  ;;  %v2582_v36 = vpop.f32.mrf.mxu3 }
 0x433   : > { %v2583_v3 = vadd.f32 %v4765_v5, %v2582_v36  ;;  %v2698_v17 = vpop.f32.mrf.mxu2 }
 0x434   : > { %v2699_v40 = vadd.f32 %v5165_v26, %v2698_v17 }
 0x435   : > { %v2604_v6 = vmax.f32 %v2583_v3, 0.0  ;;  %v2978_v3 = vld [vmem:[%s3347_s16 + $0xf0] sm:$0xff] }
 0x436   : > { %v2740_v33 = vadd.f32 %v2967_v41, %v2699_v40 }
 0x437   : > { %2993 = vmatmul.msk.f32.gmra.mxu2 %vm593_vm1, %v2604_v6 }
 0x438   : > { %v2756_v1 = vmax.f32 %v2740_v33, 0.0  ;;  %v2979_v33 = vld [vmem:[%s3347_s16 + $0xf8] sm:$0xff] }
 0x43a   : > { %2999 = vst.msk [vmem:[%s4543_s18 + $0x98] sm:$0xff] %vm351_vm0, %v2756_v1 }
 0x43b   : > { %v2701_v13 = vpop.f32.mrf.mxu2 }
 0x43c   : > { %v2702_v15 = vadd.f32 %v5165_v26, %v2701_v13 }
 0x43e   : > { %v2741_v35 = vadd.f32 %v2968_v27, %v2702_v15 }
 0x440   : > { %v2757_v42 = vmax.f32 %v2741_v35, 0.0 }
 0x442   : > { %3000 = vst.msk [vmem:[%s4543_s18 + $0xa0] sm:$0xff] %vm351_vm0, %v2757_v42 }
 0x443   : > { %v2704_v23 = vpop.f32.mrf.mxu2 }
 0x444   : > { %v2705_v58 = vadd.f32 %v5165_v26, %v2704_v23 }
 0x446   : > { %v2742_v63 = vadd.f32 %v2969_v34, %v2705_v58 }
 0x448   : > { %v2758_v28 = vmax.f32 %v2742_v63, 0.0 }
 0x449   : > { %v2585_v0 = vpop.f32.mrf.mxu3 }
 0x44a   : > { %3001 = vst.msk [vmem:[%s4543_s18 + $0xa8] sm:$0xff] %vm351_vm0, %v2758_v28  ;;  %v2586_v31 = vadd.f32 %v4765_v5, %v2585_v0 }
 0x44b   : > { %v2707_v10 = vpop.f32.mrf.mxu2 }
 0x44c   : > { %v2605_v4 = vmax.f32 %v2586_v31, 0.0  ;;  %v2708_v53 = vadd.f32 %v5165_v26, %v2707_v10 }
 0x44e   : > { %v2743_v37 = vadd.f32 %v2970_v52, %v2708_v53  ;;  %2994 = vmatmul.msk.f32.gmra.mxu2 %vm593_vm1, %v2605_v4 }
 0x450   : > { %v2759_v61 = vmax.f32 %v2743_v37, 0.0 }
 0x452   : > { %3002 = vst.msk [vmem:[%s4543_s18 + $0xb0] sm:$0xff] %vm351_vm0, %v2759_v61 }
 0x453   : > { %v2710_v43 = vpop.f32.mrf.mxu2 }
 0x454   : > { %v2711_v2 = vadd.f32 %v5165_v26, %v2710_v43 }
 0x456   : > { %v2744_v29 = vadd.f32 %v2971_v44, %v2711_v2 }
 0x458   : > { %v2760_v49 = vmax.f32 %v2744_v29, 0.0 }
 0x45a   : > { %3003 = vst.msk [vmem:[%s4543_s18 + $0xb8] sm:$0xff] %vm351_vm0, %v2760_v49 }
 0x45b   : > { %v2588_v9 = vpop.f32.mrf.mxu3  ;;  %v2713_v54 = vpop.f32.mrf.mxu2 }
 0x45c   : > { %v2589_v39 = vadd.f32 %v4765_v5, %v2588_v9  ;;  %v2714_v51 = vadd.f32 %v5165_v26, %v2713_v54  ;;  %v2974_v5 = vld [vmem:[%s3347_s16 + $0xd0] sm:$0xff] }
 0x45e   : > { %v2606_v12 = vmax.f32 %v2589_v39, 0.0  ;;  %v2745_v8 = vadd.f32 %v2972_v21, %v2714_v51 }
 0x460   : > { %v2761_v50 = vmax.f32 %v2745_v8, 0.0  ;;  %2995 = vmatmul.msk.f32.gmra.mxu2 %vm593_vm1, %v2606_v12 }
 0x462   : > { %3004 = vst.msk [vmem:[%s4543_s18 + $0xc0] sm:$0xff] %vm351_vm0, %v2761_v50 }
 0x463   : > { %v2716_v55 = vpop.f32.mrf.mxu2 }
 0x464   : > { %v2717_v47 = vadd.f32 %v5165_v26, %v2716_v55 }
 0x466   : > { %v2746_v48 = vadd.f32 %v2973_v16, %v2717_v47 }
 0x468   : > { %v2762_v11 = vmax.f32 %v2746_v48, 0.0 }
 0x46a   : > { %3005 = vst.msk [vmem:[%s4543_s18 + $0xc8] sm:$0xff] %vm351_vm0, %v2762_v11 }
 0x47a   : > { %v2719_v46 = vpop.f32.mrf.mxu2 }
 0x47b   : > { %v2720_v30 = vadd.f32 %v5165_v26, %v2719_v46 }
 0x47d   : > { %v2747_v22 = vadd.f32 %v2974_v5, %v2720_v30 }
 0x47f   : > { %v2763_v24 = vmax.f32 %v2747_v22, 0.0 }
 0x481   : > { %3006 = vst.msk [vmem:[%s4543_s18 + $0xd0] sm:$0xff] %vm351_vm0, %v2763_v24 }
 0x491   : > { %v2722_v20 = vpop.f32.mrf.mxu2 }
 0x492   : > { %v2723_v7 = vadd.f32 %v5165_v26, %v2722_v20 }
 0x494   : > { %v2748_v19 = vadd.f32 %v2975_v57, %v2723_v7 }
 0x496   : > { %v2764_v45 = vmax.f32 %v2748_v19, 0.0 }
 0x498   : > { %3007 = vst.msk [vmem:[%s4543_s18 + $0xd8] sm:$0xff] %vm351_vm0, %v2764_v45 }
 0x4a3   : > { %v2725_v14 = vpop.f32.mrf.mxu2 }
 0x4a4   : > { %v2726_v32 = vadd.f32 %v5165_v26, %v2725_v14 }
 0x4a6   : > { %v2749_v18 = vadd.f32 %v2976_v25, %v2726_v32 }
 0x4a8   : > { %v2765_v60 = vmax.f32 %v2749_v18, 0.0 }
 0x4aa   : > { %3008 = vst.msk [vmem:[%s4543_s18 + $0xe0] sm:$0xff] %vm351_vm0, %v2765_v60 }
 0x4ba   : > { %v2728_v62 = vpop.f32.mrf.mxu2 }
 0x4bb   : > { %v2729_v38 = vadd.f32 %v5165_v26, %v2728_v62 }
 0x4bd   : > { %v2750_v56 = vadd.f32 %v2977_v59, %v2729_v38 }
 0x4bf   : > { %v2766_v36 = vmax.f32 %v2750_v56, 0.0 }
 0x4c1   : > { %3009 = vst.msk [vmem:[%s4543_s18 + $0xe8] sm:$0xff] %vm351_vm0, %v2766_v36 }
 0x4d1   : > { %v2731_v41 = vpop.f32.mrf.mxu2 }
 0x4d2   : > { %v2732_v17 = vadd.f32 %v5165_v26, %v2731_v41 }
 0x4d4   : > { %v2751_v40 = vadd.f32 %v2978_v3, %v2732_v17 }
 0x4d6   : > { %v2767_v6 = vmax.f32 %v2751_v40, 0.0 }
 0x4d8   : > { %3010 = vst.msk [vmem:[%s4543_s18 + $0xf0] sm:$0xff] %vm351_vm0, %v2767_v6 }
 0x4e3   : > { %v2734_v1 = vpop.f32.mrf.mxu2 }
 0x4e4   : > { %v2735_v27 = vadd.f32 %v5165_v26, %v2734_v1 }
 0x4e6   : > { %v2752_v13 = vadd.f32 %v2979_v33, %v2735_v27 }
 0x4e8   : > { %v2768_v15 = vmax.f32 %v2752_v13, 0.0 }
 0x4ea   : > { %3011 = vst.msk [vmem:[%s4543_s18 + $0xf8] sm:$0xff] %vm351_vm0, %v2768_v15 }
 0x4eb   : > { %3162 = shalt.err (!%p3159_p4)
}
 0x4ec   : > { %s3214_s22 = smov 128  }
 0x4ed   : > { %3030 = dma.vmem_to_hbm [thread:$0]  (%p3305_p11), %s2800_s10, 4096, %s2802_s20, %s2787_s9, %s3214_s22, %s3214_s22, %s3206_s19  }
 0x4ee PF: > { %s2816_s18 = sand.u32 1, %s3189_s24   ;;  %p5372_p7 = scmp.ge.s32.totalorder %s3201_s27, 2 }
 0x4ef   : > { %s2817_s8 = scalar_lea.sflag [#allocation5], %s2816_s18 }
 0x4f0   : > { %p3037_p5 = pnand %p5372_p7, %p3309_p12 }
 0x4f2   : > { %p3038_p8 = pneg %p3037_p5 }
 0x4f4   : > { %3184 = dma.done.wait (%p3038_p8), %s2817_s8, 4096  }
 0x4f5   : > { %3186 = vsyncadd (%p3038_p8), %s2817_s8, 4294963200  ;;  %s5373_s17 = sld [smem:[#allocation9_spill]]  ;;  %p20_p10 = scmp.ge.s32.totalorder %s3280_s30, 4  }
 0x4f6   : > { %s5374_s24 = smov %s3193_s25  ;;  %s5375_s25 = smov %s3197_s26 }
 0x4f7   : > { %s5377_s27 = smov %s3280_s30  ;;  %22 = sbr.rel (!%p20_p10) target bundleno = 5 (0x5), region = 98 }
 0x4fb   : > { %s5376_s26 = smov %s5373_s17 }
 0x4fc   :  { %2823 = vsyncpa [#allocation4], 1 }
 0x4fd   :  { %2825 = vsyncpa [#allocation4 + $0x1], 1 }
 0x4fe   :  { %2826 = vsyncpa [#allocation5], 1 }
 0x4ff   :  { %2828 = vsyncpa [#allocation5 + $0x1], 1 }

</bundles_post_ra>
